<compile_context>
chip_gen: v5e
topology: v5e:2x2
jax: 0.10.0
libtpu: 0.0.40
codegen_flags: <defaults>
</compile_context>

<pallas_src>
import functools

import jax
import jax.numpy as jnp
from jax.experimental import pallas as pl
from jax.experimental.pallas import tpu as pltpu


HEAD_LANES = 128  # fused head output width (lane-dense stores)


def _round_up(x, m):
    return (x + m - 1) // m * m


def _vmem_bytes_estimate(Tb, Nt, Fp, Hp):
    """Rough VMEM working-set estimate (double-buffered I/O + scratch + live values)."""
    w_bytes = 2 * (Fp * 3 * Hp + Hp * 2 * Hp + Hp * Hp + Hp * 4 * Hp + 2 * Hp * HEAD_LANES)
    b_bytes = 4 * (3 * Hp + 4 * Hp + HEAD_LANES)
    x_blk = 2 * Tb * Nt * Fp                  # bf16 input block
    o_blk = 4 * Tb * Nt * HEAD_LANES          # f32 output block
    scratch = 4 * Nt * Hp + 4 * Tb * Nt * 3 * Hp + 2 * Tb * Nt * Hp
    live = 4 * Tb * Nt * (4 * Hp + 2 * Hp + HEAD_LANES)   # gb + hh + out epilogue values
    return 2 * (w_bytes + b_bytes + x_blk + o_blk) + scratch + live


def multigru_kernel(
    # inputs -------------------------------------------------------------
    x_ref,        # (Tb, Nt, Fp)   bf16  time-block of inputs for this node tile
    wx_ref,       # (Fp, 3Hp)      bf16  [Wxz | Wxr | Wxh]
    bx_ref,       # (1, 3Hp)       f32   [bz  | br  | bc ]
    whzr_ref,     # (Hp, 2Hp)      bf16  [Whz | Whr]
    whh_ref,      # (Hp, Hp)       bf16
    wbr_ref,      # (Hp, 4Hp)      bf16  [Wz_u | Wz_p | Wc_u | Wc_p]
    bbr_ref,      # (1, 4Hp)       f32
    whead_ref,    # (2Hp, 128)     bf16  rows 0:H -> Wu cols 0:3 ; rows Hp:Hp+H -> Ws col 3, Wp col 4
    bhead_ref,    # (1, 128)       f32   bu in 0:3, bs at 3, bp at 4
    # outputs ------------------------------------------------------------
    out_ref,      # (Tb, Nt, 128)  f32   fused head outputs (lane-dense)
    # scratch ------------------------------------------------------------
    h_state,      # VMEM (Nt, Hp)      f32   persistent backbone hidden (per node tile)
    gx_scr,       # VMEM (Tb, Nt, 3Hp) f32   batched x-side gate pre-activations
    hseq_scr,     # VMEM (Tb, Nt, Hp)  bf16  per-step backbone hidden (branch/head input)
):
    tb = pl.program_id(1)   # time-block index (innermost, recurrent axis)

    @pl.when(tb == 0)
    def _():
        h_state[...] = jnp.zeros_like(h_state)

    Tb, Nt, _ = x_ref.shape
    Hp = whh_ref.shape[0]
    bf16 = jnp.bfloat16
    dot = functools.partial(jnp.dot, preferred_element_type=jnp.float32)

    # Hoist the recurrently-used weights out of the time loop.
    whzr = whzr_ref[...]
    whh = whh_ref[...]

    # ---- batched x-side projection for the whole time block ---------------
    # One (Tb*Nt, Fp) @ (Fp, 3Hp) bf16 matmul, off the recurrent critical path.
    x2d = x_ref[...].reshape(Tb * Nt, -1)
    gx_all = dot(x2d, wx_ref[...]) + bx_ref[...]             # (Tb*Nt, 3Hp) f32
    gx_scr[...] = gx_all.reshape(Tb, Nt, 3 * Hp)

    # ---- recurrence: only the two small h-side matmuls stay serial --------
    def step(t, h):
        gx = gx_scr[t]                                       # (Nt, 3Hp) f32
        gh = dot(h.astype(bf16), whzr)                       # (Nt, 2Hp) f32
        zr = jax.nn.sigmoid(gx[:, :2 * Hp] + gh)
        z = zr[:, :Hp]
        r = zr[:, Hp:]
        c = jnp.tanh(gx[:, 2 * Hp:] + dot((h * r).astype(bf16), whh))
        h_new = z * h + (1.0 - z) * c                        # (Nt, Hp) f32
        hseq_scr[t] = h_new.astype(bf16)
        return h_new

    h_state[...] = jax.lax.fori_loop(0, Tb, step, h_state[...], unroll=True)

    # ---- branch GRUs (H_prev = 0) + all three heads, batched over time ----
    h_all = hseq_scr[...].reshape(Tb * Nt, Hp)               # bf16
    gb = dot(h_all, wbr_ref[...]) + bbr_ref[...]             # (Tb*Nt, 4Hp) f32
    hh = (1.0 - jax.nn.sigmoid(gb[:, :2 * Hp])) * jnp.tanh(gb[:, 2 * Hp:])
    # hh = [hu | hp]  (Tb*Nt, 2Hp); single lane-dense head matmul + bulk store.
    out2d = dot(hh.astype(bf16), whead_ref[...]) + bhead_ref[...]   # (Tb*Nt, 128)
    out_ref[...] = out2d.reshape(Tb, Nt, HEAD_LANES)


def multigru_forward(X_seq, params, *, time_block=16):
    """X_seq: (T, N, F) float32.  Returns (T, N, 3), (T, N), (T, N)."""
    T, N, F = X_seq.shape
    H = params["Whz"].shape[0]

    f32, bf16 = jnp.float32, jnp.bfloat16
    Fp = _round_up(F, 8)
    Hp = _round_up(H, 128)   # lane-tile-aligned gate slices inside the kernel

    def padw(w, rows, cols):
        w = w.astype(f32)
        return jnp.pad(w, ((0, rows - w.shape[0]), (0, cols - w.shape[1])))

    # -------- fuse + zero-pad parameters wrapper-side (weights -> bf16) ----
    wx = jnp.concatenate([padw(params["Wxz"], Fp, Hp),
                          padw(params["Wxr"], Fp, Hp),
                          padw(params["Wxh"], Fp, Hp)], axis=1).astype(bf16)
    bx = jnp.concatenate([padw(params["bz"], 1, Hp),
                          padw(params["br"], 1, Hp),
                          padw(params["bc"], 1, Hp)], axis=1)
    whzr = jnp.concatenate([padw(params["Whz"], Hp, Hp),
                            padw(params["Whr"], Hp, Hp)], axis=1).astype(bf16)
    whh = padw(params["Whh"], Hp, Hp).astype(bf16)
    wbr = jnp.concatenate([padw(params["Wz_u"], Hp, Hp),
                           padw(params["Wz_p"], Hp, Hp),
                           padw(params["Wc_u"], Hp, Hp),
                           padw(params["Wc_p"], Hp, Hp)], axis=1).astype(bf16)
    bbr = jnp.concatenate([padw(params["bz_u"], 1, Hp),
                           padw(params["bz_p"], 1, Hp),
                           padw(params["bc_u"], 1, Hp),
                           padw(params["bc_p"], 1, Hp)], axis=1)

    whead = jnp.zeros((2 * Hp, HEAD_LANES), f32)
    whead = whead.at[:H, 0:3].set(params["Wu"])            # head_u acts on hu
    whead = whead.at[Hp:Hp + H, 3:4].set(params["Ws"])     # head_s acts on hp
    whead = whead.at[Hp:Hp + H, 4:5].set(params["Wp"])     # head_p acts on hp
    whead = whead.astype(bf16)
    bhead = jnp.zeros((1, HEAD_LANES), f32)
    bhead = bhead.at[:, 0:3].set(params["bu"])
    bhead = bhead.at[:, 3:4].set(params["bs"])
    bhead = bhead.at[:, 4:5].set(params["bp"])

    # -------- activation padding / tiling (layout plumbing, sliced off) ----
    Tb = min(time_block, T)
    T_pad = _round_up(T, Tb)
    N16 = _round_up(N, 16)
    if N16 <= 128:
        N_pad, Nt = N16, N16                        # single node tile
    elif N16 <= 512:
        Nt = _round_up((N16 + 1) // 2, 16)          # 2 tiles -> both v7x TCs get work
        N_pad = 2 * Nt
    else:
        Nt = 256                                    # fills v6e MXU M dimension
        N_pad = _round_up(N16, Nt)
    n_blocks = N_pad // Nt
    t_blocks = T_pad // Tb

    # Feed x as bf16: halves input DMA bytes; it is only used as a matmul operand.
    x = jnp.pad(X_seq.astype(f32),
                ((0, T_pad - T), (0, N_pad - N), (0, Fp - F))).astype(bf16)

    vmem_limit = int(min(max(3 * _vmem_bytes_estimate(Tb, Nt, Fp, Hp) // 2,
                             32 * 1024 * 1024),
                         64 * 1024 * 1024))

    def full(arr):
        nd = arr.ndim
        return pl.BlockSpec(arr.shape, lambda n, t, _nd=nd: (0,) * _nd)

    out = pl.pallas_call(
        multigru_kernel,
        out_shape=jax.ShapeDtypeStruct((T_pad, N_pad, HEAD_LANES), jnp.float32),
        grid=(n_blocks, t_blocks),
        in_specs=[
            pl.BlockSpec((Tb, Nt, Fp), lambda n, t: (t, n, 0)),   # X time/node block
            full(wx), full(bx), full(whzr), full(whh),
            full(wbr), full(bbr), full(whead), full(bhead),
        ],
        out_specs=pl.BlockSpec((Tb, Nt, HEAD_LANES), lambda n, t: (t, n, 0)),
        scratch_shapes=[
            pltpu.VMEM((Nt, Hp), jnp.float32),            # persistent backbone hidden
            pltpu.VMEM((Tb, Nt, 3 * Hp), jnp.float32),    # batched x-side gates
            pltpu.VMEM((Tb, Nt, Hp), jnp.bfloat16),       # per-step hidden (branch/head input)
        ],
        compiler_params=pltpu.CompilerParams(
            # node tiles are independent (parallel -> megacore / v7x 2nd TC);
            # the time axis carries the recurrence -> arbitrary (sequential).
            dimension_semantics=("parallel", "arbitrary"),
            vmem_limit_bytes=vmem_limit),
    )(x, wx, bx, whzr, whh, wbr, bbr, whead, bhead)

    out = out[:T, :N]
    return out[..., 0:3], out[..., 3], out[..., 4]


def ref_forward(X_seq, p):
    """Pure-JAX f32 reference of the same forward pass (unfused params)."""
    T, N, F = X_seq.shape
    H = p["Whz"].shape[0]
    h = jnp.zeros((N, H), jnp.float32)
    us, ss, ps = [], [], []
    for t in range(T):
        x = X_seq[t]
        z = jax.nn.sigmoid(x @ p["Wxz"] + h @ p["Whz"] + p["bz"])
        r = jax.nn.sigmoid(x @ p["Wxr"] + h @ p["Whr"] + p["br"])
        ht = jnp.tanh(x @ p["Wxh"] + (h * r) @ p["Whh"] + p["bc"])
        h = z * h + (1.0 - z) * ht
        zu = jax.nn.sigmoid(h @ p["Wz_u"] + p["bz_u"])
        hu = (1.0 - zu) * jnp.tanh(h @ p["Wc_u"] + p["bc_u"])
        zp = jax.nn.sigmoid(h @ p["Wz_p"] + p["bz_p"])
        hp = (1.0 - zp) * jnp.tanh(h @ p["Wc_p"] + p["bc_p"])
        us.append(hu @ p["Wu"] + p["bu"])
        ss.append((hp @ p["Ws"] + p["bs"])[:, 0])
        ps.append((hp @ p["Wp"] + p["bp"])[:, 0])
    return jnp.stack(us), jnp.stack(ss), jnp.stack(ps)


def make_params(key, in_f, h):
    names_shapes = [
        ("Wxz", (in_f, h)), ("Wxr", (in_f, h)), ("Wxh", (in_f, h)),
        ("Whz", (h, h)), ("Whr", (h, h)), ("Whh", (h, h)),
        ("bz", (1, h)), ("br", (1, h)), ("bc", (1, h)),
        ("Wz_u", (h, h)), ("Wc_u", (h, h)), ("bz_u", (1, h)), ("bc_u", (1, h)),
        ("Wz_p", (h, h)), ("Wc_p", (h, h)), ("bz_p", (1, h)), ("bc_p", (1, h)),
        ("Wu", (h, 3)), ("bu", (1, 3)),
        ("Ws", (h, 1)), ("bs", (1, 1)),
        ("Wp", (h, 1)), ("bp", (1, 1)),
    ]
    keys = jax.random.split(key, len(names_shapes))
    return {
        name: 0.1 * jax.random.normal(k, shape, dtype=jnp.float32)
        for (name, shape), k in zip(names_shapes, keys)
    }


if __name__ == "__main__":
    T, N, F, H = 8, 16, 11, 32   # small shapes (module default HIDDEN=256 shrunk)

    key = jax.random.PRNGKey(0)
    k_x, k_p, k_e = jax.random.split(key, 3)
    X_seq = jax.random.normal(k_x, (T, N, F), dtype=jnp.float32)
    # edge_index is ignored: ChebConv with K=1 only uses the identity term.
    edge_index = jax.random.randint(k_e, (2, 32), 0, N, dtype=jnp.int32)
    params = make_params(k_p, F, H)

    out_u, out_s, out_p = multigru_forward(X_seq, params)
    jax.block_until_ready((out_u, out_s, out_p))

    ref_u, ref_s, ref_p = ref_forward(X_seq, params)
    assert out_u.shape == (T, N, 3) and out_s.shape == (T, N) and out_p.shape == (T, N)
    # bf16 MXU operands with f32 accumulation -> keep loose-ish tolerances.
    assert jnp.allclose(out_u, ref_u, rtol=5e-2, atol=5e-2)
    assert jnp.allclose(out_s, ref_s, rtol=5e-2, atol=5e-2)
    assert jnp.allclose(out_p, ref_p, rtol=5e-2, atol=5e-2)

    print("KERNEL_OK")
</pallas_src>

<mosaic_0001>
module attributes {stable_mosaic.version = 11 : i64} {
  func.func @multigru_kernel(%arg0: i32, %arg1: i32, %arg2: memref<8x16x16xbf16, #tpu.memory_space<vmem>>, %arg3: memref<16x384xbf16, #tpu.memory_space<vmem>>, %arg4: memref<1x384xf32, #tpu.memory_space<vmem>>, %arg5: memref<128x256xbf16, #tpu.memory_space<vmem>>, %arg6: memref<128x128xbf16, #tpu.memory_space<vmem>>, %arg7: memref<128x512xbf16, #tpu.memory_space<vmem>>, %arg8: memref<1x512xf32, #tpu.memory_space<vmem>>, %arg9: memref<256x128xbf16, #tpu.memory_space<vmem>>, %arg10: memref<1x128xf32, #tpu.memory_space<vmem>>, %arg11: memref<8x16x128xf32, #tpu.memory_space<vmem>>, %arg12: memref<16x128xf32, #tpu.memory_space<vmem>>, %arg13: memref<8x16x384xf32, #tpu.memory_space<vmem>>, %arg14: memref<8x16x128xbf16, #tpu.memory_space<vmem>>) attributes {dimension_semantics = [#tpu.dimension_semantics<parallel>, #tpu.dimension_semantics<arbitrary>], iteration_bounds = array<i64: 1, 1>, scalar_prefetch = 0 : i64, scratch_operands = 3 : i64, tpu.core_type = #tpu.core_type<tc>, window_params = [{transform_indices = @transform_0, window_bounds = array<i64: 8, 16, 16>}, {pipeline_mode = #tpu.pipeline_mode<synchronous>, transform_indices = @transform_1, window_bounds = array<i64: 16, 384>}, {pipeline_mode = #tpu.pipeline_mode<synchronous>, transform_indices = @transform_2, window_bounds = array<i64: 1, 384>}, {pipeline_mode = #tpu.pipeline_mode<synchronous>, transform_indices = @transform_3, window_bounds = array<i64: 128, 256>}, {pipeline_mode = #tpu.pipeline_mode<synchronous>, transform_indices = @transform_4, window_bounds = array<i64: 128, 128>}, {pipeline_mode = #tpu.pipeline_mode<synchronous>, transform_indices = @transform_5, window_bounds = array<i64: 128, 512>}, {pipeline_mode = #tpu.pipeline_mode<synchronous>, transform_indices = @transform_6, window_bounds = array<i64: 1, 512>}, {pipeline_mode = #tpu.pipeline_mode<synchronous>, transform_indices = @transform_7, window_bounds = array<i64: 256, 128>}, {pipeline_mode = #tpu.pipeline_mode<synchronous>, transform_indices = @transform_8, window_bounds = array<i64: 1, 128>}, {transform_indices = @transform_9, window_bounds = array<i64: 8, 16, 128>}]} {
    %c0_i32 = arith.constant 0 : i32
    %0 = arith.cmpi eq, %arg1, %c0_i32 : i32
    %1 = arith.extui %0 : i1 to i32
    %c0_i32_0 = arith.constant 0 : i32
    %2 = arith.cmpi ne, %1, %c0_i32_0 : i32
    scf.if %2 {
      %cst_101 = arith.constant 0.000000e+00 : f32
      %282 = vector.broadcast %cst_101 : f32 to vector<16x128xf32>
      %c0_102 = arith.constant 0 : index
      %c0_103 = arith.constant 0 : index
      %283 = vector.load %arg12[%c0_102, %c0_103] : memref<16x128xf32, #tpu.memory_space<vmem>>, vector<16x128xf32>
      tpu.vector_store %arg12[%c0_102, %c0_103], %282 {strides = array<i32>} : memref<16x128xf32, #tpu.memory_space<vmem>>, vector<16x128xf32>,
    } else {
    }
    %c0 = arith.constant 0 : index
    %c0_1 = arith.constant 0 : index
    %3 = vector.load %arg5[%c0, %c0_1] : memref<128x256xbf16, #tpu.memory_space<vmem>>, vector<128x256xbf16>
    %c0_2 = arith.constant 0 : index
    %c0_3 = arith.constant 0 : index
    %4 = vector.load %arg6[%c0_2, %c0_3] : memref<128x128xbf16, #tpu.memory_space<vmem>>, vector<128x128xbf16>
    %c0_4 = arith.constant 0 : index
    %c0_5 = arith.constant 0 : index
    %c0_6 = arith.constant 0 : index
    %5 = vector.load %arg2[%c0_4, %c0_5, %c0_6] : memref<8x16x16xbf16, #tpu.memory_space<vmem>>, vector<8x16x16xbf16>
    %6 = vector.shape_cast %5 : vector<8x16x16xbf16> to vector<128x16xbf16>
    %c0_7 = arith.constant 0 : index
    %c0_8 = arith.constant 0 : index
    %7 = vector.load %arg3[%c0_7, %c0_8] : memref<16x384xbf16, #tpu.memory_space<vmem>>, vector<16x384xbf16>
    %cst = arith.constant dense<0.000000e+00> : vector<128x384xf32>
    %8 = tpu.matmul %6, %7, %cst {dimension_numbers = #tpu.dot_dimension_numbers<[1], [0], [0], [1], [0, 0, 1, 1], [], []>} : vector<128x16xbf16>, vector<16x384xbf16>, vector<128x384xf32> -> vector<128x384xf32>
    %c0_9 = arith.constant 0 : index
    %c0_10 = arith.constant 0 : index
    %9 = vector.load %arg4[%c0_9, %c0_10] : memref<1x384xf32, #tpu.memory_space<vmem>>, vector<1x384xf32>
    %10 = vector.broadcast %9 : vector<1x384xf32> to vector<128x384xf32>
    %11 = arith.addf %8, %10 : vector<128x384xf32>
    %12 = vector.shape_cast %11 : vector<128x384xf32> to vector<8x16x384xf32>
    %c0_11 = arith.constant 0 : index
    %c0_12 = arith.constant 0 : index
    %c0_13 = arith.constant 0 : index
    %13 = vector.load %arg13[%c0_11, %c0_12, %c0_13] : memref<8x16x384xf32, #tpu.memory_space<vmem>>, vector<8x16x384xf32>
    tpu.vector_store %arg13[%c0_11, %c0_12, %c0_13], %12 {strides = array<i32>} : memref<8x16x384xf32, #tpu.memory_space<vmem>>, vector<8x16x384xf32>,
    %c0_14 = arith.constant 0 : index
    %c0_15 = arith.constant 0 : index
    %14 = vector.load %arg12[%c0_14, %c0_15] : memref<16x128xf32, #tpu.memory_space<vmem>>, vector<16x128xf32>
    %c0_i32_16 = arith.constant 0 : i32
    %15 = arith.index_cast %c0_i32_16 : i32 to index
    %c0_17 = arith.constant 0 : index
    %c0_18 = arith.constant 0 : index
    %16 = vector.load %arg13[%15, %c0_17, %c0_18] : memref<8x16x384xf32, #tpu.memory_space<vmem>>, vector<1x16x384xf32>
    %17 = vector.shape_cast %16 : vector<1x16x384xf32> to vector<16x384xf32>
    %18 = arith.truncf %14 : vector<16x128xf32> to vector<16x128xbf16>
    %cst_19 = arith.constant dense<0.000000e+00> : vector<16x256xf32>
    %19 = tpu.matmul %18, %3, %cst_19 {dimension_numbers = #tpu.dot_dimension_numbers<[1], [0], [0], [1], [0, 0, 1, 1], [], []>} : vector<16x128xbf16>, vector<128x256xbf16>, vector<16x256xf32> -> vector<16x256xf32>
    %20 = vector.extract_strided_slice %17 {offsets = [0, 0], sizes = [16, 256], strides = [1, 1]} : vector<16x384xf32> to vector<16x256xf32>
    %21 = arith.addf %20, %19 : vector<16x256xf32>
    %22 = arith.negf %21 : vector<16x256xf32>
    %23 = math.exp %22 : vector<16x256xf32>
    %cst_20 = arith.constant 1.000000e+00 : f32
    %24 = vector.broadcast %cst_20 : f32 to vector<16x256xf32>
    %25 = arith.addf %24, %23 : vector<16x256xf32>
    %26 = arith.divf %24, %25 : vector<16x256xf32>
    %27 = vector.extract_strided_slice %26 {offsets = [0, 0], sizes = [16, 128], strides = [1, 1]} : vector<16x256xf32> to vector<16x128xf32>
    %28 = vector.extract_strided_slice %26 {offsets = [0, 128], sizes = [16, 128], strides = [1, 1]} : vector<16x256xf32> to vector<16x128xf32>
    %29 = vector.extract_strided_slice %17 {offsets = [0, 256], sizes = [16, 128], strides = [1, 1]} : vector<16x384xf32> to vector<16x128xf32>
    %30 = arith.mulf %14, %28 : vector<16x128xf32>
    %31 = arith.truncf %30 : vector<16x128xf32> to vector<16x128xbf16>
    %cst_21 = arith.constant dense<0.000000e+00> : vector<16x128xf32>
    %32 = tpu.matmul %31, %4, %cst_21 {dimension_numbers = #tpu.dot_dimension_numbers<[1], [0], [0], [1], [0, 0, 1, 1], [], []>} : vector<16x128xbf16>, vector<128x128xbf16>, vector<16x128xf32> -> vector<16x128xf32>
    %33 = arith.addf %29, %32 : vector<16x128xf32>
    %34 = math.tanh %33 : vector<16x128xf32>
    %35 = arith.mulf %27, %14 : vector<16x128xf32>
    %cst_22 = arith.constant 1.000000e+00 : f32
    %36 = vector.broadcast %cst_22 : f32 to vector<16x128xf32>
    %37 = arith.subf %36, %27 : vector<16x128xf32>
    %38 = arith.mulf %37, %34 : vector<16x128xf32>
    %39 = arith.addf %35, %38 : vector<16x128xf32>
    %40 = arith.truncf %39 : vector<16x128xf32> to vector<16x128xbf16>
    %41 = arith.index_cast %c0_i32_16 : i32 to index
    %c0_23 = arith.constant 0 : index
    %c0_24 = arith.constant 0 : index
    %42 = vector.load %arg14[%41, %c0_23, %c0_24] : memref<8x16x128xbf16, #tpu.memory_space<vmem>>, vector<1x16x128xbf16>
    %43 = vector.shape_cast %42 : vector<1x16x128xbf16> to vector<16x128xbf16>
    %44 = vector.shape_cast %40 : vector<16x128xbf16> to vector<1x16x128xbf16>
    tpu.vector_store %arg14[%41, %c0_23, %c0_24], %44 {strides = array<i32>} : memref<8x16x128xbf16, #tpu.memory_space<vmem>>, vector<1x16x128xbf16>,
    %c1_i32 = arith.constant 1 : i32
    %45 = arith.index_cast %c1_i32 : i32 to index
    %c0_25 = arith.constant 0 : index
    %c0_26 = arith.constant 0 : index
    %46 = vector.load %arg13[%45, %c0_25, %c0_26] : memref<8x16x384xf32, #tpu.memory_space<vmem>>, vector<1x16x384xf32>
    %47 = vector.shape_cast %46 : vector<1x16x384xf32> to vector<16x384xf32>
    %48 = arith.truncf %39 : vector<16x128xf32> to vector<16x128xbf16>
    %cst_27 = arith.constant dense<0.000000e+00> : vector<16x256xf32>
    %49 = tpu.matmul %48, %3, %cst_27 {dimension_numbers = #tpu.dot_dimension_numbers<[1], [0], [0], [1], [0, 0, 1, 1], [], []>} : vector<16x128xbf16>, vector<128x256xbf16>, vector<16x256xf32> -> vector<16x256xf32>
    %50 = vector.extract_strided_slice %47 {offsets = [0, 0], sizes = [16, 256], strides = [1, 1]} : vector<16x384xf32> to vector<16x256xf32>
    %51 = arith.addf %50, %49 : vector<16x256xf32>
    %52 = arith.negf %51 : vector<16x256xf32>
    %53 = math.exp %52 : vector<16x256xf32>
    %cst_28 = arith.constant 1.000000e+00 : f32
    %54 = vector.broadcast %cst_28 : f32 to vector<16x256xf32>
    %55 = arith.addf %54, %53 : vector<16x256xf32>
    %56 = arith.divf %54, %55 : vector<16x256xf32>
    %57 = vector.extract_strided_slice %56 {offsets = [0, 0], sizes = [16, 128], strides = [1, 1]} : vector<16x256xf32> to vector<16x128xf32>
    %58 = vector.extract_strided_slice %56 {offsets = [0, 128], sizes = [16, 128], strides = [1, 1]} : vector<16x256xf32> to vector<16x128xf32>
    %59 = vector.extract_strided_slice %47 {offsets = [0, 256], sizes = [16, 128], strides = [1, 1]} : vector<16x384xf32> to vector<16x128xf32>
    %60 = arith.mulf %39, %58 : vector<16x128xf32>
    %61 = arith.truncf %60 : vector<16x128xf32> to vector<16x128xbf16>
    %cst_29 = arith.constant dense<0.000000e+00> : vector<16x128xf32>
    %62 = tpu.matmul %61, %4, %cst_29 {dimension_numbers = #tpu.dot_dimension_numbers<[1], [0], [0], [1], [0, 0, 1, 1], [], []>} : vector<16x128xbf16>, vector<128x128xbf16>, vector<16x128xf32> -> vector<16x128xf32>
    %63 = arith.addf %59, %62 : vector<16x128xf32>
    %64 = math.tanh %63 : vector<16x128xf32>
    %65 = arith.mulf %57, %39 : vector<16x128xf32>
    %cst_30 = arith.constant 1.000000e+00 : f32
    %66 = vector.broadcast %cst_30 : f32 to vector<16x128xf32>
    %67 = arith.subf %66, %57 : vector<16x128xf32>
    %68 = arith.mulf %67, %64 : vector<16x128xf32>
    %69 = arith.addf %65, %68 : vector<16x128xf32>
    %70 = arith.truncf %69 : vector<16x128xf32> to vector<16x128xbf16>
    %71 = arith.index_cast %c1_i32 : i32 to index
    %c0_31 = arith.constant 0 : index
    %c0_32 = arith.constant 0 : index
    %72 = vector.load %arg14[%71, %c0_31, %c0_32] : memref<8x16x128xbf16, #tpu.memory_space<vmem>>, vector<1x16x128xbf16>
    %73 = vector.shape_cast %72 : vector<1x16x128xbf16> to vector<16x128xbf16>
    %74 = vector.shape_cast %70 : vector<16x128xbf16> to vector<1x16x128xbf16>
    tpu.vector_store %arg14[%71, %c0_31, %c0_32], %74 {strides = array<i32>} : memref<8x16x128xbf16, #tpu.memory_space<vmem>>, vector<1x16x128xbf16>,
    %c2_i32 = arith.constant 2 : i32
    %75 = arith.index_cast %c2_i32 : i32 to index
    %c0_33 = arith.constant 0 : index
    %c0_34 = arith.constant 0 : index
    %76 = vector.load %arg13[%75, %c0_33, %c0_34] : memref<8x16x384xf32, #tpu.memory_space<vmem>>, vector<1x16x384xf32>
    %77 = vector.shape_cast %76 : vector<1x16x384xf32> to vector<16x384xf32>
    %78 = arith.truncf %69 : vector<16x128xf32> to vector<16x128xbf16>
    %cst_35 = arith.constant dense<0.000000e+00> : vector<16x256xf32>
    %79 = tpu.matmul %78, %3, %cst_35 {dimension_numbers = #tpu.dot_dimension_numbers<[1], [0], [0], [1], [0, 0, 1, 1], [], []>} : vector<16x128xbf16>, vector<128x256xbf16>, vector<16x256xf32> -> vector<16x256xf32>
    %80 = vector.extract_strided_slice %77 {offsets = [0, 0], sizes = [16, 256], strides = [1, 1]} : vector<16x384xf32> to vector<16x256xf32>
    %81 = arith.addf %80, %79 : vector<16x256xf32>
    %82 = arith.negf %81 : vector<16x256xf32>
    %83 = math.exp %82 : vector<16x256xf32>
    %cst_36 = arith.constant 1.000000e+00 : f32
    %84 = vector.broadcast %cst_36 : f32 to vector<16x256xf32>
    %85 = arith.addf %84, %83 : vector<16x256xf32>
    %86 = arith.divf %84, %85 : vector<16x256xf32>
    %87 = vector.extract_strided_slice %86 {offsets = [0, 0], sizes = [16, 128], strides = [1, 1]} : vector<16x256xf32> to vector<16x128xf32>
    %88 = vector.extract_strided_slice %86 {offsets = [0, 128], sizes = [16, 128], strides = [1, 1]} : vector<16x256xf32> to vector<16x128xf32>
    %89 = vector.extract_strided_slice %77 {offsets = [0, 256], sizes = [16, 128], strides = [1, 1]} : vector<16x384xf32> to vector<16x128xf32>
    %90 = arith.mulf %69, %88 : vector<16x128xf32>
    %91 = arith.truncf %90 : vector<16x128xf32> to vector<16x128xbf16>
    %cst_37 = arith.constant dense<0.000000e+00> : vector<16x128xf32>
    %92 = tpu.matmul %91, %4, %cst_37 {dimension_numbers = #tpu.dot_dimension_numbers<[1], [0], [0], [1], [0, 0, 1, 1], [], []>} : vector<16x128xbf16>, vector<128x128xbf16>, vector<16x128xf32> -> vector<16x128xf32>
    %93 = arith.addf %89, %92 : vector<16x128xf32>
    %94 = math.tanh %93 : vector<16x128xf32>
    %95 = arith.mulf %87, %69 : vector<16x128xf32>
    %cst_38 = arith.constant 1.000000e+00 : f32
    %96 = vector.broadcast %cst_38 : f32 to vector<16x128xf32>
    %97 = arith.subf %96, %87 : vector<16x128xf32>
    %98 = arith.mulf %97, %94 : vector<16x128xf32>
    %99 = arith.addf %95, %98 : vector<16x128xf32>
    %100 = arith.truncf %99 : vector<16x128xf32> to vector<16x128xbf16>
    %101 = arith.index_cast %c2_i32 : i32 to index
    %c0_39 = arith.constant 0 : index
    %c0_40 = arith.constant 0 : index
    %102 = vector.load %arg14[%101, %c0_39, %c0_40] : memref<8x16x128xbf16, #tpu.memory_space<vmem>>, vector<1x16x128xbf16>
    %103 = vector.shape_cast %102 : vector<1x16x128xbf16> to vector<16x128xbf16>
    %104 = vector.shape_cast %100 : vector<16x128xbf16> to vector<1x16x128xbf16>
    tpu.vector_store %arg14[%101, %c0_39, %c0_40], %104 {strides = array<i32>} : memref<8x16x128xbf16, #tpu.memory_space<vmem>>, vector<1x16x128xbf16>,
    %c3_i32 = arith.constant 3 : i32
    %105 = arith.index_cast %c3_i32 : i32 to index
    %c0_41 = arith.constant 0 : index
    %c0_42 = arith.constant 0 : index
    %106 = vector.load %arg13[%105, %c0_41, %c0_42] : memref<8x16x384xf32, #tpu.memory_space<vmem>>, vector<1x16x384xf32>
    %107 = vector.shape_cast %106 : vector<1x16x384xf32> to vector<16x384xf32>
    %108 = arith.truncf %99 : vector<16x128xf32> to vector<16x128xbf16>
    %cst_43 = arith.constant dense<0.000000e+00> : vector<16x256xf32>
    %109 = tpu.matmul %108, %3, %cst_43 {dimension_numbers = #tpu.dot_dimension_numbers<[1], [0], [0], [1], [0, 0, 1, 1], [], []>} : vector<16x128xbf16>, vector<128x256xbf16>, vector<16x256xf32> -> vector<16x256xf32>
    %110 = vector.extract_strided_slice %107 {offsets = [0, 0], sizes = [16, 256], strides = [1, 1]} : vector<16x384xf32> to vector<16x256xf32>
    %111 = arith.addf %110, %109 : vector<16x256xf32>
    %112 = arith.negf %111 : vector<16x256xf32>
    %113 = math.exp %112 : vector<16x256xf32>
    %cst_44 = arith.constant 1.000000e+00 : f32
    %114 = vector.broadcast %cst_44 : f32 to vector<16x256xf32>
    %115 = arith.addf %114, %113 : vector<16x256xf32>
    %116 = arith.divf %114, %115 : vector<16x256xf32>
    %117 = vector.extract_strided_slice %116 {offsets = [0, 0], sizes = [16, 128], strides = [1, 1]} : vector<16x256xf32> to vector<16x128xf32>
    %118 = vector.extract_strided_slice %116 {offsets = [0, 128], sizes = [16, 128], strides = [1, 1]} : vector<16x256xf32> to vector<16x128xf32>
    %119 = vector.extract_strided_slice %107 {offsets = [0, 256], sizes = [16, 128], strides = [1, 1]} : vector<16x384xf32> to vector<16x128xf32>
    %120 = arith.mulf %99, %118 : vector<16x128xf32>
    %121 = arith.truncf %120 : vector<16x128xf32> to vector<16x128xbf16>
    %cst_45 = arith.constant dense<0.000000e+00> : vector<16x128xf32>
    %122 = tpu.matmul %121, %4, %cst_45 {dimension_numbers = #tpu.dot_dimension_numbers<[1], [0], [0], [1], [0, 0, 1, 1], [], []>} : vector<16x128xbf16>, vector<128x128xbf16>, vector<16x128xf32> -> vector<16x128xf32>
    %123 = arith.addf %119, %122 : vector<16x128xf32>
    %124 = math.tanh %123 : vector<16x128xf32>
    %125 = arith.mulf %117, %99 : vector<16x128xf32>
    %cst_46 = arith.constant 1.000000e+00 : f32
    %126 = vector.broadcast %cst_46 : f32 to vector<16x128xf32>
    %127 = arith.subf %126, %117 : vector<16x128xf32>
    %128 = arith.mulf %127, %124 : vector<16x128xf32>
    %129 = arith.addf %125, %128 : vector<16x128xf32>
    %130 = arith.truncf %129 : vector<16x128xf32> to vector<16x128xbf16>
    %131 = arith.index_cast %c3_i32 : i32 to index
    %c0_47 = arith.constant 0 : index
    %c0_48 = arith.constant 0 : index
    %132 = vector.load %arg14[%131, %c0_47, %c0_48] : memref<8x16x128xbf16, #tpu.memory_space<vmem>>, vector<1x16x128xbf16>
    %133 = vector.shape_cast %132 : vector<1x16x128xbf16> to vector<16x128xbf16>
    %134 = vector.shape_cast %130 : vector<16x128xbf16> to vector<1x16x128xbf16>
    tpu.vector_store %arg14[%131, %c0_47, %c0_48], %134 {strides = array<i32>} : memref<8x16x128xbf16, #tpu.memory_space<vmem>>, vector<1x16x128xbf16>,
    %c4_i32 = arith.constant 4 : i32
    %135 = arith.index_cast %c4_i32 : i32 to index
    %c0_49 = arith.constant 0 : index
    %c0_50 = arith.constant 0 : index
    %136 = vector.load %arg13[%135, %c0_49, %c0_50] : memref<8x16x384xf32, #tpu.memory_space<vmem>>, vector<1x16x384xf32>
    %137 = vector.shape_cast %136 : vector<1x16x384xf32> to vector<16x384xf32>
    %138 = arith.truncf %129 : vector<16x128xf32> to vector<16x128xbf16>
    %cst_51 = arith.constant dense<0.000000e+00> : vector<16x256xf32>
    %139 = tpu.matmul %138, %3, %cst_51 {dimension_numbers = #tpu.dot_dimension_numbers<[1], [0], [0], [1], [0, 0, 1, 1], [], []>} : vector<16x128xbf16>, vector<128x256xbf16>, vector<16x256xf32> -> vector<16x256xf32>
    %140 = vector.extract_strided_slice %137 {offsets = [0, 0], sizes = [16, 256], strides = [1, 1]} : vector<16x384xf32> to vector<16x256xf32>
    %141 = arith.addf %140, %139 : vector<16x256xf32>
    %142 = arith.negf %141 : vector<16x256xf32>
    %143 = math.exp %142 : vector<16x256xf32>
    %cst_52 = arith.constant 1.000000e+00 : f32
    %144 = vector.broadcast %cst_52 : f32 to vector<16x256xf32>
    %145 = arith.addf %144, %143 : vector<16x256xf32>
    %146 = arith.divf %144, %145 : vector<16x256xf32>
    %147 = vector.extract_strided_slice %146 {offsets = [0, 0], sizes = [16, 128], strides = [1, 1]} : vector<16x256xf32> to vector<16x128xf32>
    %148 = vector.extract_strided_slice %146 {offsets = [0, 128], sizes = [16, 128], strides = [1, 1]} : vector<16x256xf32> to vector<16x128xf32>
    %149 = vector.extract_strided_slice %137 {offsets = [0, 256], sizes = [16, 128], strides = [1, 1]} : vector<16x384xf32> to vector<16x128xf32>
    %150 = arith.mulf %129, %148 : vector<16x128xf32>
    %151 = arith.truncf %150 : vector<16x128xf32> to vector<16x128xbf16>
    %cst_53 = arith.constant dense<0.000000e+00> : vector<16x128xf32>
    %152 = tpu.matmul %151, %4, %cst_53 {dimension_numbers = #tpu.dot_dimension_numbers<[1], [0], [0], [1], [0, 0, 1, 1], [], []>} : vector<16x128xbf16>, vector<128x128xbf16>, vector<16x128xf32> -> vector<16x128xf32>
    %153 = arith.addf %149, %152 : vector<16x128xf32>
    %154 = math.tanh %153 : vector<16x128xf32>
    %155 = arith.mulf %147, %129 : vector<16x128xf32>
    %cst_54 = arith.constant 1.000000e+00 : f32
    %156 = vector.broadcast %cst_54 : f32 to vector<16x128xf32>
    %157 = arith.subf %156, %147 : vector<16x128xf32>
    %158 = arith.mulf %157, %154 : vector<16x128xf32>
    %159 = arith.addf %155, %158 : vector<16x128xf32>
    %160 = arith.truncf %159 : vector<16x128xf32> to vector<16x128xbf16>
    %161 = arith.index_cast %c4_i32 : i32 to index
    %c0_55 = arith.constant 0 : index
    %c0_56 = arith.constant 0 : index
    %162 = vector.load %arg14[%161, %c0_55, %c0_56] : memref<8x16x128xbf16, #tpu.memory_space<vmem>>, vector<1x16x128xbf16>
    %163 = vector.shape_cast %162 : vector<1x16x128xbf16> to vector<16x128xbf16>
    %164 = vector.shape_cast %160 : vector<16x128xbf16> to vector<1x16x128xbf16>
    tpu.vector_store %arg14[%161, %c0_55, %c0_56], %164 {strides = array<i32>} : memref<8x16x128xbf16, #tpu.memory_space<vmem>>, vector<1x16x128xbf16>,
    %c5_i32 = arith.constant 5 : i32
    %165 = arith.index_cast %c5_i32 : i32 to index
    %c0_57 = arith.constant 0 : index
    %c0_58 = arith.constant 0 : index
    %166 = vector.load %arg13[%165, %c0_57, %c0_58] : memref<8x16x384xf32, #tpu.memory_space<vmem>>, vector<1x16x384xf32>
    %167 = vector.shape_cast %166 : vector<1x16x384xf32> to vector<16x384xf32>
    %168 = arith.truncf %159 : vector<16x128xf32> to vector<16x128xbf16>
    %cst_59 = arith.constant dense<0.000000e+00> : vector<16x256xf32>
    %169 = tpu.matmul %168, %3, %cst_59 {dimension_numbers = #tpu.dot_dimension_numbers<[1], [0], [0], [1], [0, 0, 1, 1], [], []>} : vector<16x128xbf16>, vector<128x256xbf16>, vector<16x256xf32> -> vector<16x256xf32>
    %170 = vector.extract_strided_slice %167 {offsets = [0, 0], sizes = [16, 256], strides = [1, 1]} : vector<16x384xf32> to vector<16x256xf32>
    %171 = arith.addf %170, %169 : vector<16x256xf32>
    %172 = arith.negf %171 : vector<16x256xf32>
    %173 = math.exp %172 : vector<16x256xf32>
    %cst_60 = arith.constant 1.000000e+00 : f32
    %174 = vector.broadcast %cst_60 : f32 to vector<16x256xf32>
    %175 = arith.addf %174, %173 : vector<16x256xf32>
    %176 = arith.divf %174, %175 : vector<16x256xf32>
    %177 = vector.extract_strided_slice %176 {offsets = [0, 0], sizes = [16, 128], strides = [1, 1]} : vector<16x256xf32> to vector<16x128xf32>
    %178 = vector.extract_strided_slice %176 {offsets = [0, 128], sizes = [16, 128], strides = [1, 1]} : vector<16x256xf32> to vector<16x128xf32>
    %179 = vector.extract_strided_slice %167 {offsets = [0, 256], sizes = [16, 128], strides = [1, 1]} : vector<16x384xf32> to vector<16x128xf32>
    %180 = arith.mulf %159, %178 : vector<16x128xf32>
    %181 = arith.truncf %180 : vector<16x128xf32> to vector<16x128xbf16>
    %cst_61 = arith.constant dense<0.000000e+00> : vector<16x128xf32>
    %182 = tpu.matmul %181, %4, %cst_61 {dimension_numbers = #tpu.dot_dimension_numbers<[1], [0], [0], [1], [0, 0, 1, 1], [], []>} : vector<16x128xbf16>, vector<128x128xbf16>, vector<16x128xf32> -> vector<16x128xf32>
    %183 = arith.addf %179, %182 : vector<16x128xf32>
    %184 = math.tanh %183 : vector<16x128xf32>
    %185 = arith.mulf %177, %159 : vector<16x128xf32>
    %cst_62 = arith.constant 1.000000e+00 : f32
    %186 = vector.broadcast %cst_62 : f32 to vector<16x128xf32>
    %187 = arith.subf %186, %177 : vector<16x128xf32>
    %188 = arith.mulf %187, %184 : vector<16x128xf32>
    %189 = arith.addf %185, %188 : vector<16x128xf32>
    %190 = arith.truncf %189 : vector<16x128xf32> to vector<16x128xbf16>
    %191 = arith.index_cast %c5_i32 : i32 to index
    %c0_63 = arith.constant 0 : index
    %c0_64 = arith.constant 0 : index
    %192 = vector.load %arg14[%191, %c0_63, %c0_64] : memref<8x16x128xbf16, #tpu.memory_space<vmem>>, vector<1x16x128xbf16>
    %193 = vector.shape_cast %192 : vector<1x16x128xbf16> to vector<16x128xbf16>
    %194 = vector.shape_cast %190 : vector<16x128xbf16> to vector<1x16x128xbf16>
    tpu.vector_store %arg14[%191, %c0_63, %c0_64], %194 {strides = array<i32>} : memref<8x16x128xbf16, #tpu.memory_space<vmem>>, vector<1x16x128xbf16>,
    %c6_i32 = arith.constant 6 : i32
    %195 = arith.index_cast %c6_i32 : i32 to index
    %c0_65 = arith.constant 0 : index
    %c0_66 = arith.constant 0 : index
    %196 = vector.load %arg13[%195, %c0_65, %c0_66] : memref<8x16x384xf32, #tpu.memory_space<vmem>>, vector<1x16x384xf32>
    %197 = vector.shape_cast %196 : vector<1x16x384xf32> to vector<16x384xf32>
    %198 = arith.truncf %189 : vector<16x128xf32> to vector<16x128xbf16>
    %cst_67 = arith.constant dense<0.000000e+00> : vector<16x256xf32>
    %199 = tpu.matmul %198, %3, %cst_67 {dimension_numbers = #tpu.dot_dimension_numbers<[1], [0], [0], [1], [0, 0, 1, 1], [], []>} : vector<16x128xbf16>, vector<128x256xbf16>, vector<16x256xf32> -> vector<16x256xf32>
    %200 = vector.extract_strided_slice %197 {offsets = [0, 0], sizes = [16, 256], strides = [1, 1]} : vector<16x384xf32> to vector<16x256xf32>
    %201 = arith.addf %200, %199 : vector<16x256xf32>
    %202 = arith.negf %201 : vector<16x256xf32>
    %203 = math.exp %202 : vector<16x256xf32>
    %cst_68 = arith.constant 1.000000e+00 : f32
    %204 = vector.broadcast %cst_68 : f32 to vector<16x256xf32>
    %205 = arith.addf %204, %203 : vector<16x256xf32>
    %206 = arith.divf %204, %205 : vector<16x256xf32>
    %207 = vector.extract_strided_slice %206 {offsets = [0, 0], sizes = [16, 128], strides = [1, 1]} : vector<16x256xf32> to vector<16x128xf32>
    %208 = vector.extract_strided_slice %206 {offsets = [0, 128], sizes = [16, 128], strides = [1, 1]} : vector<16x256xf32> to vector<16x128xf32>
    %209 = vector.extract_strided_slice %197 {offsets = [0, 256], sizes = [16, 128], strides = [1, 1]} : vector<16x384xf32> to vector<16x128xf32>
    %210 = arith.mulf %189, %208 : vector<16x128xf32>
    %211 = arith.truncf %210 : vector<16x128xf32> to vector<16x128xbf16>
    %cst_69 = arith.constant dense<0.000000e+00> : vector<16x128xf32>
    %212 = tpu.matmul %211, %4, %cst_69 {dimension_numbers = #tpu.dot_dimension_numbers<[1], [0], [0], [1], [0, 0, 1, 1], [], []>} : vector<16x128xbf16>, vector<128x128xbf16>, vector<16x128xf32> -> vector<16x128xf32>
    %213 = arith.addf %209, %212 : vector<16x128xf32>
    %214 = math.tanh %213 : vector<16x128xf32>
    %215 = arith.mulf %207, %189 : vector<16x128xf32>
    %cst_70 = arith.constant 1.000000e+00 : f32
    %216 = vector.broadcast %cst_70 : f32 to vector<16x128xf32>
    %217 = arith.subf %216, %207 : vector<16x128xf32>
    %218 = arith.mulf %217, %214 : vector<16x128xf32>
    %219 = arith.addf %215, %218 : vector<16x128xf32>
    %220 = arith.truncf %219 : vector<16x128xf32> to vector<16x128xbf16>
    %221 = arith.index_cast %c6_i32 : i32 to index
    %c0_71 = arith.constant 0 : index
    %c0_72 = arith.constant 0 : index
    %222 = vector.load %arg14[%221, %c0_71, %c0_72] : memref<8x16x128xbf16, #tpu.memory_space<vmem>>, vector<1x16x128xbf16>
    %223 = vector.shape_cast %222 : vector<1x16x128xbf16> to vector<16x128xbf16>
    %224 = vector.shape_cast %220 : vector<16x128xbf16> to vector<1x16x128xbf16>
    tpu.vector_store %arg14[%221, %c0_71, %c0_72], %224 {strides = array<i32>} : memref<8x16x128xbf16, #tpu.memory_space<vmem>>, vector<1x16x128xbf16>,
    %c7_i32 = arith.constant 7 : i32
    %225 = arith.index_cast %c7_i32 : i32 to index
    %c0_73 = arith.constant 0 : index
    %c0_74 = arith.constant 0 : index
    %226 = vector.load %arg13[%225, %c0_73, %c0_74] : memref<8x16x384xf32, #tpu.memory_space<vmem>>, vector<1x16x384xf32>
    %227 = vector.shape_cast %226 : vector<1x16x384xf32> to vector<16x384xf32>
    %228 = arith.truncf %219 : vector<16x128xf32> to vector<16x128xbf16>
    %cst_75 = arith.constant dense<0.000000e+00> : vector<16x256xf32>
    %229 = tpu.matmul %228, %3, %cst_75 {dimension_numbers = #tpu.dot_dimension_numbers<[1], [0], [0], [1], [0, 0, 1, 1], [], []>} : vector<16x128xbf16>, vector<128x256xbf16>, vector<16x256xf32> -> vector<16x256xf32>
    %230 = vector.extract_strided_slice %227 {offsets = [0, 0], sizes = [16, 256], strides = [1, 1]} : vector<16x384xf32> to vector<16x256xf32>
    %231 = arith.addf %230, %229 : vector<16x256xf32>
    %232 = arith.negf %231 : vector<16x256xf32>
    %233 = math.exp %232 : vector<16x256xf32>
    %cst_76 = arith.constant 1.000000e+00 : f32
    %234 = vector.broadcast %cst_76 : f32 to vector<16x256xf32>
    %235 = arith.addf %234, %233 : vector<16x256xf32>
    %236 = arith.divf %234, %235 : vector<16x256xf32>
    %237 = vector.extract_strided_slice %236 {offsets = [0, 0], sizes = [16, 128], strides = [1, 1]} : vector<16x256xf32> to vector<16x128xf32>
    %238 = vector.extract_strided_slice %236 {offsets = [0, 128], sizes = [16, 128], strides = [1, 1]} : vector<16x256xf32> to vector<16x128xf32>
    %239 = vector.extract_strided_slice %227 {offsets = [0, 256], sizes = [16, 128], strides = [1, 1]} : vector<16x384xf32> to vector<16x128xf32>
    %240 = arith.mulf %219, %238 : vector<16x128xf32>
    %241 = arith.truncf %240 : vector<16x128xf32> to vector<16x128xbf16>
    %cst_77 = arith.constant dense<0.000000e+00> : vector<16x128xf32>
    %242 = tpu.matmul %241, %4, %cst_77 {dimension_numbers = #tpu.dot_dimension_numbers<[1], [0], [0], [1], [0, 0, 1, 1], [], []>} : vector<16x128xbf16>, vector<128x128xbf16>, vector<16x128xf32> -> vector<16x128xf32>
    %243 = arith.addf %239, %242 : vector<16x128xf32>
    %244 = math.tanh %243 : vector<16x128xf32>
    %245 = arith.mulf %237, %219 : vector<16x128xf32>
    %cst_78 = arith.constant 1.000000e+00 : f32
    %246 = vector.broadcast %cst_78 : f32 to vector<16x128xf32>
    %247 = arith.subf %246, %237 : vector<16x128xf32>
    %248 = arith.mulf %247, %244 : vector<16x128xf32>
    %249 = arith.addf %245, %248 : vector<16x128xf32>
    %250 = arith.truncf %249 : vector<16x128xf32> to vector<16x128xbf16>
    %251 = arith.index_cast %c7_i32 : i32 to index
    %c0_79 = arith.constant 0 : index
    %c0_80 = arith.constant 0 : index
    %252 = vector.load %arg14[%251, %c0_79, %c0_80] : memref<8x16x128xbf16, #tpu.memory_space<vmem>>, vector<1x16x128xbf16>
    %253 = vector.shape_cast %252 : vector<1x16x128xbf16> to vector<16x128xbf16>
    %254 = vector.shape_cast %250 : vector<16x128xbf16> to vector<1x16x128xbf16>
    tpu.vector_store %arg14[%251, %c0_79, %c0_80], %254 {strides = array<i32>} : memref<8x16x128xbf16, #tpu.memory_space<vmem>>, vector<1x16x128xbf16>,
    %c8_i32 = arith.constant 8 : i32
    %c0_81 = arith.constant 0 : index
    %c0_82 = arith.constant 0 : index
    %255 = vector.load %arg12[%c0_81, %c0_82] : memref<16x128xf32, #tpu.memory_space<vmem>>, vector<16x128xf32>
    tpu.vector_store %arg12[%c0_81, %c0_82], %249 {strides = array<i32>} : memref<16x128xf32, #tpu.memory_space<vmem>>, vector<16x128xf32>,
    %c0_83 = arith.constant 0 : index
    %c0_84 = arith.constant 0 : index
    %c0_85 = arith.constant 0 : index
    %256 = vector.load %arg14[%c0_83, %c0_84, %c0_85] : memref<8x16x128xbf16, #tpu.memory_space<vmem>>, vector<8x16x128xbf16>
    %257 = vector.shape_cast %256 : vector<8x16x128xbf16> to vector<128x128xbf16>
    %c0_86 = arith.constant 0 : index
    %c0_87 = arith.constant 0 : index
    %258 = vector.load %arg7[%c0_86, %c0_87] : memref<128x512xbf16, #tpu.memory_space<vmem>>, vector<128x512xbf16>
    %cst_88 = arith.constant dense<0.000000e+00> : vector<128x512xf32>
    %259 = tpu.matmul %257, %258, %cst_88 {dimension_numbers = #tpu.dot_dimension_numbers<[1], [0], [0], [1], [0, 0, 1, 1], [], []>} : vector<128x128xbf16>, vector<128x512xbf16>, vector<128x512xf32> -> vector<128x512xf32>
    %c0_89 = arith.constant 0 : index
    %c0_90 = arith.constant 0 : index
    %260 = vector.load %arg8[%c0_89, %c0_90] : memref<1x512xf32, #tpu.memory_space<vmem>>, vector<1x512xf32>
    %261 = vector.broadcast %260 : vector<1x512xf32> to vector<128x512xf32>
    %262 = arith.addf %259, %261 : vector<128x512xf32>
    %263 = vector.extract_strided_slice %262 {offsets = [0, 0], sizes = [128, 256], strides = [1, 1]} : vector<128x512xf32> to vector<128x256xf32>
    %264 = arith.negf %263 : vector<128x256xf32>
    %265 = math.exp %264 : vector<128x256xf32>
    %cst_91 = arith.constant 1.000000e+00 : f32
    %266 = vector.broadcast %cst_91 : f32 to vector<128x256xf32>
    %267 = arith.addf %266, %265 : vector<128x256xf32>
    %268 = arith.divf %266, %267 : vector<128x256xf32>
    %cst_92 = arith.constant 1.000000e+00 : f32
    %269 = vector.broadcast %cst_92 : f32 to vector<128x256xf32>
    %270 = arith.subf %269, %268 : vector<128x256xf32>
    %271 = vector.extract_strided_slice %262 {offsets = [0, 256], sizes = [128, 256], strides = [1, 1]} : vector<128x512xf32> to vector<128x256xf32>
    %272 = math.tanh %271 : vector<128x256xf32>
    %273 = arith.mulf %270, %272 : vector<128x256xf32>
    %274 = arith.truncf %273 : vector<128x256xf32> to vector<128x256xbf16>
    %c0_93 = arith.constant 0 : index
    %c0_94 = arith.constant 0 : index
    %275 = vector.load %arg9[%c0_93, %c0_94] : memref<256x128xbf16, #tpu.memory_space<vmem>>, vector<256x128xbf16>
    %cst_95 = arith.constant dense<0.000000e+00> : vector<128x128xf32>
    %276 = tpu.matmul %274, %275, %cst_95 {dimension_numbers = #tpu.dot_dimension_numbers<[1], [0], [0], [1], [0, 0, 1, 1], [], []>} : vector<128x256xbf16>, vector<256x128xbf16>, vector<128x128xf32> -> vector<128x128xf32>
    %c0_96 = arith.constant 0 : index
    %c0_97 = arith.constant 0 : index
    %277 = vector.load %arg10[%c0_96, %c0_97] : memref<1x128xf32, #tpu.memory_space<vmem>>, vector<1x128xf32>
    %278 = vector.broadcast %277 : vector<1x128xf32> to vector<128x128xf32>
    %279 = arith.addf %276, %278 : vector<128x128xf32>
    %280 = vector.shape_cast %279 : vector<128x128xf32> to vector<8x16x128xf32>
    %c0_98 = arith.constant 0 : index
    %c0_99 = arith.constant 0 : index
    %c0_100 = arith.constant 0 : index
    %281 = vector.load %arg11[%c0_98, %c0_99, %c0_100] : memref<8x16x128xf32, #tpu.memory_space<vmem>>, vector<8x16x128xf32>
    tpu.vector_store %arg11[%c0_98, %c0_99, %c0_100], %280 {strides = array<i32>} : memref<8x16x128xf32, #tpu.memory_space<vmem>>, vector<8x16x128xf32>,
    return
  }
  func.func @transform_0(%arg0: i32, %arg1: i32) -> (i32, i32, i32) {
    %c0_i32 = arith.constant 0 : i32
    %c0_i32_0 = arith.constant 0 : i32
    return %arg1, %arg0, %c0_i32 : i32, i32, i32
  }
  func.func @transform_1(%arg0: i32, %arg1: i32) -> (i32, i32) {
    %c0_i32 = arith.constant 0 : i32
    %c0_i32_0 = arith.constant 0 : i32
    %c0_i32_1 = arith.constant 0 : i32
    return %c0_i32, %c0_i32_0 : i32, i32
  }
  func.func @transform_2(%arg0: i32, %arg1: i32) -> (i32, i32) {
    %c0_i32 = arith.constant 0 : i32
    %c0_i32_0 = arith.constant 0 : i32
    %c0_i32_1 = arith.constant 0 : i32
    return %c0_i32, %c0_i32_0 : i32, i32
  }
  func.func @transform_3(%arg0: i32, %arg1: i32) -> (i32, i32) {
    %c0_i32 = arith.constant 0 : i32
    %c0_i32_0 = arith.constant 0 : i32
    %c0_i32_1 = arith.constant 0 : i32
    return %c0_i32, %c0_i32_0 : i32, i32
  }
  func.func @transform_4(%arg0: i32, %arg1: i32) -> (i32, i32) {
    %c0_i32 = arith.constant 0 : i32
    %c0_i32_0 = arith.constant 0 : i32
    %c0_i32_1 = arith.constant 0 : i32
    return %c0_i32, %c0_i32_0 : i32, i32
  }
  func.func @transform_5(%arg0: i32, %arg1: i32) -> (i32, i32) {
    %c0_i32 = arith.constant 0 : i32
    %c0_i32_0 = arith.constant 0 : i32
    %c0_i32_1 = arith.constant 0 : i32
    return %c0_i32, %c0_i32_0 : i32, i32
  }
  func.func @transform_6(%arg0: i32, %arg1: i32) -> (i32, i32) {
    %c0_i32 = arith.constant 0 : i32
    %c0_i32_0 = arith.constant 0 : i32
    %c0_i32_1 = arith.constant 0 : i32
    return %c0_i32, %c0_i32_0 : i32, i32
  }
  func.func @transform_7(%arg0: i32, %arg1: i32) -> (i32, i32) {
    %c0_i32 = arith.constant 0 : i32
    %c0_i32_0 = arith.constant 0 : i32
    %c0_i32_1 = arith.constant 0 : i32
    return %c0_i32, %c0_i32_0 : i32, i32
  }
  func.func @transform_8(%arg0: i32, %arg1: i32) -> (i32, i32) {
    %c0_i32 = arith.constant 0 : i32
    %c0_i32_0 = arith.constant 0 : i32
    %c0_i32_1 = arith.constant 0 : i32
    return %c0_i32, %c0_i32_0 : i32, i32
  }
  func.func @transform_9(%arg0: i32, %arg1: i32) -> (i32, i32, i32) {
    %c0_i32 = arith.constant 0 : i32
    %c0_i32_0 = arith.constant 0 : i32
    return %arg1, %arg0, %c0_i32 : i32, i32, i32
  }
}

</mosaic_0001>

<bundles_post_ra>
// kernel: tpu_custom_call.1
= control target key start
LH: loop header
LB: loop body
LE: loop exit
PB: predicated region body
PF: predicated region fallthrough
CT: control target
= control target key end

     0   :  { %14 = vsyncpa [#allocation6], 0  ;;  %s6265_s0 = inlined_call_operand.hbm [shape: bf16[8,16,16], index: 0, kind: input, shape index: {}]   ;;  %s6266_s1 = inlined_call_operand.hbm [shape: bf16[16,384], index: 1, kind: input, shape index: {}]   ;;  %s6267_s2 = inlined_call_operand.hbm [shape: f32[1,384], index: 2, kind: input, shape index: {}]   ;;  %s6268_s3 = inlined_call_operand.hbm [shape: bf16[128,256], index: 3, kind: input, shape index: {}]   ;;  %s6269_s4 = inlined_call_operand.hbm [shape: bf16[128,128], index: 4, kind: input, shape index: {}]   ;;  %s6270_s5 = inlined_call_operand.hbm [shape: bf16[128,512], index: 5, kind: input, shape index: {}]   ;;  %s6271_s6 = inlined_call_operand.vmem [shape: f32[1,512], index: 6, kind: input, shape index: {}]   ;;  %s6272_s7 = inlined_call_operand.hbm [shape: bf16[256,128], index: 7, kind: input, shape index: {}]   ;;  %s6273_s8 = inlined_call_operand.vmem [shape: f32[1,128], index: 8, kind: input, shape index: {}]   ;;  %s6274_s9 = inlined_call_operand.hbm [shape: f32[8,16,128], index: 9, kind: output, shape index: {}]  }
   0x1   :  { %15 = vsyncpa [#allocation9], 0 }
   0x2   :  { %16 = vsyncpa [#allocation12], 0 }
   0x3   :  { %17 = vsyncpa [#allocation15], 0  ;;  %s36_s11 = sshll.u32 %s6266_s1, 4  ;;  %s37_s11 = int_to_ptr.hbm [resolvable:$true] %s36_s11 }
   0x4   :  { %18 = vsyncpa [#allocation7], 0  ;;  %s4463_s12 = smov [#allocation8]   ;;  %s60_s16 = sshll.u32 %s6268_s3, 4  ;;  %s61_s16 = int_to_ptr.hbm [resolvable:$true] %s60_s16 }
   0x5   :  { %s38_s13 = sshll.u32 %s4463_s12, 4  ;;  %s4464_s17 = smov 192   ;;  %s39_s13 = int_to_ptr.vmem [resolvable:$true] %s38_s13 }
   0x6   :  { %s4465_s18 = smov 12   ;;  %s4466_s19 = smov [#allocation11]  }
   0x7   :  { %44 = dma.hbm_to_vmem [thread:$0]  %s37_s11, 384, %s39_s13, [#allocation9], %s4464_s17, %s4464_s17, %s4465_s18  }
   0x8   :  { %s62_s20 = sshll.u32 %s4466_s19, 4  ;;  %s4467_s21 = smov 128   ;;  %s63_s20 = int_to_ptr.vmem [resolvable:$true] %s62_s20 }
   0x9   :  { %s4468_s22 = smov 8   ;;  %s86_s24 = sshll.u32 %s6270_s5, 4  ;;  %s87_s24 = int_to_ptr.hbm [resolvable:$true] %s86_s24 }
   0xa   :  { %68 = dma.hbm_to_vmem [thread:$0]  %s61_s16, 2048, %s63_s20, [#allocation12], %s4467_s21, %s4467_s21, %s4468_s22  }
   0xb   :  { %s4469_s25 = smov [#allocation14]   ;;  %s23_s28 = sshll.u32 %s6265_s0, 4  ;;  %s24_s28 = int_to_ptr.hbm [resolvable:$true] %s23_s28 }
   0xc   :  { %s88_s3 = sshll.u32 %s4469_s25, 4  ;;  %s4470_s29 = smov 256   ;;  %s89_s3 = int_to_ptr.vmem [resolvable:$true] %s88_s3 }
   0xd   :  { %s4471_s30 = smov 16   ;;  %s4472_s10 = smov [#allocation5]  }
   0xe   :  { %94 = dma.hbm_to_vmem [thread:$0]  %s87_s24, 4096, %s89_s3, [#allocation15], %s4470_s29, %s4470_s29, %s4471_s30  }
   0xf   :  { %s25_s11 = sshll.u32 %s4472_s10, 4  ;;  %s4473_s12 = smov 64   ;;  %s26_s11 = int_to_ptr.vmem [resolvable:$true] %s25_s11 }
  0x10   :  { %s4474_s13 = smov 4   ;;  %s50_s15 = sshll.u32 %s6267_s2, 4  ;;  %s51_s15 = int_to_ptr.hbm [resolvable:$true] %s50_s15 }
  0x11   :  { %31 = dma.hbm_to_vmem [thread:$0]  %s24_s28, 1024, %s26_s11, [#allocation6], %s4473_s12, %s4473_s12, %s4474_s13  }
  0x12   :  { %s4475_s16 = smov [#allocation10]   ;;  %s73_s19 = sshll.u32 %s6269_s4, 4  ;;  %s74_s19 = int_to_ptr.hbm [resolvable:$true] %s73_s19 }
  0x13   :  { %s52_s17 = sshll.u32 %s4475_s16, 4  ;;  %s4476_s20 = smov [#allocation13]   ;;  %s53_s17 = int_to_ptr.vmem [resolvable:$true] %s52_s17 }
  0x14   :  { %55 = dma.hbm_to_vmem [thread:$0]  %s51_s15, 48, %s53_s17, [#allocation9]  }
  0x15   :  { %s75_s1 = sshll.u32 %s4476_s20, 4  ;;  %s101_s25 = sshll.u32 %s6272_s7, 4  ;;  %s76_s1 = int_to_ptr.vmem [resolvable:$true] %s75_s1  ;;  %s102_s25 = int_to_ptr.hbm [resolvable:$true] %s101_s25 }
  0x16   :  { %81 = dma.hbm_to_vmem [thread:$0]  %s74_s19, 1024, %s76_s1, [#allocation12], %s4473_s12, %s4473_s12, %s4474_s13  }
  0x17   :  { %s4477_s2 = smov [#allocation16]  }
  0x18   :  { %s103_s3 = sshll.u32 %s4477_s2, 4  ;;  %s104_s3 = int_to_ptr.vmem [resolvable:$true] %s103_s3 }
  0x19   :  { %109 = dma.hbm_to_vmem [thread:$0]  %s102_s25, 2048, %s104_s3, [#allocation15], %s4473_s12, %s4473_s12, %s4474_s13  }
  0x1a   :  { %4453 = dma.done.wait [#allocation6], 1024  }
  0x1b   :  { %4454 = vsyncadd [#allocation6], 4294966272 }
  0x1c   :  { %4455 = dma.done.wait [#allocation9], 432  }
  0x1d   :  { %4456 = vsyncadd [#allocation9], 4294966864 }
  0x1e   :  { %4457 = dma.done.wait [#allocation12], 3072  }
  0x1f   :  { %4458 = vsyncadd [#allocation12], 4294964224 }
  0x20   :  { %4459 = dma.done.wait [#allocation15], 6144  }
  0x21   :  { %4460 = vsyncadd [#allocation15], 4294961152  ;;  %v3782_v0 = vld [vmem:[#allocation8 + $0x4] sm:$0xf]  ;;  %v3334_v1 = vld [vmem:[#allocation8 + $0xc] sm:$0xf0] }
  0x22   :  { %v3337_v2 = vor.u32 %v3782_v0, %v3334_v1  ;;  %v3424_v3 = vld [vmem:[#allocation11 + $0x70] sm:$0xf]  ;;  %v3765_v4 = vld [vmem:[#allocation11 + $0x74] sm:$0xf0]  ;;  %v3416_v5 = vld [vmem:[#allocation11 + $0x60] sm:$0xf] }
  0x23   :  { %v4554_v6 = vld [vmem:[#allocation5 + $0x20] sm:$0xff]  ;;  %v4556_v7 = vor.u32 %v3765_v4, %v3424_v3  ;;  %vm263_vm0 = vcmask 130048   ;;  %v3408_v10 = vld [vmem:[#allocation11 + $0x50] sm:$0xf]  ;;  %v3761_v11 = vld [vmem:[#allocation11 + $0x54] sm:$0xf0] }
  0x24   :  { %v3763_v8 = vld [vmem:[#allocation11 + $0x64] sm:$0xf0]  ;;  %3882 = vmatpush.bf16.msra.mxu3 %v3337_v2  ;;  %344 = vmatpush.bf16.msra.mxu1 %v3337_v2  ;;  %v4564_v12 = vor.u32 %v3761_v11, %v3408_v10  ;;  %v3400_v13 = vld [vmem:[#allocation11 + $0x40] sm:$0xf]  ;;  %v3392_v16 = vld [vmem:[#allocation11 + $0x30] sm:$0xf] }
  0x25   :  { %v4559_v9 = vor.u32 %v3763_v8, %v3416_v5  ;;  %v3759_v14 = vld [vmem:[#allocation11 + $0x44] sm:$0xf0]  ;;  %v3757_v17 = vld [vmem:[#allocation11 + $0x34] sm:$0xf0]  ;;  %v3384_v19 = vld [vmem:[#allocation11 + $0x20] sm:$0xf] }
  0x26   :  { %v4567_v15 = vor.u32 %v3759_v14, %v3400_v13  ;;  %v4570_v18 = vor.u32 %v3757_v17, %v3392_v16  ;;  %v3755_v20 = vld [vmem:[#allocation11 + $0x24] sm:$0xf0]  ;;  %v4572_v21 = vld [vmem:[#allocation5 + $0x28] sm:$0xff]  ;;  %v3753_v24 = vld [vmem:[#allocation11 + $0x14] sm:$0xf0]  ;;  %v4478_v59 = vmov 0.0|0.0  }
  0x27   :  { %3354 = vmatmul.msk.bf16.vlgmr.msra.gmra.mxu3 %vm263_vm0, %v4554_v6  ;;  %v4575_v22 = vor.u32 %v3755_v20, %v3384_v19  ;;  %v3376_v23 = vld [vmem:[#allocation11 + $0x10] sm:$0xf]  ;;  %v3368_v26 = vld [vmem:[#allocation11] sm:$0xf]  ;;  %v3751_v27 = vld [vmem:[#allocation11 + $0x4] sm:$0xf0] }
  0x28   :  { %572 = vmatpush.bf16.msrb.mxu3 %v4556_v7  ;;  %v4580_v25 = vor.u32 %v3753_v24, %v3376_v23  ;;  %v3764_v28 = vld [vmem:[#allocation11 + $0x74] sm:$0xf]  ;;  %v3426_v29 = vld [vmem:[#allocation11 + $0x78] sm:$0xf0]  ;;  %v4583_v30 = vor.u32 %v3751_v27, %v3368_v26  ;;  %v3762_v32 = vld [vmem:[#allocation11 + $0x64] sm:$0xf] }
  0x29   :  { %v4585_v31 = vor.u32 %v3764_v28, %v3426_v29  ;;  %v3418_v33 = vld [vmem:[#allocation11 + $0x68] sm:$0xf0]  ;;  %v4591_v35 = vld [vmem:[#allocation5 + $0x30] sm:$0xff]  ;;  %v3410_v37 = vld [vmem:[#allocation11 + $0x58] sm:$0xf0]  ;;  %s3282_s30 = sshll.u32 %s6274_s9, 4  ;;  %s3283_s30 = int_to_ptr.hbm [resolvable:$true] %s3282_s30 }
  0x2a   :  { %v4589_v34 = vor.u32 %v3762_v32, %v3418_v33  ;;  %v3760_v36 = vld [vmem:[#allocation11 + $0x54] sm:$0xf]  ;;  %v3332_v38 = vld [vmem:[#allocation8] sm:$0xf]  ;;  %v3783_v39 = vld [vmem:[#allocation8 + $0x8] sm:$0xf0] }
  0x2b   :  { %v4594_v40 = vor.u32 %v3760_v36, %v3410_v37  ;;  %v3333_v41 = vor.u32 %v3783_v39, %v3332_v38  ;;  %v3758_v42 = vld [vmem:[#allocation11 + $0x44] sm:$0xf]  ;;  %v3402_v43 = vld [vmem:[#allocation11 + $0x48] sm:$0xf0]  ;;  %v3756_v46 = vld [vmem:[#allocation11 + $0x34] sm:$0xf] }
  0x2c   :  { %573 = vmatpush.bf16.msrb.mxu3 %v4559_v9  ;;  %v3774_v44 = vld [vmem:[#allocation5] sm:$0xff]  ;;  %v4601_v45 = vor.u32 %v3758_v42, %v3402_v43  ;;  %v3394_v47 = vld [vmem:[#allocation11 + $0x38] sm:$0xf0]  ;;  %v3386_v50 = vld [vmem:[#allocation11 + $0x28] sm:$0xf0] }
  0x2d   :  { %295 = vmatpush.bf16.msra.mxu0 %v3333_v41  ;;  %3881 = vmatpush.bf16.msra.mxu2 %v3333_v41  ;;  %v4608_v48 = vor.u32 %v3756_v46, %v3394_v47  ;;  %v3754_v49 = vld [vmem:[#allocation11 + $0x24] sm:$0xf]  ;;  %v4614_v52 = vld [vmem:[#allocation5 + $0x38] sm:$0xff]  ;;  %v3752_v53 = vld [vmem:[#allocation11 + $0x14] sm:$0xf] }
  0x2e   :  { %3350 = vmatmul.msk.bf16.vlgmr.msra.gmra.mxu1 %vm263_vm0, %v3774_v44  ;;  %v4612_v51 = vor.u32 %v3754_v49, %v3386_v50  ;;  %v3378_v54 = vld [vmem:[#allocation11 + $0x18] sm:$0xf0]  ;;  %v3750_v56 = vld [vmem:[#allocation11 + $0x4] sm:$0xf]  ;;  %v3370_v57 = vld [vmem:[#allocation11 + $0x8] sm:$0xf0] }
  0x2f   :  { %v4618_v55 = vor.u32 %v3752_v53, %v3378_v54  ;;  %v4624_v58 = vor.u32 %v3750_v56, %v3370_v57  ;;  %v3340_v0 = vld [vmem:[#allocation8 + $0x8] sm:$0xf]  ;;  %v3784_v1 = vld [vmem:[#allocation8 + $0x10] sm:$0xf0]  ;;  %v4667_v11 = vld [vmem:[#allocation13 + $0x30] sm:$0xff] }
  0x30   :  { %574 = vmatpush.bf16.msrb.mxu3 %v4564_v12  ;;  %3342 = vmatmul.msk.bf16.vlgmr.msra.gmra.mxu0 %vm263_vm0, %v3774_v44  ;;  %v3341_v2 = vor.u32 %v3784_v1, %v3340_v0  ;;  %v4661_v10 = vld [vmem:[#allocation13 + $0x38] sm:$0xff]  ;;  %v4675_v14 = vld [vmem:[#allocation13 + $0x28] sm:$0xff]  ;;  %v4681_v16 = vld [vmem:[#allocation13 + $0x20] sm:$0xff] }
  0x31   :  { %788 = vmatpush.bf16.msrb.mxu0 %v4585_v31  ;;  %3346 = vmatmul.msk.bf16.vlgmr.msra.gmra.mxu2 %vm263_vm0, %v4554_v6  ;;  %v4684_v17 = vld [vmem:[#allocation10] sm:$0x7]  ;;  %v4701_v27 = vld [vmem:[#allocation13 + $0x10] sm:$0xff]  ;;  %v4705_v29 = vld [vmem:[#allocation13 + $0x8] sm:$0xff] }
  0x32   :  { %393 = vmatpush.bf16.msrb.mxu2 %v3341_v2  ;;  %885 = vmatpush.bf16.msrb.mxu1 %v4661_v10  ;;  %v4691_v23 = vld [vmem:[#allocation13 + $0x18] sm:$0xff]  ;;  %v4695_v24 = vperm.slane %v4684_v17, 1  ;;  %v4711_v37 = vld [vmem:[#allocation13] sm:$0xff]  ;;  %v3775_v50 = vld [vmem:[#allocation5 + $0x8] sm:$0xff] }
  0x34   :  { %575 = vmatpush.bf16.msrb.mxu3 %v4567_v15 }
  0x35   :  { %789 = vmatpush.bf16.msrb.mxu0 %v4589_v34 }
  0x36   :  { %929 = vmatpush.bf16.msra.mxu2 %v4556_v7  ;;  %886 = vmatpush.bf16.msrb.mxu1 %v4667_v11 }
  0x37   :  { %3355 = vmatmul.msk.bf16.gmra.mxu3 %vm263_vm0, %v4572_v21 }
  0x38   :  { %576 = vmatpush.bf16.msrb.mxu3 %v4570_v18 }
  0x39   :  { %790 = vmatpush.bf16.msrb.mxu0 %v4594_v40 }
  0x3a   :  { %930 = vmatpush.bf16.msra.mxu2 %v4559_v9  ;;  %887 = vmatpush.bf16.msrb.mxu1 %v4675_v14 }
  0x3c   :  { %577 = vmatpush.bf16.msrb.mxu3 %v4575_v22 }
  0x3d   :  { %791 = vmatpush.bf16.msrb.mxu0 %v4601_v45 }
  0x3e   :  { %931 = vmatpush.bf16.msra.mxu2 %v4564_v12  ;;  %888 = vmatpush.bf16.msrb.mxu1 %v4681_v16 }
  0x3f   :  { %3351 = vmatmul.msk.bf16.gmra.mxu1 %vm263_vm0, %v3775_v50 }
  0x40   :  { %578 = vmatpush.bf16.msrb.mxu3 %v4580_v25  ;;  %3343 = vmatmul.msk.bf16.gmra.mxu0 %vm263_vm0, %v3775_v50 }
  0x41   :  { %792 = vmatpush.bf16.msrb.mxu0 %v4608_v48  ;;  %3347 = vmatmul.msk.bf16.gmra.mxu2 %vm263_vm0, %v4572_v21 }
  0x42   :  { %932 = vmatpush.bf16.msra.mxu2 %v4567_v15  ;;  %889 = vmatpush.bf16.msrb.mxu1 %v4691_v23 }
  0x44   :  { %579 = vmatpush.bf16.msrb.mxu3 %v4583_v30 }
  0x45   :  { %793 = vmatpush.bf16.msrb.mxu0 %v4612_v51 }
  0x46   :  { %933 = vmatpush.bf16.msra.mxu2 %v4570_v18  ;;  %890 = vmatpush.bf16.msrb.mxu1 %v4701_v27 }
  0x47   :  { %3356 = vmatmul.msk.bf16.gmra.mxu3 %vm263_vm0, %v4591_v35 }
  0x48   :  { %586 = vmatpush.bf16.msra.mxu3 %v4585_v31 }
  0x49   :  { %794 = vmatpush.bf16.msrb.mxu0 %v4618_v55 }
  0x4a   :  { %934 = vmatpush.bf16.msra.mxu2 %v4575_v22  ;;  %891 = vmatpush.bf16.msrb.mxu1 %v4705_v29 }
  0x4c   :  { %587 = vmatpush.bf16.msra.mxu3 %v4589_v34 }
  0x4d   :  { %795 = vmatpush.bf16.msrb.mxu0 %v4624_v58 }
  0x4e   :  { %935 = vmatpush.bf16.msra.mxu2 %v4580_v25  ;;  %892 = vmatpush.bf16.msrb.mxu1 %v4711_v37 }
  0x50   :  { %588 = vmatpush.bf16.msra.mxu3 %v4594_v40 }
  0x51   :  { %3348 = vmatmul.msk.bf16.gmra.mxu2 %vm263_vm0, %v4591_v35  ;;  %1040 = vmatpush.bf16.msra.mxu0 %v4661_v10 }
  0x52   :  { %936 = vmatpush.bf16.msra.mxu2 %v4583_v30  ;;  %1084 = vmatpush.bf16.msra.mxu1 %v4556_v7 }
  0x54   :  { %589 = vmatpush.bf16.msra.mxu3 %v4601_v45 }
  0x55   :  { %1041 = vmatpush.bf16.msra.mxu0 %v4667_v11 }
  0x56   :  { %1085 = vmatpush.bf16.msra.mxu1 %v4559_v9 }
  0x57   :  { %3357 = vmatmul.msk.bf16.gmra.mxu3 %vm263_vm0, %v4614_v52 }
  0x58   :  { %590 = vmatpush.bf16.msra.mxu3 %v4608_v48 }
  0x59   :  { %1042 = vmatpush.bf16.msra.mxu0 %v4675_v14 }
  0x5a   :  { %1086 = vmatpush.bf16.msra.mxu1 %v4564_v12 }
  0x5c   :  { %591 = vmatpush.bf16.msra.mxu3 %v4612_v51 }
  0x5d   :  { %1043 = vmatpush.bf16.msra.mxu0 %v4681_v16 }
  0x5e   :  { %1087 = vmatpush.bf16.msra.mxu1 %v4567_v15 }
  0x60   :  { %592 = vmatpush.bf16.msra.mxu3 %v4618_v55 }
  0x61   :  { %3349 = vmatmul.msk.bf16.gmra.mxu2 %vm263_vm0, %v4614_v52  ;;  %1044 = vmatpush.bf16.msra.mxu0 %v4691_v23 }
  0x62   :  { %1088 = vmatpush.bf16.msra.mxu1 %v4570_v18 }
  0x64   :  { %593 = vmatpush.bf16.msra.mxu3 %v4624_v58 }
  0x65   :  { %1045 = vmatpush.bf16.msra.mxu0 %v4701_v27 }
  0x66   :  { %1089 = vmatpush.bf16.msra.mxu1 %v4575_v22 }
  0x67   :  { %580 = vmatmul.bf16.vlgmr.msrb.gmra.mxu3 %v4478_v59 }
  0x68   :  { %731 = vmatpush.bf16.msrb.mxu3 %v4661_v10 }
  0x69   :  { %1046 = vmatpush.bf16.msra.mxu0 %v4705_v29 }
  0x6a   :  { %1090 = vmatpush.bf16.msra.mxu1 %v4580_v25 }
  0x6c   :  { %732 = vmatpush.bf16.msrb.mxu3 %v4667_v11 }
  0x6d   :  { %1047 = vmatpush.bf16.msra.mxu0 %v4711_v37 }
  0x6e   :  { %1091 = vmatpush.bf16.msra.mxu1 %v4583_v30 }
  0x70   :  { %733 = vmatpush.bf16.msrb.mxu3 %v4675_v14 }
  0x71   :  { %3358 = vmatmul.msk.bf16.vlgmr.msrb.gmra.mxu2 %vm263_vm0, %v3774_v44 }
  0x72   :  { %1098 = vmatpush.bf16.msrb.mxu2 %v4585_v31 }
  0x74   :  { %734 = vmatpush.bf16.msrb.mxu3 %v4681_v16 }
  0x76   :  { %1099 = vmatpush.bf16.msrb.mxu2 %v4589_v34 }
  0x77   :  { %594 = vmatmul.bf16.vlgmr.msra.gmra.mxu3 %v4478_v59 }
  0x78   :  { %735 = vmatpush.bf16.msrb.mxu3 %v4691_v23 }
  0x7a   :  { %1100 = vmatpush.bf16.msrb.mxu2 %v4594_v40 }
  0x7c   :  { %736 = vmatpush.bf16.msrb.mxu3 %v4701_v27 }
  0x7e   :  { %1101 = vmatpush.bf16.msrb.mxu2 %v4601_v45 }
  0x80   :  { %737 = vmatpush.bf16.msrb.mxu3 %v4705_v29 }
  0x81   :  { %3359 = vmatmul.msk.bf16.gmra.mxu2 %vm263_vm0, %v3775_v50 }
  0x82   :  { %1102 = vmatpush.bf16.msrb.mxu2 %v4608_v48 }
  0x84   :  { %738 = vmatpush.bf16.msrb.mxu3 %v4711_v37 }
  0x86   :  { %1103 = vmatpush.bf16.msrb.mxu2 %v4612_v51 }
  0x88   :  { %774 = vmatpush.bf16.msra.mxu3 %v4556_v7 }
  0x8a   :  { %1104 = vmatpush.bf16.msrb.mxu2 %v4618_v55 }
  0x8c   :  { %775 = vmatpush.bf16.msra.mxu3 %v4559_v9 }
  0x8e   :  { %1105 = vmatpush.bf16.msrb.mxu2 %v4624_v58 }
  0x90   :  { %776 = vmatpush.bf16.msra.mxu3 %v4564_v12 }
  0x94   :  { %777 = vmatpush.bf16.msra.mxu3 %v4567_v15 }
  0x98   :  { %778 = vmatpush.bf16.msra.mxu3 %v4570_v18 }
  0x9c   :  { %779 = vmatpush.bf16.msra.mxu3 %v4575_v22 }
  0xa0   :  { %780 = vmatpush.bf16.msra.mxu3 %v4580_v25 }
  0xa4   :  { %781 = vmatpush.bf16.msra.mxu3 %v4583_v30 }
  0xaa   :  { %v4636_v60 = vpop.f32.mrf.mxu3 }
  0xab   :  { %v346_v20 = vpop.f32.mrf.mxu1 }
  0xac   :  { %v347_v26 = vadd.f32 %v346_v20, %v4695_v24 }
  0xb2   :  { %v4638_v61 = vpop.f32.mrf.mxu3 }
  0xb3   :  { %v348_v36 = vpop.f32.mrf.mxu1 }
  0xb4   :  { %v349_v38 = vadd.f32 %v348_v36, %v4695_v24  ;;  %v4750_v50 = vpop.f32.mrf.mxu2 }
  0xba   :  { %v4640_v62 = vpop.f32.mrf.mxu3 }
  0xc2   :  { %v4642_v63 = vpop.f32.mrf.mxu3 }
  0xc3   :  { %6275 = vst [vmem:[#allocation23_spill] sm:$0xff] %v4642_v63 }
  0xca   :  { %v4646_v3 = vpop.f32.mrf.mxu3 }
  0xcb   :  { %6276 = vst [vmem:[#allocation24_spill] sm:$0xff] %v4646_v3 }
  0xd2   :  { %v4650_v4 = vpop.f32.mrf.mxu3 }
  0xd3   :  { %6277 = vst [vmem:[#allocation25_spill] sm:$0xff] %v4650_v4 }
  0xda   :  { %v4654_v5 = vpop.f32.mrf.mxu3 }
  0xdb   :  { %6278 = vst [vmem:[#allocation26_spill] sm:$0xff] %v4654_v5 }
  0xe2   :  { %v4658_v8 = vpop.f32.mrf.mxu3 }
  0xe3   :  { %6279 = vst [vmem:[#allocation27_spill] sm:$0xff] %v4658_v8 }
  0xea   :  { %v4670_v13 = vpop.f32.mrf.mxu3 }
  0xf2   :  { %v4686_v19 = vpop.f32.mrf.mxu3 }
  0xfa   :  { %v595_v28 = vpop.f32.mrf.mxu3 }
  0xfb   :  { %v601_v32 = vadd.f32 %v595_v28, %v347_v26 }
  0xfd   :  { %v3431_v33 = vmul.f32 -1.442695, %v601_v32 }
  0xff   :  { %3901 = vpow2.f32 %v3431_v33 }
 0x102   :  { %v597_v39 = vpop.f32.mrf.mxu3 }
 0x103   :  { %v603_v41 = vadd.f32 %v597_v39, %v349_v38 }
 0x105   :  { %v3902_v42 = vpop.eup %3901  ;;  %v3433_v43 = vmul.f32 -1.442695, %v603_v41 }
 0x106   :  { %v617_v44 = vadd.f32 1.0, %v3902_v42  ;;  %v3776_v42 = vld [vmem:[#allocation5 + $0x10] sm:$0xff] }
 0x107   :  { %3903 = vpow2.f32 %v3433_v43  ;;  %3344 = vmatmul.msk.bf16.gmra.mxu0 %vm263_vm0, %v3776_v42  ;;  %3352 = vmatmul.msk.bf16.gmra.mxu1 %vm263_vm0, %v3776_v42 }
 0x108   :  { %3905 = vrcp.f32 %v617_v44  ;;  %v646_v1 = vand.u32 2147483648, %v617_v44  ;;  %vm640_vm2 = vweird.f32 %v617_v44  ;;  %v644_v20 = vand.u32 2147483647, %v617_v44  ;;  %3360 = vmatmul.msk.bf16.gmra.mxu2 %vm263_vm0, %v3776_v42 }
 0x10a   :  { %v647_v36 = vor.u32 1.1754944e-38, %v646_v1  ;;  %vm645_vm5 = vcmp.eq.f32.partialorder %v644_v20, 8.507059e+37 }
 0x10d   :  { %v3904_v46 = vpop.eup %3903 }
 0x10e   :  { %v3906_v47 = vpop.eup %3905  ;;  %v619_v49 = vadd.f32 1.0, %v3904_v46 }
 0x10f   :  { %v636_v53 = vmul.f32 %v3906_v47, %v617_v44  ;;  %vm641_vm1 = vweird.f32 %v3906_v47 }
 0x110   :  { %3907 = vrcp.f32 %v619_v49  ;;  %vm642_vm3 = vmor %vm640_vm2, %vm641_vm1  ;;  %v676_v26 = vand.u32 2147483648, %v619_v49  ;;  %v674_v33 = vand.u32 2147483647, %v619_v49  ;;  %vm670_vm6 = vweird.f32 %v619_v49 }
 0x111   :  { %v637_v54 = vsub.f32 1.0, %v636_v53  ;;  %v4752_v53 = vpop.f32.mrf.mxu2 }
 0x112   :  { %v677_v41 = vor.u32 1.1754944e-38, %v676_v26  ;;  %vm675_vm8 = vcmp.eq.f32.partialorder %v674_v33, 8.507059e+37 }
 0x113   :  { %v638_v56 = vmul.f32 %v3906_v47, %v637_v54 }
 0x115   :  { %v639_v0 = vadd.f32 %v3906_v47, %v638_v56 }
 0x116   :  { %v3908_v57 = vpop.eup %3907 }
 0x117   :  { %v666_v59 = vmul.f32 %v3908_v57, %v619_v49  ;;  %v643_v28 = vsel %vm642_vm3, %v3906_v47, %v639_v0  ;;  %vm671_vm4 = vweird.f32 %v3908_v57 }
 0x118   :  { %v648_v39 = vsel %vm645_vm5, %v647_v36, %v643_v28  ;;  %vm672_vm7 = vmor %vm670_vm6, %vm671_vm4 }
 0x119   :  { %v667_v2 = vsub.f32 1.0, %v666_v59  ;;  %v680_v46 = vmul.f32 0.0, %v648_v39  ;;  %v4754_v54 = vpop.f32.mrf.mxu2  ;;  %v4759_v59 = vperm.slane %v4684_v17, 0 }
 0x11a   :  { %6280 = vst [vmem:[#allocation28_spill] sm:$0xff] %v4754_v54 }
 0x11b   :  { %v668_v32 = vmul.f32 %v3908_v57, %v667_v2 }
 0x11d   :  { %v669_v38 = vadd.f32 %v3908_v57, %v668_v32 }
 0x11f   :  { %v673_v43 = vsel %vm672_vm7, %v3908_v57, %v669_v38  ;;  %v297_v57 = vpop.f32.mrf.mxu0  ;;  %v3777_v38 = vld [vmem:[#allocation5 + $0x18] sm:$0xff] }
 0x120   :  { %v678_v44 = vsel %vm675_vm8, %v677_v41, %v673_v43  ;;  %v298_v0 = vadd.f32 %v297_v57, %v4759_v59  ;;  %3345 = vmatmul.msk.bf16.gmra.mxu0 %vm263_vm0, %v3777_v38  ;;  %3353 = vmatmul.msk.bf16.gmra.mxu1 %vm263_vm0, %v3777_v38  ;;  %v4779_v57 = vperm.slane %v4684_v17, 2 }
 0x121   :  { %v681_v47 = vmul.f32 0.0, %v678_v44  ;;  %v4756_v56 = vpop.f32.mrf.mxu2  ;;  %3361 = vmatmul.msk.bf16.gmra.mxu2 %vm263_vm0, %v3777_v38 }
 0x122   :  { %6281 = vst [vmem:[#allocation29_spill] sm:$0xff] %v4756_v56  ;;  %v600_v20 = vadd.f32 %v4670_v13, %v298_v0 }
 0x123   :  { %v682_v49 = vpack.c.bf16 %v681_v47, %v680_v46 }
 0x124   :  { %v3430_v28 = vmul.f32 -1.442695, %v600_v20 }
 0x125   :  { %739 = vmatmul.bf16.vlgmr.msrb.gmra.mxu3 %v682_v49 }
 0x126   :  { %943 = vmatpush.bf16.msrb.mxu3 %v4585_v31  ;;  %3909 = vpow2.f32 %v3430_v28 }
 0x127   :  { %v299_v2 = vpop.f32.mrf.mxu0 }
 0x128   :  { %v300_v26 = vadd.f32 %v299_v2, %v4759_v59 }
 0x129   :  { %v4762_v1 = vpop.f32.mrf.mxu2 }
 0x12a   :  { %944 = vmatpush.bf16.msrb.mxu3 %v4589_v34  ;;  %6282 = vst [vmem:[#allocation30_spill] sm:$0xff] %v4762_v1  ;;  %v602_v32 = vadd.f32 %v4686_v19, %v300_v26 }
 0x12c   :  { %v3432_v36 = vmul.f32 -1.442695, %v602_v32  ;;  %v3910_v39 = vpop.eup %3909 }
 0x12d   :  { %v616_v13 = vadd.f32 1.0, %v3910_v39 }
 0x12e   :  { %945 = vmatpush.bf16.msrb.mxu3 %v4594_v40  ;;  %3911 = vpow2.f32 %v3432_v36 }
 0x12f   :  { %3913 = vrcp.f32 %v616_v13  ;;  %v631_v38 = vand.u32 2147483648, %v616_v13  ;;  %vm625_vm10 = vweird.f32 %v616_v13 }
 0x131   :  { %v4767_v33 = vpop.f32.mrf.mxu2  ;;  %3362 = vmatmul.msk.bf16.gmra.mxu2 %vm263_vm0, %v4554_v6  ;;  %v632_v17 = vor.u32 1.1754944e-38, %v631_v38 }
 0x132   :  { %946 = vmatpush.bf16.msrb.mxu3 %v4601_v45  ;;  %6283 = vst [vmem:[#allocation31_spill] sm:$0xff] %v4767_v33 }
 0x134   :  { %v3912_v42 = vpop.eup %3911 }
 0x135   :  { %v618_v43 = vadd.f32 1.0, %v3912_v42  ;;  %v3914_v44 = vpop.eup %3913 }
 0x136   :  { %947 = vmatpush.bf16.msrb.mxu3 %v4608_v48  ;;  %v621_v46 = vmul.f32 %v3914_v44, %v616_v13  ;;  %vm626_vm9 = vweird.f32 %v3914_v44 }
 0x137   :  { %3915 = vrcp.f32 %v618_v43  ;;  %vm627_vm11 = vmor %vm625_vm10, %vm626_vm9  ;;  %vm655_vm14 = vweird.f32 %v618_v43 }
 0x138   :  { %v622_v49 = vsub.f32 1.0, %v621_v46 }
 0x139   :  { %v4771_v41 = vpop.f32.mrf.mxu2 }
 0x13a   :  { %948 = vmatpush.bf16.msrb.mxu3 %v4612_v51  ;;  %6284 = vst [vmem:[#allocation32_spill] sm:$0xff] %v4771_v41  ;;  %v623_v20 = vmul.f32 %v3914_v44, %v622_v49  ;;  %v661_v49 = vand.u32 2147483648, %v618_v43 }
 0x13c   :  { %v624_v32 = vadd.f32 %v3914_v44, %v623_v20  ;;  %v659_v20 = vand.u32 2147483647, %v618_v43 }
 0x13d   :  { %v3916_v47 = vpop.eup %3915 }
 0x13e   :  { %949 = vmatpush.bf16.msrb.mxu3 %v4618_v55  ;;  %v651_v0 = vmul.f32 %v3916_v47, %v618_v43  ;;  %v628_v46 = vsel %vm627_vm11, %v3914_v44, %v624_v32  ;;  %vm656_vm13 = vweird.f32 %v3916_v47  ;;  %v662_v44 = vor.u32 1.1754944e-38, %v661_v49 }
 0x13f   :  { %vm657_vm15 = vmor %vm655_vm14, %vm656_vm13  ;;  %vm660_vm1 = vcmp.eq.f32.partialorder %v659_v20, 8.507059e+37 }
 0x140   :  { %v652_v28 = vsub.f32 1.0, %v651_v0 }
 0x141   :  { %v4774_v19 = vpop.f32.mrf.mxu2  ;;  %3363 = vmatmul.msk.bf16.gmra.mxu2 %vm263_vm0, %v4572_v21 }
 0x142   :  { %950 = vmatpush.bf16.msrb.mxu3 %v4624_v58  ;;  %6285 = vst [vmem:[#allocation33_spill] sm:$0xff] %v4774_v19  ;;  %v653_v42 = vmul.f32 %v3916_v47, %v652_v28  ;;  %v629_v19 = vand.u32 2147483647, %v616_v13 }
 0x144   :  { %vm630_vm12 = vcmp.eq.f32.partialorder %v629_v19, 8.507059e+37  ;;  %v654_v41 = vadd.f32 %v3916_v47, %v653_v42 }
 0x149   :  { %v395_v2 = vpop.f32.mrf.mxu2 }
 0x14a   :  { %v396_v26 = vadd.f32 %v395_v2, %v4779_v57  ;;  %v633_v2 = vsel %vm630_vm12, %v632_v17, %v628_v46 }
 0x14b   :  { %v749_v38 = vmul.f32 0.0, %v633_v2 }
 0x151   :  { %v397_v6 = vpop.f32.mrf.mxu2  ;;  %3364 = vmatmul.msk.bf16.gmra.mxu2 %vm263_vm0, %v4591_v35  ;;  %v4815_v35 = vpop.f32.mrf.mxu0 }
 0x152   :  { %v398_v0 = vadd.f32 %v397_v6, %v4779_v57 }
 0x161   :  { %3365 = vmatmul.msk.bf16.gmra.mxu2 %vm263_vm0, %v4614_v52  ;;  %v4817_v52 = vpop.f32.mrf.mxu0 }
 0x1a8   :  { %v740_v36 = vpop.f32.mrf.mxu3 }
 0x1a9   :  { %v745_v39 = vadd.f32 %v740_v36, %v396_v26  ;;  %v751_v36 = vsub.f32 1.0, %v633_v2 }
 0x1ab   :  { %3917 = vtanh.f32 %v745_v39  ;;  %v658_v39 = vsel %vm657_vm15, %v3916_v47, %v654_v41 }
 0x1ac   :  { %v663_v32 = vsel %vm660_vm1, %v662_v44, %v658_v39 }
 0x1ad   :  { %v752_v21 = vsub.f32 1.0, %v663_v32  ;;  %v750_v6 = vmul.f32 0.0, %v663_v32 }
 0x1b0   :  { %v742_v26 = vpop.f32.mrf.mxu3 }
 0x1b1   :  { %v3918_v28 = vpop.eup %3917  ;;  %v746_v13 = vadd.f32 %v742_v26, %v398_v0 }
 0x1b2   :  { %v753_v19 = vmul.f32 %v3918_v28, %v751_v36 }
 0x1b3   :  { %3919 = vtanh.f32 %v746_v13  ;;  %v351_v13 = vpop.f32.mrf.mxu1 }
 0x1b4   :  { %v4785_v42 = vadd.f32 %v753_v19, %v749_v38  ;;  %v352_v36 = vadd.f32 %v351_v13, %v4695_v24 }
 0x1b6   :  { %v757_v43 = vpack.c.bf16 %v4785_v42, %v4785_v42 }
 0x1b8   :  { %v770_v49 = vunpack.c.l.b16 %v757_v43 }
 0x1b9   :  { %v3920_v8 = vpop.eup %3919 }
 0x1ba   :  { %v754_v46 = vmul.f32 %v3920_v8, %v752_v21  ;;  %v4819_v8 = vpop.f32.mrf.mxu0 }
 0x1bb   :  { %v353_v32 = vpop.f32.mrf.mxu1 }
 0x1bc   :  { %v4787_v17 = vadd.f32 %v754_v46, %v750_v6  ;;  %v354_v38 = vadd.f32 %v353_v32, %v4695_v24 }
 0x1be   :  { %v3844_v41 = vpack.c.bf16 %v4787_v17, %v4785_v42  ;;  %v758_v47 = vpack.c.bf16 %v4787_v17, %v4787_v17 }
 0x1c0   :  { %3845 = vst [vmem:[#allocation4 + $0x30] sm:$0xff] %v3844_v41   ;;  %v771_v0 = vunpack.c.l.b16 %v758_v47 }
 0x1c2   :  { %v772_v2 = vpack.c.b16 %v771_v0, %v770_v49  ;;  %v4821_v20 = vpop.f32.mrf.mxu0 }
 0x1c4   :  { %782 = vmatmul.bf16.vlgmr.msra.gmra.mxu3 %v772_v2  ;;  %796 = vmatmul.bf16.vlgmr.msrb.gmra.mxu0 %v772_v2 }
 0x1c5   :  { %1195 = vmatpush.bf16.msra.mxu3 %v4661_v10  ;;  %1239 = vmatpush.bf16.msrb.mxu0 %v4556_v7 }
 0x1c9   :  { %1196 = vmatpush.bf16.msra.mxu3 %v4667_v11  ;;  %1240 = vmatpush.bf16.msrb.mxu0 %v4559_v9 }
 0x1ca   :  { %v4823_v26 = vpop.f32.mrf.mxu0 }
 0x1cd   :  { %1197 = vmatpush.bf16.msra.mxu3 %v4675_v14  ;;  %1241 = vmatpush.bf16.msrb.mxu0 %v4564_v12 }
 0x1d1   :  { %1198 = vmatpush.bf16.msra.mxu3 %v4681_v16  ;;  %1242 = vmatpush.bf16.msrb.mxu0 %v4567_v15 }
 0x1d2   :  { %v4825_v28 = vpop.f32.mrf.mxu0 }
 0x1d5   :  { %1199 = vmatpush.bf16.msra.mxu3 %v4691_v23  ;;  %1243 = vmatpush.bf16.msrb.mxu0 %v4570_v18 }
 0x1d9   :  { %1200 = vmatpush.bf16.msra.mxu3 %v4701_v27  ;;  %1244 = vmatpush.bf16.msrb.mxu0 %v4575_v22 }
 0x1dd   :  { %1201 = vmatpush.bf16.msra.mxu3 %v4705_v29  ;;  %1245 = vmatpush.bf16.msrb.mxu0 %v4580_v25 }
 0x1e1   :  { %1202 = vmatpush.bf16.msra.mxu3 %v4711_v37  ;;  %1246 = vmatpush.bf16.msrb.mxu0 %v4583_v30 }
 0x241   :  { %v797_v39 = vpop.f32.mrf.mxu0 }
 0x242   :  { %v803_v44 = vadd.f32 %v797_v39, %v352_v36 }
 0x244   :  { %v3467_v19 = vmul.f32 -1.442695, %v803_v44 }
 0x246   :  { %3921 = vpow2.f32 %v3467_v19 }
 0x249   :  { %v799_v21 = vpop.f32.mrf.mxu0 }
 0x24a   :  { %v805_v6 = vadd.f32 %v799_v21, %v354_v38 }
 0x24c   :  { %v3922_v46 = vpop.eup %3921  ;;  %v3469_v43 = vmul.f32 -1.442695, %v805_v6 }
 0x24d   :  { %v819_v41 = vadd.f32 1.0, %v3922_v46 }
 0x24e   :  { %3923 = vpow2.f32 %v3469_v43 }
 0x24f   :  { %3925 = vrcp.f32 %v819_v41  ;;  %v848_v19 = vand.u32 2147483648, %v819_v41  ;;  %vm842_vm2 = vweird.f32 %v819_v41  ;;  %v846_v38 = vand.u32 2147483647, %v819_v41 }
 0x251   :  { %v849_v33 = vor.u32 1.1754944e-38, %v848_v19  ;;  %vm847_vm5 = vcmp.eq.f32.partialorder %v846_v38, 8.507059e+37 }
 0x254   :  { %v3924_v47 = vpop.eup %3923 }
 0x255   :  { %v3926_v49 = vpop.eup %3925  ;;  %v821_v0 = vadd.f32 1.0, %v3924_v47 }
 0x256   :  { %v838_v2 = vmul.f32 %v3926_v49, %v819_v41  ;;  %vm843_vm0 = vweird.f32 %v3926_v49 }
 0x257   :  { %3927 = vrcp.f32 %v821_v0  ;;  %vm844_vm3 = vmor %vm842_vm2, %vm843_vm0  ;;  %v878_v21 = vand.u32 2147483648, %v821_v0  ;;  %v876_v43 = vand.u32 2147483647, %v821_v0  ;;  %vm872_vm6 = vweird.f32 %v821_v0 }
 0x258   :  { %v839_v13 = vsub.f32 1.0, %v838_v2 }
 0x259   :  { %vm877_vm8 = vcmp.eq.f32.partialorder %v876_v43, 8.507059e+37 }
 0x25a   :  { %v840_v5 = vmul.f32 %v3926_v49, %v839_v13  ;;  %v879_v13 = vor.u32 1.1754944e-38, %v878_v21 }
 0x25c   :  { %v841_v44 = vadd.f32 %v3926_v49, %v840_v5 }
 0x25d   :  { %v3928_v36 = vpop.eup %3927 }
 0x25e   :  { %v868_v39 = vmul.f32 %v3928_v36, %v821_v0  ;;  %v845_v6 = vsel %vm844_vm3, %v3926_v49, %v841_v44  ;;  %vm873_vm4 = vweird.f32 %v3928_v36  ;;  %v305_v0 = vadd.f32 %v4817_v52, %v4759_v59  ;;  %v4843_v44 = vpop.f32.mrf.mxu1 }
 0x25f   :  { %v850_v2 = vsel %vm847_vm5, %v849_v33, %v845_v6  ;;  %vm874_vm7 = vmor %vm872_vm6, %vm873_vm4 }
 0x260   :  { %v869_v32 = vsub.f32 1.0, %v868_v39  ;;  %v882_v39 = vmul.f32 %v850_v2, %v4785_v42 }
 0x262   :  { %v870_v46 = vmul.f32 %v3928_v36, %v869_v32 }
 0x264   :  { %v871_v47 = vadd.f32 %v3928_v36, %v870_v46 }
 0x266   :  { %v875_v1 = vsel %vm874_vm7, %v3928_v36, %v871_v47  ;;  %v4845_v21 = vpop.f32.mrf.mxu1 }
 0x267   :  { %v880_v5 = vsel %vm877_vm8, %v879_v13, %v875_v1  ;;  %v783_v1 = vpop.f32.mrf.mxu3 }
 0x268   :  { %v883_v41 = vmul.f32 %v880_v5, %v4787_v17 }
 0x26a   :  { %v884_v4 = vpack.c.bf16 %v883_v41, %v882_v39  ;;  %v400_v41 = vpop.f32.mrf.mxu2 }
 0x26c   :  { %893 = vmatmul.bf16.vlgmr.msrb.gmra.mxu1 %v884_v4  ;;  %v303_v4 = vadd.f32 %v4815_v35, %v4759_v59 }
 0x26d   :  { %1253 = vmatpush.bf16.msrb.mxu1 %v4585_v31 }
 0x26e   :  { %v802_v33 = vadd.f32 %v783_v1, %v303_v4  ;;  %v4847_v35 = vpop.f32.mrf.mxu1  ;;  %v401_v4 = vadd.f32 %v400_v41, %v4779_v57 }
 0x26f   :  { %v785_v49 = vpop.f32.mrf.mxu3 }
 0x270   :  { %v3466_v36 = vmul.f32 -1.442695, %v802_v33  ;;  %v804_v19 = vadd.f32 %v785_v49, %v305_v0 }
 0x271   :  { %1254 = vmatpush.bf16.msrb.mxu1 %v4589_v34 }
 0x272   :  { %3929 = vpow2.f32 %v3466_v36  ;;  %v3468_v32 = vmul.f32 -1.442695, %v804_v19 }
 0x274   :  { %3931 = vpow2.f32 %v3468_v32 }
 0x275   :  { %1255 = vmatpush.bf16.msrb.mxu1 %v4594_v40 }
 0x276   :  { %v4849_v5 = vpop.f32.mrf.mxu1 }
 0x278   :  { %v3930_v38 = vpop.eup %3929 }
 0x279   :  { %1256 = vmatpush.bf16.msrb.mxu1 %v4601_v45  ;;  %v818_v6 = vadd.f32 1.0, %v3930_v38 }
 0x27a   :  { %v3932_v46 = vpop.eup %3931 }
 0x27b   :  { %3933 = vrcp.f32 %v818_v6  ;;  %v820_v43 = vadd.f32 1.0, %v3932_v46  ;;  %v833_v36 = vand.u32 2147483648, %v818_v6  ;;  %vm827_vm10 = vweird.f32 %v818_v6  ;;  %v402_v46 = vpop.f32.mrf.mxu2 }
 0x27c   :  { %v831_v38 = vand.u32 2147483647, %v818_v6  ;;  %v403_v41 = vadd.f32 %v402_v46, %v4779_v57 }
 0x27d   :  { %1257 = vmatpush.bf16.msrb.mxu1 %v4608_v48  ;;  %3935 = vrcp.f32 %v820_v43  ;;  %v834_v3 = vor.u32 1.1754944e-38, %v833_v36  ;;  %vm857_vm14 = vweird.f32 %v820_v43 }
 0x27e   :  { %vm832_vm12 = vcmp.eq.f32.partialorder %v831_v38, 8.507059e+37 }
 0x281   :  { %1258 = vmatpush.bf16.msrb.mxu1 %v4612_v51  ;;  %v3934_v47 = vpop.eup %3933 }
 0x282   :  { %v823_v2 = vmul.f32 %v3934_v47, %v818_v6  ;;  %vm828_vm9 = vweird.f32 %v3934_v47 }
 0x283   :  { %v3936_v52 = vpop.eup %3935  ;;  %vm829_vm11 = vmor %vm827_vm10, %vm828_vm9 }
 0x284   :  { %v824_v13 = vsub.f32 1.0, %v823_v2  ;;  %v853_v39 = vmul.f32 %v3936_v52, %v820_v43  ;;  %vm858_vm13 = vweird.f32 %v3936_v52 }
 0x285   :  { %1259 = vmatpush.bf16.msrb.mxu1 %v4618_v55  ;;  %vm859_vm15 = vmor %vm857_vm14, %vm858_vm13 }
 0x286   :  { %v825_v1 = vmul.f32 %v3934_v47, %v824_v13  ;;  %v854_v33 = vsub.f32 1.0, %v853_v39  ;;  %v863_v13 = vand.u32 2147483648, %v820_v43 }
 0x288   :  { %v826_v49 = vadd.f32 %v3934_v47, %v825_v1  ;;  %v855_v32 = vmul.f32 %v3936_v52, %v854_v33  ;;  %v861_v1 = vand.u32 2147483647, %v820_v43 }
 0x289   :  { %1260 = vmatpush.bf16.msrb.mxu1 %v4624_v58 }
 0x28a   :  { %v830_v2 = vsel %vm829_vm11, %v3934_v47, %v826_v49  ;;  %v856_v56 = vadd.f32 %v3936_v52, %v855_v32  ;;  %vm862_vm1 = vcmp.eq.f32.partialorder %v861_v1, 8.507059e+37 }
 0x28b   :  { %v835_v39 = vsel %vm832_vm12, %v834_v3, %v830_v2 }
 0x28c   :  { %v905_v33 = vsub.f32 1.0, %v835_v39  ;;  %v860_v6 = vsel %vm859_vm15, %v3936_v52, %v856_v56  ;;  %v903_v49 = vmul.f32 %v835_v39, %v4785_v42 }
 0x2e9   :  { %v894_v0 = vpop.f32.mrf.mxu1 }
 0x2ea   :  { %v899_v19 = vadd.f32 %v894_v0, %v401_v4  ;;  %v864_v0 = vor.u32 1.1754944e-38, %v863_v13 }
 0x2ec   :  { %3937 = vtanh.f32 %v899_v19  ;;  %v865_v47 = vsel %vm862_vm1, %v864_v0, %v860_v6 }
 0x2ed   :  { %v906_v32 = vsub.f32 1.0, %v865_v47  ;;  %v904_v3 = vmul.f32 %v865_v47, %v4787_v17  ;;  %v359_v17 = vadd.f32 %v4845_v21, %v4695_v24 }
 0x2f1   :  { %v896_v54 = vpop.f32.mrf.mxu1 }
 0x2f2   :  { %v3938_v63 = vpop.eup %3937  ;;  %v900_v4 = vadd.f32 %v896_v54, %v403_v41 }
 0x2f3   :  { %v907_v19 = vmul.f32 %v3938_v63, %v905_v33 }
 0x2f4   :  { %3939 = vtanh.f32 %v900_v4 }
 0x2f5   :  { %v4854_v36 = vadd.f32 %v907_v19, %v903_v49 }
 0x2f7   :  { %v911_v54 = vpack.c.bf16 %v4854_v36, %v4854_v36 }
 0x2f9   :  { %v925_v42 = vunpack.c.l.b16 %v911_v54 }
 0x2fa   :  { %v3940_v38 = vpop.eup %3939 }
 0x2fb   :  { %v908_v43 = vmul.f32 %v3940_v38, %v906_v32 }
 0x2fd   :  { %v4857_v46 = vadd.f32 %v908_v43, %v904_v3 }
 0x2ff   :  { %v3849_v56 = vpack.c.bf16 %v4857_v46, %v4854_v36  ;;  %v912_v63 = vpack.c.bf16 %v4857_v46, %v4857_v46 }
 0x301   :  { %3850 = vst [vmem:[#allocation4] sm:$0xff] %v3849_v56   ;;  %v926_v52 = vunpack.c.l.b16 %v912_v63 }
 0x303   :  { %v927_v2 = vpack.c.b16 %v926_v52, %v925_v42 }
 0x305   :  { %937 = vmatmul.bf16.vlgmr.msra.gmra.mxu2 %v927_v2  ;;  %951 = vmatmul.bf16.vlgmr.msrb.gmra.mxu3 %v927_v2 }
 0x306   :  { %1350 = vmatpush.bf16.msra.mxu2 %v4661_v10  ;;  %1394 = vmatpush.bf16.msrb.mxu3 %v4556_v7  ;;  %v357_v10 = vadd.f32 %v4843_v44, %v4695_v24 }
 0x30a   :  { %1351 = vmatpush.bf16.msra.mxu2 %v4667_v11  ;;  %1395 = vmatpush.bf16.msrb.mxu3 %v4559_v9 }
 0x30e   :  { %1352 = vmatpush.bf16.msra.mxu2 %v4675_v14  ;;  %1396 = vmatpush.bf16.msrb.mxu3 %v4564_v12 }
 0x312   :  { %1353 = vmatpush.bf16.msra.mxu2 %v4681_v16  ;;  %1397 = vmatpush.bf16.msrb.mxu3 %v4567_v15  ;;  %v4883_v16 = vpop.f32.mrf.mxu2 }
 0x316   :  { %1354 = vmatpush.bf16.msra.mxu2 %v4691_v23  ;;  %1398 = vmatpush.bf16.msrb.mxu3 %v4570_v18 }
 0x31a   :  { %1355 = vmatpush.bf16.msra.mxu2 %v4701_v27  ;;  %1399 = vmatpush.bf16.msrb.mxu3 %v4575_v22  ;;  %v4887_v1 = vpop.f32.mrf.mxu2 }
 0x31e   :  { %1356 = vmatpush.bf16.msra.mxu2 %v4705_v29  ;;  %1400 = vmatpush.bf16.msrb.mxu3 %v4580_v25 }
 0x322   :  { %1357 = vmatpush.bf16.msra.mxu2 %v4711_v37  ;;  %1401 = vmatpush.bf16.msrb.mxu3 %v4583_v30  ;;  %v4889_v0 = vpop.f32.mrf.mxu2 }
 0x32a   :  { %v4891_v21 = vpop.f32.mrf.mxu2 }
 0x388   :  { %v952_v11 = vpop.f32.mrf.mxu3 }
 0x389   :  { %v958_v14 = vadd.f32 %v952_v11, %v357_v10 }
 0x38b   :  { %v3471_v23 = vmul.f32 -1.442695, %v958_v14 }
 0x38d   :  { %3941 = vpow2.f32 %v3471_v23 }
 0x390   :  { %v954_v13 = vpop.f32.mrf.mxu3 }
 0x391   :  { %v960_v41 = vadd.f32 %v954_v13, %v359_v17 }
 0x393   :  { %v3942_v39 = vpop.eup %3941  ;;  %v3473_v4 = vmul.f32 -1.442695, %v960_v41 }
 0x394   :  { %v974_v33 = vadd.f32 1.0, %v3942_v39  ;;  %v4893_v39 = vpop.f32.mrf.mxu2 }
 0x396   :  { %3943 = vrcp.f32 %v974_v33  ;;  %v1003_v54 = vand.u32 2147483648, %v974_v33  ;;  %vm997_vm2 = vweird.f32 %v974_v33  ;;  %v1001_v63 = vand.u32 2147483647, %v974_v33 }
 0x397   :  { %3945 = vpow2.f32 %v3473_v4 }
 0x398   :  { %v1004_v11 = vor.u32 1.1754944e-38, %v1003_v54  ;;  %vm1002_vm5 = vcmp.eq.f32.partialorder %v1001_v63, 8.507059e+37  ;;  %v308_v54 = vadd.f32 %v4819_v8, %v4759_v59 }
 0x39c   :  { %v3944_v6 = vpop.eup %3943 }
 0x39d   :  { %v3946_v44 = vpop.eup %3945  ;;  %v993_v19 = vmul.f32 %v3944_v6, %v974_v33  ;;  %vm998_vm0 = vweird.f32 %v3944_v6 }
 0x39e   :  { %v976_v47 = vadd.f32 1.0, %v3946_v44  ;;  %vm999_vm3 = vmor %vm997_vm2, %vm998_vm0  ;;  %v4899_v44 = vpop.f32.mrf.mxu2 }
 0x39f   :  { %v994_v49 = vsub.f32 1.0, %v993_v19 }
 0x3a0   :  { %3947 = vrcp.f32 %v976_v47  ;;  %v1033_v42 = vand.u32 2147483648, %v976_v47  ;;  %v1031_v10 = vand.u32 2147483647, %v976_v47  ;;  %vm1027_vm6 = vweird.f32 %v976_v47 }
 0x3a1   :  { %v995_v32 = vmul.f32 %v3944_v6, %v994_v49 }
 0x3a2   :  { %v1034_v17 = vor.u32 1.1754944e-38, %v1033_v42  ;;  %vm1032_vm8 = vcmp.eq.f32.partialorder %v1031_v10, 8.507059e+37 }
 0x3a3   :  { %v996_v43 = vadd.f32 %v3944_v6, %v995_v32 }
 0x3a5   :  { %v1000_v52 = vsel %vm999_vm3, %v3944_v6, %v996_v43 }
 0x3a6   :  { %v3948_v38 = vpop.eup %3947  ;;  %v1005_v23 = vsel %vm1002_vm5, %v1004_v11, %v1000_v52  ;;  %v4903_v19 = vpop.f32.mrf.mxu2  ;;  %v310_v52 = vadd.f32 %v4821_v20, %v4759_v59  ;;  %v406_v20 = vadd.f32 %v4883_v16, %v4779_v57 }
 0x3a7   :  { %v1023_v3 = vmul.f32 %v3948_v38, %v976_v47  ;;  %vm1028_vm4 = vweird.f32 %v3948_v38  ;;  %v1037_v4 = vmul.f32 %v1005_v23, %v4854_v36 }
 0x3a8   :  { %vm1029_vm7 = vmor %vm1027_vm6, %vm1028_vm4 }
 0x3a9   :  { %v1024_v56 = vsub.f32 1.0, %v1023_v3 }
 0x3ab   :  { %v1025_v2 = vmul.f32 %v3948_v38, %v1024_v56 }
 0x3ad   :  { %v1026_v14 = vadd.f32 %v3948_v38, %v1025_v2 }
 0x3ae   :  { %v4908_v47 = vpop.f32.mrf.mxu2 }
 0x3af   :  { %v1030_v13 = vsel %vm1029_vm7, %v3948_v38, %v1026_v14 }
 0x3b0   :  { %v1035_v41 = vsel %vm1032_vm8, %v1034_v17, %v1030_v13 }
 0x3b1   :  { %v1038_v33 = vmul.f32 %v1035_v41, %v4857_v46 }
 0x3b3   :  { %v1039_v6 = vpack.c.bf16 %v1038_v33, %v1037_v4 }
 0x3b5   :  { %1048 = vmatmul.bf16.vlgmr.msra.gmra.mxu0 %v1039_v6 }
 0x3b6   :  { %1408 = vmatpush.bf16.msra.mxu0 %v4585_v31  ;;  %v4911_v49 = vpop.f32.mrf.mxu2 }
 0x3ba   :  { %1409 = vmatpush.bf16.msra.mxu0 %v4589_v34 }
 0x3be   :  { %1410 = vmatpush.bf16.msra.mxu0 %v4594_v40  ;;  %v4913_v32 = vpop.f32.mrf.mxu2 }
 0x3c2   :  { %1411 = vmatpush.bf16.msra.mxu0 %v4601_v45 }
 0x3c6   :  { %1412 = vmatpush.bf16.msra.mxu0 %v4608_v48  ;;  %v4915_v38 = vpop.f32.mrf.mxu2 }
 0x3c7   :  { %6286 = vst [vmem:[#allocation34_spill] sm:$0xff] %v4915_v38 }
 0x3ca   :  { %1413 = vmatpush.bf16.msra.mxu0 %v4612_v51 }
 0x3ce   :  { %1414 = vmatpush.bf16.msra.mxu0 %v4618_v55  ;;  %v4917_v3 = vpop.f32.mrf.mxu2 }
 0x3cf   :  { %6287 = vst [vmem:[#allocation35_spill] sm:$0xff] %v4917_v3 }
 0x3d2   :  { %1415 = vmatpush.bf16.msra.mxu0 %v4624_v58 }
 0x3d6   :  { %v938_v43 = vpop.f32.mrf.mxu2 }
 0x3d7   :  { %v957_v56 = vadd.f32 %v938_v43, %v308_v54 }
 0x3d9   :  { %v3470_v63 = vmul.f32 -1.442695, %v957_v56 }
 0x3db   :  { %3949 = vpow2.f32 %v3470_v63 }
 0x3de   :  { %v940_v42 = vpop.f32.mrf.mxu2 }
 0x3df   :  { %v959_v2 = vadd.f32 %v940_v42, %v310_v52 }
 0x3e1   :  { %v3472_v10 = vmul.f32 -1.442695, %v959_v2  ;;  %v3950_v11 = vpop.eup %3949 }
 0x3e2   :  { %v973_v14 = vadd.f32 1.0, %v3950_v11 }
 0x3e3   :  { %3951 = vpow2.f32 %v3472_v10 }
 0x3e4   :  { %3953 = vrcp.f32 %v973_v14  ;;  %v988_v56 = vand.u32 2147483648, %v973_v14  ;;  %vm982_vm10 = vweird.f32 %v973_v14  ;;  %v986_v63 = vand.u32 2147483647, %v973_v14 }
 0x3e6   :  { %v989_v11 = vor.u32 1.1754944e-38, %v988_v56  ;;  %vm987_vm12 = vcmp.eq.f32.partialorder %v986_v63, 8.507059e+37 }
 0x3e9   :  { %v3952_v23 = vpop.eup %3951 }
 0x3ea   :  { %v975_v17 = vadd.f32 1.0, %v3952_v23  ;;  %v3954_v13 = vpop.eup %3953 }
 0x3eb   :  { %v978_v41 = vmul.f32 %v3954_v13, %v973_v14  ;;  %vm983_vm9 = vweird.f32 %v3954_v13 }
 0x3ec   :  { %3955 = vrcp.f32 %v975_v17  ;;  %vm984_vm11 = vmor %vm982_vm10, %vm983_vm9  ;;  %vm1012_vm14 = vweird.f32 %v975_v17 }
 0x3ed   :  { %v979_v4 = vsub.f32 1.0, %v978_v41 }
 0x3ef   :  { %v980_v33 = vmul.f32 %v3954_v13, %v979_v4  ;;  %v408_v4 = vadd.f32 %v4887_v1, %v4779_v57 }
 0x3f1   :  { %v981_v54 = vadd.f32 %v3954_v13, %v980_v33  ;;  %v1018_v33 = vand.u32 2147483648, %v975_v17 }
 0x3f2   :  { %v3956_v8 = vpop.eup %3955 }
 0x3f3   :  { %v1008_v6 = vmul.f32 %v3956_v8, %v975_v17  ;;  %v985_v10 = vsel %vm984_vm11, %v3954_v13, %v981_v54  ;;  %vm1013_vm13 = vweird.f32 %v3956_v8 }
 0x3f4   :  { %v990_v23 = vsel %vm987_vm12, %v989_v11, %v985_v10  ;;  %vm1014_vm15 = vmor %vm1012_vm14, %vm1013_vm13 }
 0x3f5   :  { %v1009_v43 = vsub.f32 1.0, %v1008_v6  ;;  %v1060_v16 = vsub.f32 1.0, %v990_v23  ;;  %v1016_v6 = vand.u32 2147483647, %v975_v17 }
 0x3f7   :  { %v1010_v2 = vmul.f32 %v3956_v8, %v1009_v43  ;;  %v1058_v43 = vmul.f32 %v990_v23, %v4854_v36  ;;  %vm1017_vm1 = vcmp.eq.f32.partialorder %v1016_v6, 8.507059e+37  ;;  %v4939_v23 = vld [vmem:[#allocation13 + $0x38] sm:$0xff] }
 0x3f9   :  { %v1011_v41 = vadd.f32 %v3956_v8, %v1010_v2 }
 0x3fb   :  { %v1015_v54 = vsel %vm1014_vm15, %v3956_v8, %v1011_v41  ;;  %v4947_v41 = vld [vmem:[#allocation13 + $0x28] sm:$0xff] }
 0x432   :  { %v1049_v42 = vpop.f32.mrf.mxu0 }
 0x433   :  { %v1054_v52 = vadd.f32 %v1049_v42, %v406_v20  ;;  %v1019_v20 = vor.u32 1.1754944e-38, %v1018_v33  ;;  %v4955_v33 = vld [vmem:[#allocation13 + $0x18] sm:$0xff] }
 0x435   :  { %3957 = vtanh.f32 %v1054_v52  ;;  %v1020_v63 = vsel %vm1017_vm1, %v1019_v20, %v1015_v54 }
 0x436   :  { %v1061_v42 = vsub.f32 1.0, %v1020_v63  ;;  %v1059_v52 = vmul.f32 %v1020_v63, %v4857_v46  ;;  %v4943_v46 = vld [vmem:[#allocation13 + $0x30] sm:$0xff] }
 0x43a   :  { %v1051_v3 = vpop.f32.mrf.mxu0 }
 0x43b   :  { %v3958_v14 = vpop.eup %3957  ;;  %v1055_v38 = vadd.f32 %v1051_v3, %v408_v4  ;;  %v4951_v4 = vld [vmem:[#allocation13 + $0x20] sm:$0xff] }
 0x43c   :  { %v1062_v13 = vmul.f32 %v3958_v14, %v1060_v16  ;;  %v362_v16 = vadd.f32 %v4847_v35, %v4695_v24 }
 0x43d   :  { %3959 = vtanh.f32 %v1055_v38 }
 0x43e   :  { %v4928_v56 = vadd.f32 %v1062_v13, %v1058_v43 }
 0x440   :  { %v1066_v3 = vpack.c.bf16 %v4928_v56, %v4928_v56 }
 0x442   :  { %v1080_v8 = vunpack.c.l.b16 %v1066_v3 }
 0x443   :  { %v3960_v1 = vpop.eup %3959 }
 0x444   :  { %v1063_v2 = vmul.f32 %v3960_v1, %v1061_v42 }
 0x446   :  { %v4931_v17 = vadd.f32 %v1063_v2, %v1059_v52 }
 0x448   :  { %v3854_v36 = vpack.c.bf16 %v4931_v17, %v4928_v56  ;;  %v1067_v38 = vpack.c.bf16 %v4931_v17, %v4931_v17 }
 0x44a   :  { %3855 = vst [vmem:[#allocation4 + $0x18] sm:$0xff] %v3854_v36   ;;  %v1081_v10 = vunpack.c.l.b16 %v1067_v38 }
 0x44c   :  { %v1082_v11 = vpack.c.b16 %v1081_v10, %v1080_v8 }
 0x44e   :  { %1092 = vmatmul.bf16.vlgmr.msra.gmra.mxu1 %v1082_v11  ;;  %1106 = vmatmul.bf16.vlgmr.msrb.gmra.mxu2 %v1082_v11 }
 0x44f   :  { %1505 = vmatpush.bf16.msra.mxu1 %v4939_v23  ;;  %1549 = vmatpush.bf16.msrb.mxu2 %v4556_v7 }
 0x453   :  { %1506 = vmatpush.bf16.msra.mxu1 %v4943_v46  ;;  %1550 = vmatpush.bf16.msrb.mxu2 %v4559_v9 }
 0x457   :  { %1507 = vmatpush.bf16.msra.mxu1 %v4947_v41  ;;  %1551 = vmatpush.bf16.msrb.mxu2 %v4564_v12 }
 0x45b   :  { %1508 = vmatpush.bf16.msra.mxu1 %v4951_v4  ;;  %1552 = vmatpush.bf16.msrb.mxu2 %v4567_v15 }
 0x45f   :  { %1509 = vmatpush.bf16.msra.mxu1 %v4955_v33  ;;  %1553 = vmatpush.bf16.msrb.mxu2 %v4570_v18 }
 0x463   :  { %1510 = vmatpush.bf16.msra.mxu1 %v4701_v27  ;;  %1554 = vmatpush.bf16.msrb.mxu2 %v4575_v22  ;;  %v364_v27 = vadd.f32 %v4849_v5, %v4695_v24 }
 0x467   :  { %1511 = vmatpush.bf16.msra.mxu1 %v4705_v29  ;;  %1555 = vmatpush.bf16.msrb.mxu2 %v4580_v25 }
 0x46b   :  { %1512 = vmatpush.bf16.msra.mxu1 %v4711_v37  ;;  %1556 = vmatpush.bf16.msrb.mxu2 %v4583_v30 }
 0x4d1   :  { %v1107_v6 = vpop.f32.mrf.mxu2 }
 0x4d2   :  { %v1113_v14 = vadd.f32 %v1107_v6, %v362_v16 }
 0x4d4   :  { %v3475_v43 = vmul.f32 -1.442695, %v1113_v14 }
 0x4d6   :  { %3961 = vpow2.f32 %v3475_v43 }
 0x4d9   :  { %v1109_v13 = vpop.f32.mrf.mxu2 }
 0x4da   :  { %v1115_v54 = vadd.f32 %v1109_v13, %v364_v27 }
 0x4dc   :  { %v3962_v20 = vpop.eup %3961  ;;  %v3477_v29 = vmul.f32 -1.442695, %v1115_v54 }
 0x4dd   :  { %v1129_v63 = vadd.f32 1.0, %v3962_v20 }
 0x4de   :  { %3963 = vpow2.f32 %v3477_v29 }
 0x4df   :  { %3965 = vrcp.f32 %v1129_v63  ;;  %v1158_v8 = vand.u32 2147483648, %v1129_v63  ;;  %vm1152_vm2 = vweird.f32 %v1129_v63  ;;  %v1156_v10 = vand.u32 2147483647, %v1129_v63 }
 0x4e1   :  { %v1159_v43 = vor.u32 1.1754944e-38, %v1158_v8  ;;  %vm1157_vm6 = vcmp.eq.f32.partialorder %v1156_v10, 8.507059e+37 }
 0x4e4   :  { %v3964_v37 = vpop.eup %3963 }
 0x4e5   :  { %v3966_v42 = vpop.eup %3965  ;;  %v1131_v1 = vadd.f32 1.0, %v3964_v37 }
 0x4e6   :  { %v1148_v52 = vmul.f32 %v3966_v42, %v1129_v63  ;;  %vm1153_vm0 = vweird.f32 %v3966_v42 }
 0x4e7   :  { %3967 = vrcp.f32 %v1131_v1  ;;  %vm1154_vm3 = vmor %vm1152_vm2, %vm1153_vm0  ;;  %v1188_v11 = vand.u32 2147483648, %v1131_v1  ;;  %v1186_v14 = vand.u32 2147483647, %v1131_v1  ;;  %vm1182_vm5 = vweird.f32 %v1131_v1 }
 0x4e8   :  { %v1149_v35 = vsub.f32 1.0, %v1148_v52 }
 0x4e9   :  { %v1189_v54 = vor.u32 1.1754944e-38, %v1188_v11  ;;  %vm1187_vm8 = vcmp.eq.f32.partialorder %v1186_v14, 8.507059e+37 }
 0x4ea   :  { %v1150_v2 = vmul.f32 %v3966_v42, %v1149_v35 }
 0x4ec   :  { %v1151_v38 = vadd.f32 %v3966_v42, %v1150_v2 }
 0x4ed   :  { %v3968_v3 = vpop.eup %3967 }
 0x4ee   :  { %v1178_v36 = vmul.f32 %v3968_v3, %v1131_v1  ;;  %v1155_v6 = vsel %vm1154_vm3, %v3966_v42, %v1151_v38  ;;  %vm1183_vm4 = vweird.f32 %v3968_v3  ;;  %v1093_v42 = vpop.f32.mrf.mxu1  ;;  %v313_v1 = vadd.f32 %v4823_v26, %v4759_v59 }
 0x4ef   :  { %v1160_v13 = vsel %vm1157_vm6, %v1159_v43, %v1155_v6  ;;  %vm1184_vm7 = vmor %vm1182_vm5, %vm1183_vm4 }
 0x4f0   :  { %v1179_v5 = vsub.f32 1.0, %v1178_v36  ;;  %v1192_v37 = vmul.f32 %v1160_v13, %v4928_v56  ;;  %v1112_v35 = vadd.f32 %v1093_v42, %v313_v1  ;;  %v315_v36 = vadd.f32 %v4825_v28, %v4759_v59 }
 0x4f1   :  { %v411_v28 = vadd.f32 %v4889_v0, %v4779_v57 }
 0x4f2   :  { %v1180_v16 = vmul.f32 %v3968_v3, %v1179_v5  ;;  %v3474_v2 = vmul.f32 -1.442695, %v1112_v35 }
 0x4f4   :  { %v1181_v27 = vadd.f32 %v3968_v3, %v1180_v16  ;;  %3969 = vpow2.f32 %v3474_v2 }
 0x4f6   :  { %v1185_v20 = vsel %vm1184_vm7, %v3968_v3, %v1181_v27  ;;  %v1095_v3 = vpop.f32.mrf.mxu1 }
 0x4f7   :  { %v1190_v29 = vsel %vm1187_vm8, %v1189_v54, %v1185_v20  ;;  %v1114_v38 = vadd.f32 %v1095_v3, %v315_v36  ;;  %v413_v36 = vadd.f32 %v4891_v21, %v4779_v57 }
 0x4f8   :  { %v1193_v63 = vmul.f32 %v1190_v29, %v4931_v17 }
 0x4f9   :  { %v3476_v8 = vmul.f32 -1.442695, %v1114_v38 }
 0x4fa   :  { %v1194_v52 = vpack.c.bf16 %v1193_v63, %v1192_v37  ;;  %v3970_v5 = vpop.eup %3969 }
 0x4fb   :  { %3971 = vpow2.f32 %v3476_v8  ;;  %v1128_v10 = vadd.f32 1.0, %v3970_v5 }
 0x4fc   :  { %1203 = vmatmul.bf16.vlgmr.msra.gmra.mxu3 %v1194_v52 }
 0x4fd   :  { %1563 = vmatpush.bf16.msra.mxu3 %v4585_v31  ;;  %3973 = vrcp.f32 %v1128_v10  ;;  %v1143_v29 = vand.u32 2147483648, %v1128_v10  ;;  %vm1137_vm10 = vweird.f32 %v1128_v10  ;;  %v1141_v37 = vand.u32 2147483647, %v1128_v10 }
 0x4ff   :  { %v1144_v35 = vor.u32 1.1754944e-38, %v1143_v29  ;;  %vm1142_vm12 = vcmp.eq.f32.partialorder %v1141_v37, 8.507059e+37 }
 0x501   :  { %1564 = vmatpush.bf16.msra.mxu3 %v4589_v34  ;;  %v3972_v11 = vpop.eup %3971 }
 0x502   :  { %v1130_v16 = vadd.f32 1.0, %v3972_v11 }
 0x503   :  { %v3974_v6 = vpop.eup %3973 }
 0x504   :  { %3975 = vrcp.f32 %v1130_v16  ;;  %v1133_v14 = vmul.f32 %v3974_v6, %v1128_v10  ;;  %vm1138_vm9 = vweird.f32 %v3974_v6  ;;  %v1173_v38 = vand.u32 2147483648, %v1130_v16 }
 0x505   :  { %1565 = vmatpush.bf16.msra.mxu3 %v4594_v40  ;;  %vm1139_vm11 = vmor %vm1137_vm10, %vm1138_vm9  ;;  %vm1167_vm14 = vweird.f32 %v1130_v16  ;;  %v1171_v0 = vand.u32 2147483647, %v1130_v16 }
 0x506   :  { %v1134_v43 = vsub.f32 1.0, %v1133_v14 }
 0x507   :  { %vm1172_vm1 = vcmp.eq.f32.partialorder %v1171_v0, 8.507059e+37 }
 0x508   :  { %v1135_v27 = vmul.f32 %v3974_v6, %v1134_v43 }
 0x509   :  { %1566 = vmatpush.bf16.msra.mxu3 %v4601_v45 }
 0x50a   :  { %v3976_v26 = vpop.eup %3975  ;;  %v1136_v20 = vadd.f32 %v3974_v6, %v1135_v27  ;;  %v1174_v27 = vor.u32 1.1754944e-38, %v1173_v38 }
 0x50b   :  { %v1163_v13 = vmul.f32 %v3976_v26, %v1130_v16  ;;  %vm1168_vm13 = vweird.f32 %v3976_v26 }
 0x50c   :  { %v1140_v1 = vsel %vm1139_vm11, %v3974_v6, %v1136_v20  ;;  %vm1169_vm15 = vmor %vm1167_vm14, %vm1168_vm13 }
 0x50d   :  { %1567 = vmatpush.bf16.msra.mxu3 %v4608_v48  ;;  %v1164_v54 = vsub.f32 1.0, %v1163_v13  ;;  %v1145_v2 = vsel %vm1142_vm12, %v1144_v35, %v1140_v1 }
 0x50e   :  { %v1215_v8 = vsub.f32 1.0, %v1145_v2  ;;  %v1213_v14 = vmul.f32 %v1145_v2, %v4928_v56 }
 0x50f   :  { %v1165_v42 = vmul.f32 %v3976_v26, %v1164_v54 }
 0x511   :  { %1568 = vmatpush.bf16.msra.mxu3 %v4612_v51  ;;  %v1166_v3 = vadd.f32 %v3976_v26, %v1165_v42 }
 0x513   :  { %v1170_v43 = vsel %vm1169_vm15, %v3976_v26, %v1166_v3 }
 0x514   :  { %v1175_v54 = vsel %vm1172_vm1, %v1174_v27, %v1170_v43 }
 0x515   :  { %1569 = vmatpush.bf16.msra.mxu3 %v4618_v55  ;;  %v1216_v20 = vsub.f32 1.0, %v1175_v54 }
 0x519   :  { %1570 = vmatpush.bf16.msra.mxu3 %v4624_v58 }
 0x57f   :  { %v1204_v63 = vpop.f32.mrf.mxu3 }
 0x580   :  { %v1209_v52 = vadd.f32 %v1204_v63, %v411_v28  ;;  %v1214_v28 = vmul.f32 %v1175_v54, %v4931_v17  ;;  %v5009_v17 = vld [vmem:[#allocation13 + $0x10] sm:$0xff] }
 0x582   :  { %3977 = vtanh.f32 %v1209_v52 }
 0x587   :  { %v1206_v5 = vpop.f32.mrf.mxu3 }
 0x588   :  { %v3978_v10 = vpop.eup %3977  ;;  %v1210_v11 = vadd.f32 %v1206_v5, %v413_v36 }
 0x589   :  { %v1217_v6 = vmul.f32 %v3978_v10, %v1215_v8 }
 0x58a   :  { %3979 = vtanh.f32 %v1210_v11 }
 0x58b   :  { %v4988_v13 = vadd.f32 %v1217_v6, %v1213_v14 }
 0x58d   :  { %v1221_v37 = vpack.c.bf16 %v4988_v13, %v4988_v13 }
 0x58f   :  { %v1235_v63 = vunpack.c.l.b16 %v1221_v37 }
 0x590   :  { %v3980_v21 = vpop.eup %3979 }
 0x591   :  { %v1218_v29 = vmul.f32 %v3980_v21, %v1216_v20 }
 0x593   :  { %v4991_v16 = vadd.f32 %v1218_v29, %v1214_v28 }
 0x595   :  { %v3859_v56 = vpack.c.bf16 %v4991_v16, %v4988_v13  ;;  %v1222_v26 = vpack.c.bf16 %v4991_v16, %v4991_v16 }
 0x597   :  { %3860 = vst [vmem:[#allocation4 + $0x10] sm:$0xff] %v3859_v56   ;;  %v1236_v52 = vunpack.c.l.b16 %v1222_v26 }
 0x599   :  { %v1237_v42 = vpack.c.b16 %v1236_v52, %v1235_v63 }
 0x59b   :  { %1247 = vmatmul.bf16.vlgmr.msrb.gmra.mxu0 %v1237_v42  ;;  %1261 = vmatmul.bf16.vlgmr.msrb.gmra.mxu1 %v1237_v42 }
 0x59c   :  { %1660 = vmatpush.bf16.msrb.mxu0 %v4939_v23  ;;  %1704 = vmatpush.bf16.msrb.mxu1 %v4556_v7  ;;  %v5013_v7 = vld [vmem:[#allocation13 + $0x8] sm:$0xff] }
 0x5a0   :  { %1661 = vmatpush.bf16.msrb.mxu0 %v4943_v46  ;;  %1705 = vmatpush.bf16.msrb.mxu1 %v4559_v9  ;;  %v5017_v9 = vld [vmem:[#allocation13] sm:$0xff] }
 0x5a4   :  { %1662 = vmatpush.bf16.msrb.mxu0 %v4947_v41  ;;  %1706 = vmatpush.bf16.msrb.mxu1 %v4564_v12  ;;  %v367_v12 = vadd.f32 %v4636_v60, %v4695_v24 }
 0x5a8   :  { %1663 = vmatpush.bf16.msrb.mxu0 %v4951_v4  ;;  %1707 = vmatpush.bf16.msrb.mxu1 %v4567_v15 }
 0x5ac   :  { %1664 = vmatpush.bf16.msrb.mxu0 %v4955_v33  ;;  %1708 = vmatpush.bf16.msrb.mxu1 %v4570_v18 }
 0x5b0   :  { %1665 = vmatpush.bf16.msrb.mxu0 %v5009_v17  ;;  %1709 = vmatpush.bf16.msrb.mxu1 %v4575_v22  ;;  %v369_v22 = vadd.f32 %v4638_v61, %v4695_v24 }
 0x5b4   :  { %1666 = vmatpush.bf16.msrb.mxu0 %v5013_v7  ;;  %1710 = vmatpush.bf16.msrb.mxu1 %v4580_v25 }
 0x5b8   :  { %1667 = vmatpush.bf16.msrb.mxu0 %v5017_v9  ;;  %1711 = vmatpush.bf16.msrb.mxu1 %v4583_v30 }
 0x618   :  { %v1262_v15 = vpop.f32.mrf.mxu1 }
 0x619   :  { %v1268_v18 = vadd.f32 %v1262_v15, %v367_v12  ;;  %v1248_v15 = vpop.f32.mrf.mxu0 }
 0x61b   :  { %v3479_v1 = vmul.f32 -1.442695, %v1268_v18  ;;  %v318_v18 = vadd.f32 %v4750_v50, %v4759_v59 }
 0x61d   :  { %3981 = vpow2.f32 %v3479_v1  ;;  %v1267_v1 = vadd.f32 %v1248_v15, %v318_v18 }
 0x620   :  { %v1264_v35 = vpop.f32.mrf.mxu1 }
 0x621   :  { %v1270_v2 = vadd.f32 %v1264_v35, %v369_v22  ;;  %v1250_v22 = vpop.f32.mrf.mxu0 }
 0x623   :  { %v3982_v3 = vpop.eup %3981  ;;  %v3481_v25 = vmul.f32 -1.442695, %v1270_v2 }
 0x624   :  { %v1284_v36 = vadd.f32 1.0, %v3982_v3 }
 0x626   :  { %3983 = vrcp.f32 %v1284_v36  ;;  %v1313_v6 = vand.u32 2147483648, %v1284_v36  ;;  %vm1307_vm2 = vweird.f32 %v1284_v36  ;;  %v1311_v61 = vand.u32 2147483647, %v1284_v36 }
 0x627   :  { %3985 = vpow2.f32 %v3481_v25 }
 0x628   :  { %v1314_v28 = vor.u32 1.1754944e-38, %v1313_v6  ;;  %vm1312_vm5 = vcmp.eq.f32.partialorder %v1311_v61, 8.507059e+37 }
 0x62c   :  { %v3984_v38 = vpop.eup %3983 }
 0x62d   :  { %v3986_v8 = vpop.eup %3985  ;;  %v1303_v30 = vmul.f32 %v3984_v38, %v1284_v36  ;;  %vm1308_vm0 = vweird.f32 %v3984_v38 }
 0x62e   :  { %v1286_v0 = vadd.f32 1.0, %v3986_v8  ;;  %vm1309_vm3 = vmor %vm1307_vm2, %vm1308_vm0 }
 0x62f   :  { %v1304_v5 = vsub.f32 1.0, %v1303_v30 }
 0x630   :  { %3987 = vrcp.f32 %v1286_v0  ;;  %v1343_v27 = vand.u32 2147483648, %v1286_v0  ;;  %v1341_v20 = vand.u32 2147483647, %v1286_v0  ;;  %vm1337_vm6 = vweird.f32 %v1286_v0 }
 0x631   :  { %v1305_v60 = vmul.f32 %v3984_v38, %v1304_v5 }
 0x632   :  { %v1344_v37 = vor.u32 1.1754944e-38, %v1343_v27  ;;  %vm1342_vm8 = vcmp.eq.f32.partialorder %v1341_v20, 8.507059e+37 }
 0x633   :  { %v1306_v11 = vadd.f32 %v3984_v38, %v1305_v60 }
 0x635   :  { %v1310_v21 = vsel %vm1309_vm3, %v3984_v38, %v1306_v11 }
 0x636   :  { %v3988_v10 = vpop.eup %3987  ;;  %v1315_v56 = vsel %vm1312_vm5, %v1314_v28, %v1310_v21 }
 0x637   :  { %v1333_v14 = vmul.f32 %v3988_v10, %v1286_v0  ;;  %vm1338_vm4 = vweird.f32 %v3988_v10  ;;  %v1347_v52 = vmul.f32 %v1315_v56, %v4988_v13 }
 0x638   :  { %vm1339_vm7 = vmor %vm1337_vm6, %vm1338_vm4 }
 0x639   :  { %v1334_v43 = vsub.f32 1.0, %v1333_v14 }
 0x63b   :  { %v1335_v54 = vmul.f32 %v3988_v10, %v1334_v43  ;;  %v418_v43 = vadd.f32 %v4899_v44, %v4779_v57 }
 0x63d   :  { %v1336_v29 = vadd.f32 %v3988_v10, %v1335_v54 }
 0x63f   :  { %v1340_v26 = vsel %vm1339_vm7, %v3988_v10, %v1336_v29 }
 0x640   :  { %v1345_v63 = vsel %vm1342_vm8, %v1344_v37, %v1340_v26 }
 0x641   :  { %v1348_v42 = vmul.f32 %v1345_v63, %v4991_v16 }
 0x643   :  { %v1349_v12 = vpack.c.bf16 %v1348_v42, %v1347_v52 }
 0x645   :  { %1358 = vmatmul.bf16.vlgmr.msra.gmra.mxu2 %v1349_v12 }
 0x646   :  { %1718 = vmatpush.bf16.msra.mxu2 %v4585_v31  ;;  %v3478_v31 = vmul.f32 -1.442695, %v1267_v1 }
 0x648   :  { %3989 = vpow2.f32 %v3478_v31 }
 0x64a   :  { %1719 = vmatpush.bf16.msra.mxu2 %v4589_v34  ;;  %v320_v34 = vadd.f32 %v4752_v53, %v4759_v59  ;;  %v416_v53 = vadd.f32 %v4893_v39, %v4779_v57 }
 0x64e   :  { %1720 = vmatpush.bf16.msra.mxu2 %v4594_v40  ;;  %v1269_v40 = vadd.f32 %v1250_v22, %v320_v34 }
 0x652   :  { %1721 = vmatpush.bf16.msra.mxu2 %v4601_v45  ;;  %v3480_v45 = vmul.f32 -1.442695, %v1269_v40 }
 0x654   :  { %3991 = vpow2.f32 %v3480_v45 }
 0x656   :  { %1722 = vmatpush.bf16.msra.mxu2 %v4608_v48  ;;  %v3990_v48 = vpop.eup %3989 }
 0x65a   :  { %1723 = vmatpush.bf16.msra.mxu2 %v4612_v51  ;;  %v1283_v51 = vadd.f32 1.0, %v3990_v48 }
 0x65c   :  { %3993 = vrcp.f32 %v1283_v51  ;;  %v1298_v30 = vand.u32 2147483648, %v1283_v51  ;;  %vm1292_vm10 = vweird.f32 %v1283_v51  ;;  %v1296_v0 = vand.u32 2147483647, %v1283_v51 }
 0x65e   :  { %1724 = vmatpush.bf16.msra.mxu2 %v4618_v55  ;;  %v3992_v55 = vpop.eup %3991  ;;  %v1299_v14 = vor.u32 1.1754944e-38, %v1298_v30  ;;  %vm1297_vm12 = vcmp.eq.f32.partialorder %v1296_v0, 8.507059e+37 }
 0x65f   :  { %v1285_v35 = vadd.f32 1.0, %v3992_v55 }
 0x661   :  { %3995 = vrcp.f32 %v1285_v35  ;;  %v1328_v27 = vand.u32 2147483648, %v1285_v35  ;;  %vm1322_vm14 = vweird.f32 %v1285_v35  ;;  %v1326_v39 = vand.u32 2147483647, %v1285_v35 }
 0x662   :  { %1725 = vmatpush.bf16.msra.mxu2 %v4624_v58  ;;  %v3994_v58 = vpop.eup %3993 }
 0x663   :  { %v1288_v2 = vmul.f32 %v3994_v58, %v1283_v51  ;;  %vm1293_vm9 = vweird.f32 %v3994_v58  ;;  %v1329_v26 = vor.u32 1.1754944e-38, %v1328_v27  ;;  %vm1327_vm1 = vcmp.eq.f32.partialorder %v1326_v39, 8.507059e+37 }
 0x664   :  { %vm1294_vm11 = vmor %vm1292_vm10, %vm1293_vm9 }
 0x665   :  { %v1289_v3 = vsub.f32 1.0, %v1288_v2 }
 0x667   :  { %v3996_v50 = vpop.eup %3995  ;;  %v1290_v25 = vmul.f32 %v3994_v58, %v1289_v3 }
 0x668   :  { %v1318_v36 = vmul.f32 %v3996_v50, %v1285_v35  ;;  %vm1323_vm13 = vweird.f32 %v3996_v50 }
 0x669   :  { %v1291_v8 = vadd.f32 %v3994_v58, %v1290_v25  ;;  %vm1324_vm15 = vmor %vm1322_vm14, %vm1323_vm13 }
 0x66a   :  { %v1319_v38 = vsub.f32 1.0, %v1318_v36 }
 0x66b   :  { %v1295_v11 = vsel %vm1294_vm11, %v3994_v58, %v1291_v8 }
 0x66c   :  { %v1320_v10 = vmul.f32 %v3996_v50, %v1319_v38  ;;  %v1300_v6 = vsel %vm1297_vm12, %v1299_v14, %v1295_v11 }
 0x66d   :  { %v1370_v54 = vsub.f32 1.0, %v1300_v6  ;;  %v1368_v29 = vmul.f32 %v1300_v6, %v4988_v13 }
 0x66e   :  { %v1321_v61 = vadd.f32 %v3996_v50, %v1320_v10 }
 0x670   :  { %v1325_v56 = vsel %vm1324_vm15, %v3996_v50, %v1321_v61 }
 0x671   :  { %v1330_v52 = vsel %vm1327_vm1, %v1329_v26, %v1325_v56  ;;  %v6290_v56 = vld [vmem:[#allocation29_spill] sm:$0xff] }
 0x672   :  { %v1371_v42 = vsub.f32 1.0, %v1330_v52  ;;  %v1369_v12 = vmul.f32 %v1330_v52, %v4991_v16  ;;  %v372_v16 = vadd.f32 %v4640_v62, %v4695_v24  ;;  %v325_v26 = vadd.f32 %v6290_v56, %v4759_v59 }
 0x6c8   :  { %v1359_v5 = vpop.f32.mrf.mxu2 }
 0x6c9   :  { %v1364_v60 = vadd.f32 %v1359_v5, %v416_v53 }
 0x6cb   :  { %3997 = vtanh.f32 %v1364_v60 }
 0x6d0   :  { %v1361_v20 = vpop.f32.mrf.mxu2 }
 0x6d1   :  { %v3998_v21 = vpop.eup %3997  ;;  %v1365_v28 = vadd.f32 %v1361_v20, %v418_v43  ;;  %v6289_v20 = vld [vmem:[#allocation28_spill] sm:$0xff] }
 0x6d2   :  { %v1372_v37 = vmul.f32 %v3998_v21, %v1370_v54  ;;  %v323_v21 = vadd.f32 %v6289_v20, %v4759_v59 }
 0x6d3   :  { %3999 = vtanh.f32 %v1365_v28 }
 0x6d4   :  { %v5044_v63 = vadd.f32 %v1372_v37, %v1368_v29 }
 0x6d6   :  { %v1376_v1 = vpack.c.bf16 %v5044_v63, %v5044_v63 }
 0x6d8   :  { %v1390_v22 = vunpack.c.l.b16 %v1376_v1 }
 0x6d9   :  { %v4000_v44 = vpop.eup %3999 }
 0x6da   :  { %v1373_v15 = vmul.f32 %v4000_v44, %v1371_v42 }
 0x6dc   :  { %v5047_v18 = vadd.f32 %v1373_v15, %v1369_v12 }
 0x6de   :  { %v3864_v13 = vpack.c.bf16 %v5047_v18, %v5044_v63  ;;  %v1377_v31 = vpack.c.bf16 %v5047_v18, %v5047_v18 }
 0x6e0   :  { %3865 = vst [vmem:[#allocation4 + $0x8] sm:$0xff] %v3864_v13   ;;  %v1391_v34 = vunpack.c.l.b16 %v1377_v31 }
 0x6e2   :  { %v1392_v40 = vpack.c.b16 %v1391_v34, %v1390_v22 }
 0x6e4   :  { %1402 = vmatmul.bf16.vlgmr.msrb.gmra.mxu3 %v1392_v40  ;;  %1416 = vmatmul.bf16.vlgmr.msra.gmra.mxu0 %v1392_v40 }
 0x6e5   :  { %1815 = vmatpush.bf16.msrb.mxu3 %v4939_v23 }
 0x6e9   :  { %1816 = vmatpush.bf16.msrb.mxu3 %v4943_v46  ;;  %v6288_v46 = vld [vmem:[#allocation23_spill] sm:$0xff] }
 0x6ed   :  { %1817 = vmatpush.bf16.msrb.mxu3 %v4947_v41  ;;  %v374_v41 = vadd.f32 %v6288_v46, %v4695_v24 }
 0x6f1   :  { %1818 = vmatpush.bf16.msrb.mxu3 %v4951_v4 }
 0x6f5   :  { %1819 = vmatpush.bf16.msrb.mxu3 %v4955_v33 }
 0x6f9   :  { %1820 = vmatpush.bf16.msrb.mxu3 %v5009_v17 }
 0x6fd   :  { %1821 = vmatpush.bf16.msrb.mxu3 %v5013_v7 }
 0x701   :  { %1822 = vmatpush.bf16.msrb.mxu3 %v5017_v9 }
 0x761   :  { %v1417_v45 = vpop.f32.mrf.mxu0 }
 0x762   :  { %v1423_v48 = vadd.f32 %v1417_v45, %v372_v16 }
 0x764   :  { %v3483_v23 = vmul.f32 -1.442695, %v1423_v48 }
 0x766   :  { %4001 = vpow2.f32 %v3483_v23  ;;  %v421_v23 = vadd.f32 %v4903_v19, %v4779_v57 }
 0x767   :  { %v1403_v39 = vpop.f32.mrf.mxu3 }
 0x768   :  { %v1422_v28 = vadd.f32 %v1403_v39, %v323_v21  ;;  %v6291_v39 = vld [vmem:[#allocation24_spill] sm:$0xff] }
 0x769   :  { %v1419_v51 = vpop.f32.mrf.mxu0  ;;  %v377_v20 = vadd.f32 %v6291_v39, %v4695_v24 }
 0x76a   :  { %v1425_v4 = vadd.f32 %v1419_v51, %v374_v41  ;;  %v3482_v29 = vmul.f32 -1.442695, %v1422_v28  ;;  %v3624_v28 = vld [vmem:[#allocation14 + $0xc0] sm:$0xf] }
 0x76c   :  { %v4002_v55 = vpop.eup %4001  ;;  %v3485_v33 = vmul.f32 -1.442695, %v1425_v4 }
 0x76d   :  { %v1439_v35 = vadd.f32 1.0, %v4002_v55 }
 0x76e   :  { %4003 = vpow2.f32 %v3485_v33 }
 0x76f   :  { %4005 = vrcp.f32 %v1439_v35  ;;  %v1468_v36 = vand.u32 2147483648, %v1439_v35  ;;  %vm1462_vm2 = vweird.f32 %v1439_v35  ;;  %v1466_v8 = vand.u32 2147483647, %v1439_v35  ;;  %v1405_v37 = vpop.f32.mrf.mxu3 }
 0x770   :  { %v1424_v52 = vadd.f32 %v1405_v37, %v325_v26 }
 0x771   :  { %v1469_v60 = vor.u32 1.1754944e-38, %v1468_v36  ;;  %vm1467_vm5 = vcmp.eq.f32.partialorder %v1466_v8, 8.507059e+37 }
 0x772   :  { %v3484_v42 = vmul.f32 -1.442695, %v1424_v52  ;;  %v3608_v52 = vld [vmem:[#allocation14 + $0xa0] sm:$0xf] }
 0x774   :  { %v4004_v17 = vpop.eup %4003 }
 0x775   :  { %v4006_v7 = vpop.eup %4005  ;;  %v1441_v9 = vadd.f32 1.0, %v4004_v17 }
 0x776   :  { %v1458_v58 = vmul.f32 %v4006_v7, %v1439_v35  ;;  %vm1463_vm0 = vweird.f32 %v4006_v7 }
 0x777   :  { %4007 = vrcp.f32 %v1441_v9  ;;  %vm1464_vm3 = vmor %vm1462_vm2, %vm1463_vm0  ;;  %v1498_v53 = vand.u32 2147483648, %v1441_v9  ;;  %v1496_v5 = vand.u32 2147483647, %v1441_v9  ;;  %vm1492_vm6 = vweird.f32 %v1441_v9 }
 0x778   :  { %v1459_v62 = vsub.f32 1.0, %v1458_v58  ;;  %4009 = vpow2.f32 %v3482_v29  ;;  %v3819_v29 = vld [vmem:[#allocation14 + $0xcc] sm:$0xf0] }
 0x779   :  { %v1499_v14 = vor.u32 1.1754944e-38, %v1498_v53  ;;  %vm1497_vm8 = vcmp.eq.f32.partialorder %v1496_v5, 8.507059e+37  ;;  %4011 = vpow2.f32 %v3484_v42  ;;  %v3625_v56 = vor.u32 %v3819_v29, %v3624_v28  ;;  %v3815_v42 = vld [vmem:[#allocation14 + $0xac] sm:$0xf0]  ;;  %v5101_v28 = vld [vmem:[#allocation4 + $0x18] sm:$0xff]  ;;  %v5104_v29 = vld [vmem:[#allocation4 + $0x10] sm:$0xff] }
 0x77a   :  { %v1460_v2 = vmul.f32 %v4006_v7, %v1459_v62 }
 0x77c   :  { %v1461_v25 = vadd.f32 %v4006_v7, %v1460_v2 }
 0x77d   :  { %v4008_v3 = vpop.eup %4007 }
 0x77e   :  { %v1488_v50 = vmul.f32 %v4008_v3, %v1441_v9  ;;  %v1465_v30 = vsel %vm1464_vm3, %v4006_v7, %v1461_v25  ;;  %vm1493_vm4 = vweird.f32 %v4008_v3  ;;  %v4010_v44 = vpop.eup %4009  ;;  %v423_v9 = vadd.f32 %v4908_v47, %v4779_v57 }
 0x77f   :  { %v1470_v11 = vsel %vm1467_vm5, %v1469_v60, %v1465_v30  ;;  %vm1494_vm7 = vmor %vm1492_vm6, %vm1493_vm4  ;;  %v1438_v12 = vadd.f32 1.0, %v4010_v44  ;;  %v4012_v15 = vpop.eup %4011  ;;  %v3592_v44 = vld [vmem:[#allocation14 + $0x80] sm:$0xf] }
 0x780   :  { %v1489_v38 = vsub.f32 1.0, %v1488_v50  ;;  %v1502_v43 = vmul.f32 %v1470_v11, %v5044_v63  ;;  %v1440_v1 = vadd.f32 1.0, %v4012_v15  ;;  %v3811_v15 = vld [vmem:[#allocation14 + $0x8c] sm:$0xf0] }
 0x781   :  { %4013 = vrcp.f32 %v1438_v12  ;;  %v1453_v46 = vand.u32 2147483648, %v1438_v12  ;;  %vm1447_vm10 = vweird.f32 %v1438_v12  ;;  %v1451_v41 = vand.u32 2147483647, %v1438_v12 }
 0x782   :  { %v1490_v0 = vmul.f32 %v4008_v3, %v1489_v38  ;;  %4015 = vrcp.f32 %v1440_v1  ;;  %v1483_v58 = vand.u32 2147483648, %v1440_v1  ;;  %vm1477_vm14 = vweird.f32 %v1440_v1 }
 0x783   :  { %v1454_v35 = vor.u32 1.1754944e-38, %v1453_v46  ;;  %vm1452_vm12 = vcmp.eq.f32.partialorder %v1451_v41, 8.507059e+37  ;;  %v1481_v62 = vand.u32 2147483647, %v1440_v1  ;;  %v3560_v41 = vld [vmem:[#allocation14 + $0x40] sm:$0xf] }
 0x784   :  { %v1491_v10 = vadd.f32 %v4008_v3, %v1490_v0  ;;  %v1484_v8 = vor.u32 1.1754944e-38, %v1483_v58 }
 0x785   :  { %vm1482_vm1 = vcmp.eq.f32.partialorder %v1481_v62, 8.507059e+37 }
 0x786   :  { %v1495_v6 = vsel %vm1494_vm7, %v4008_v3, %v1491_v10 }
 0x787   :  { %v1500_v61 = vsel %vm1497_vm8, %v1499_v14, %v1495_v6  ;;  %v4014_v13 = vpop.eup %4013 }
 0x788   :  { %v1503_v27 = vmul.f32 %v1500_v61, %v5047_v18  ;;  %v1443_v31 = vmul.f32 %v4014_v13, %v1438_v12  ;;  %v4016_v34 = vpop.eup %4015  ;;  %vm1448_vm9 = vweird.f32 %v4014_v13  ;;  %v3609_v12 = vor.u32 %v3815_v42, %v3608_v52 }
 0x789   :  { %v1473_v16 = vmul.f32 %v4016_v34, %v1440_v1  ;;  %vm1449_vm11 = vmor %vm1447_vm10, %vm1448_vm9  ;;  %vm1478_vm13 = vweird.f32 %v4016_v34  ;;  %v6292_v1 = vld [vmem:[#allocation25_spill] sm:$0xff] }
 0x78a   :  { %v1504_v54 = vpack.c.bf16 %v1503_v27, %v1502_v43  ;;  %v1444_v22 = vsub.f32 1.0, %v1443_v31  ;;  %vm1479_vm15 = vmor %vm1477_vm14, %vm1478_vm13  ;;  %v3640_v27 = vld [vmem:[#allocation14 + $0xe0] sm:$0xf]  ;;  %v3593_v31 = vor.u32 %v3811_v15, %v3592_v44 }
 0x78b   :  { %v1474_v45 = vsub.f32 1.0, %v1473_v16  ;;  %v6294_v15 = vld [vmem:[#allocation31_spill] sm:$0xff] }
 0x78c   :  { %1513 = vmatmul.bf16.vlgmr.msra.gmra.mxu1 %v1504_v54  ;;  %v1445_v40 = vmul.f32 %v4014_v13, %v1444_v22 }
 0x78d   :  { %v1475_v55 = vmul.f32 %v4016_v34, %v1474_v45 }
 0x78e   :  { %v1446_v48 = vadd.f32 %v4014_v13, %v1445_v40 }
 0x78f   :  { %v1476_v7 = vadd.f32 %v4016_v34, %v1475_v55  ;;  %v3544_v55 = vld [vmem:[#allocation14 + $0x20] sm:$0xf] }
 0x790   :  { %v1450_v33 = vsel %vm1449_vm11, %v4014_v13, %v1446_v48  ;;  %v379_v13 = vadd.f32 %v6292_v1, %v4695_v24  ;;  %v3576_v48 = vld [vmem:[#allocation14 + $0x60] sm:$0xf]  ;;  %v330_v1 = vadd.f32 %v6294_v15, %v4759_v59 }
 0x791   :  { %v1455_v17 = vsel %vm1452_vm12, %v1454_v35, %v1450_v33  ;;  %v1480_v38 = vsel %vm1479_vm15, %v4016_v34, %v1476_v7  ;;  %v3799_v33 = vld [vmem:[#allocation14 + $0x2c] sm:$0xf0]  ;;  %v3528_v7 = vld [vmem:[#allocation14] sm:$0xf] }
 0x792   :  { %v1525_v19 = vsub.f32 1.0, %v1455_v17  ;;  %v1523_v25 = vmul.f32 %v1455_v17, %v5044_v63  ;;  %v1485_v30 = vsel %vm1482_vm1, %v1484_v8, %v1480_v38  ;;  %v3545_v35 = vor.u32 %v3799_v33, %v3544_v55  ;;  %v3817_v33 = vld [vmem:[#allocation14 + $0xc4] sm:$0xf] }
 0x793   :  { %v1526_v0 = vsub.f32 1.0, %v1485_v30  ;;  %v1524_v5 = vmul.f32 %v1485_v30, %v5047_v18  ;;  %v3823_v18 = vld [vmem:[#allocation14 + $0xec] sm:$0xf0] }
 0x794   :  { %v3641_v54 = vor.u32 %v3823_v18, %v3640_v27 }
 0x796   :  { %2114 = vmatpush.bf16.msra.mxu0 %v3641_v54 }
 0x79a   :  { %2115 = vmatpush.bf16.msra.mxu0 %v3625_v56  ;;  %v5107_v56 = vld [vmem:[#allocation4 + $0x8] sm:$0xff] }
 0x79e   :  { %2116 = vmatpush.bf16.msra.mxu0 %v3609_v12 }
 0x7a2   :  { %2117 = vmatpush.bf16.msra.mxu0 %v3593_v31 }
 0x809   :  { %v1514_v51 = vpop.f32.mrf.mxu1 }
 0x80a   :  { %v1519_v4 = vadd.f32 %v1514_v51, %v421_v23  ;;  %v3807_v23 = vld [vmem:[#allocation14 + $0x6c] sm:$0xf0] }
 0x80b   :  { %v3577_v46 = vor.u32 %v3807_v23, %v3576_v48  ;;  %v3803_v51 = vld [vmem:[#allocation14 + $0x4c] sm:$0xf0]  ;;  %v3642_v48 = vld [vmem:[#allocation14 + $0xf0] sm:$0xf0]  ;;  %v3648_v23 = vld [vmem:[#allocation14 + $0xe8] sm:$0xf] }
 0x80c   :  { %4017 = vtanh.f32 %v1519_v4  ;;  %v3561_v4 = vor.u32 %v3803_v51, %v3560_v41  ;;  %v3824_v41 = vld [vmem:[#allocation14 + $0xf4] sm:$0xf0] }
 0x80d   :  { %2118 = vmatpush.bf16.msra.mxu0 %v3577_v46 }
 0x811   :  { %v1516_v2 = vpop.f32.mrf.mxu1  ;;  %2119 = vmatpush.bf16.msra.mxu0 %v3561_v4  ;;  %v3649_v4 = vor.u32 %v3824_v41, %v3648_v23  ;;  %v3552_v41 = vld [vmem:[#allocation14 + $0x28] sm:$0xf] }
 0x812   :  { %v4018_v3 = vpop.eup %4017  ;;  %v1520_v50 = vadd.f32 %v1516_v2, %v423_v9  ;;  %v3795_v9 = vld [vmem:[#allocation14 + $0xc] sm:$0xf0] }
 0x813   :  { %v1527_v36 = vmul.f32 %v4018_v3, %v1525_v19  ;;  %v3529_v3 = vor.u32 %v3795_v9, %v3528_v7  ;;  %v3632_v7 = vld [vmem:[#allocation14 + $0xc8] sm:$0xf]  ;;  %v3820_v9 = vld [vmem:[#allocation14 + $0xd4] sm:$0xf0] }
 0x814   :  { %4019 = vtanh.f32 %v1520_v50 }
 0x815   :  { %v5078_v53 = vadd.f32 %v1527_v36, %v1523_v25  ;;  %2120 = vmatpush.bf16.msra.mxu0 %v3545_v35  ;;  %v3626_v35 = vld [vmem:[#allocation14 + $0xd0] sm:$0xf0] }
 0x817   :  { %v1531_v11 = vpack.c.bf16 %v5078_v53, %v5078_v53 }
 0x819   :  { %v1545_v6 = vunpack.c.l.b16 %v1531_v11  ;;  %2121 = vmatpush.bf16.msra.mxu0 %v3529_v3  ;;  %v3616_v3 = vld [vmem:[#allocation14 + $0xa8] sm:$0xf] }
 0x81a   :  { %v4020_v47 = vpop.eup %4019 }
 0x81b   :  { %v1528_v60 = vmul.f32 %v4020_v47, %v1526_v0 }
 0x81d   :  { %v5081_v10 = vadd.f32 %v1528_v60, %v1524_v5 }
 0x81f   :  { %v3869_v63 = vpack.c.bf16 %v5081_v10, %v5078_v53  ;;  %v1532_v14 = vpack.c.bf16 %v5081_v10, %v5081_v10 }
 0x821   :  { %3870 = vst [vmem:[#allocation4 + $0x20] sm:$0xff] %v3869_v63   ;;  %v1546_v61 = vunpack.c.l.b16 %v1532_v14 }
 0x823   :  { %v1547_v43 = vpack.c.b16 %v1546_v61, %v1545_v6 }
 0x825   :  { %1557 = vmatmul.bf16.vlgmr.msrb.gmra.mxu2 %v1547_v43  ;;  %1571 = vmatmul.bf16.vlgmr.msra.gmra.mxu3 %v1547_v43 }
 0x826   :  { %2212 = vmatpush.bf16.msrb.mxu2 %v3649_v4 }
 0x8a8   :  { %v1572_v21 = vpop.f32.mrf.mxu3 }
 0x8a9   :  { %v1578_v37 = vadd.f32 %v1572_v21, %v377_v20  ;;  %v5095_v20 = vld [vmem:[#allocation4 + $0x30] sm:$0xff]  ;;  %v5098_v21 = vld [vmem:[#allocation4] sm:$0xff] }
 0x8ab   :  { %v3487_v26 = vmul.f32 -1.442695, %v1578_v37  ;;  %v1558_v37 = vpop.f32.mrf.mxu2 }
 0x8ad   :  { %4021 = vpow2.f32 %v3487_v26  ;;  %v6293_v26 = vld [vmem:[#allocation30_spill] sm:$0xff] }
 0x8ae   :  { %v328_v52 = vadd.f32 %v6293_v26, %v4759_v59 }
 0x8b0   :  { %v1574_v22 = vpop.f32.mrf.mxu3  ;;  %v1577_v42 = vadd.f32 %v1558_v37, %v328_v52  ;;  %v426_v52 = vadd.f32 %v4911_v49, %v4779_v57 }
 0x8b1   :  { %v1580_v34 = vadd.f32 %v1574_v22, %v379_v13  ;;  %v5114_v22 = vld [vmem:[#allocation4 + $0x20] sm:$0xff] }
 0x8b2   :  { %v3486_v44 = vmul.f32 -1.442695, %v1577_v42  ;;  %v3801_v42 = vld [vmem:[#allocation14 + $0x44] sm:$0xf] }
 0x8b3   :  { %v4022_v40 = vpop.eup %4021  ;;  %v3489_v16 = vmul.f32 -1.442695, %v1580_v34  ;;  %v1560_v12 = vpop.f32.mrf.mxu2 }
 0x8b4   :  { %v1594_v45 = vadd.f32 1.0, %v4022_v40  ;;  %v1579_v13 = vadd.f32 %v1560_v12, %v330_v1  ;;  %v3568_v12 = vld [vmem:[#allocation14 + $0x48] sm:$0xf] }
 0x8b6   :  { %4023 = vrcp.f32 %v1594_v45  ;;  %v1623_v8 = vand.u32 2147483648, %v1594_v45  ;;  %vm1617_vm2 = vweird.f32 %v1594_v45  ;;  %v1621_v0 = vand.u32 2147483647, %v1594_v45 }
 0x8b7   :  { %4025 = vpow2.f32 %v3489_v16  ;;  %v3488_v31 = vmul.f32 -1.442695, %v1579_v13 }
 0x8b8   :  { %v1624_v63 = vor.u32 1.1754944e-38, %v1623_v8  ;;  %vm1622_vm6 = vcmp.eq.f32.partialorder %v1621_v0, 8.507059e+37  ;;  %v3594_v0 = vld [vmem:[#allocation14 + $0x90] sm:$0xf0] }
 0x8bc   :  { %v4024_v17 = vpop.eup %4023 }
 0x8bd   :  { %v4026_v58 = vpop.eup %4025  ;;  %v1613_v19 = vmul.f32 %v4024_v17, %v1594_v45  ;;  %vm1618_vm0 = vweird.f32 %v4024_v17  ;;  %v3821_v45 = vld [vmem:[#allocation14 + $0xe4] sm:$0xf] }
 0x8be   :  { %v1596_v62 = vadd.f32 1.0, %v4026_v58  ;;  %vm1619_vm3 = vmor %vm1617_vm2, %vm1618_vm0  ;;  %v3645_v46 = vor.u32 %v3821_v45, %v3642_v48  ;;  %v3633_v58 = vor.u32 %v3820_v9, %v3632_v7 }
 0x8bf   :  { %v1614_v2 = vsub.f32 1.0, %v1613_v19 }
 0x8c0   :  { %4027 = vrcp.f32 %v1596_v62  ;;  %v1653_v47 = vand.u32 2147483648, %v1596_v62  ;;  %v1651_v11 = vand.u32 2147483647, %v1596_v62  ;;  %vm1647_vm5 = vweird.f32 %v1596_v62  ;;  %2163 = vmatpush.bf16.msra.mxu1 %v3645_v46  ;;  %2213 = vmatpush.bf16.msrb.mxu2 %v3633_v58  ;;  %v3546_v46 = vld [vmem:[#allocation14 + $0x30] sm:$0xf0] }
 0x8c1   :  { %v1615_v50 = vmul.f32 %v4024_v17, %v1614_v2  ;;  %4029 = vpow2.f32 %v3486_v44  ;;  %v3610_v2 = vld [vmem:[#allocation14 + $0xb0] sm:$0xf0]  ;;  %v3793_v58 = vld [vmem:[#allocation14 + $0x4] sm:$0xf] }
 0x8c2   :  { %v1654_v61 = vor.u32 1.1754944e-38, %v1653_v47  ;;  %vm1652_vm8 = vcmp.eq.f32.partialorder %v1651_v11, 8.507059e+37  ;;  %4031 = vpow2.f32 %v3488_v31  ;;  %v3600_v47 = vld [vmem:[#allocation14 + $0x88] sm:$0xf]  ;;  %v3562_v44 = vld [vmem:[#allocation14 + $0x50] sm:$0xf0] }
 0x8c3   :  { %v1616_v38 = vadd.f32 %v4024_v17, %v1615_v50  ;;  %v3565_v13 = vor.u32 %v3801_v42, %v3562_v44  ;;  %v3804_v31 = vld [vmem:[#allocation14 + $0x54] sm:$0xf0] }
 0x8c4   :  { %v3569_v45 = vor.u32 %v3804_v31, %v3568_v12  ;;  %v6297_v42 = vld [vmem:[#allocation26_spill] sm:$0xff] }
 0x8c5   :  { %v1620_v60 = vsel %vm1619_vm3, %v4024_v17, %v1616_v38  ;;  %v3629_v17 = vor.u32 %v3817_v33, %v3626_v35  ;;  %v3800_v33 = vld [vmem:[#allocation14 + $0x34] sm:$0xf0]  ;;  %v382_v44 = vadd.f32 %v6297_v42, %v4695_v24 }
 0x8c6   :  { %v4028_v25 = vpop.eup %4027  ;;  %v1625_v6 = vsel %vm1622_vm6, %v1624_v63, %v1620_v60  ;;  %v3812_v60 = vld [vmem:[#allocation14 + $0x94] sm:$0xf0] }
 0x8c7   :  { %v1643_v36 = vmul.f32 %v4028_v25, %v1596_v62  ;;  %vm1648_vm4 = vweird.f32 %v4028_v25  ;;  %v1657_v18 = vmul.f32 %v1625_v6, %v5078_v53  ;;  %v4030_v34 = vpop.eup %4029  ;;  %2164 = vmatpush.bf16.msra.mxu1 %v3629_v17  ;;  %v3813_v62 = vld [vmem:[#allocation14 + $0xa4] sm:$0xf]  ;;  %v3601_v11 = vor.u32 %v3812_v60, %v3600_v47 }
 0x8c8   :  { %vm1649_vm7 = vmor %vm1647_vm5, %vm1648_vm4  ;;  %v5117_v40 = vadd.f32 1.0, %v4030_v34  ;;  %v4032_v16 = vpop.eup %4031  ;;  %v3613_v50 = vor.u32 %v3813_v62, %v3610_v2  ;;  %v3805_v6 = vld [vmem:[#allocation14 + $0x64] sm:$0xf]  ;;  %v3553_v17 = vor.u32 %v3800_v33, %v3552_v41  ;;  %v3536_v62 = vld [vmem:[#allocation14 + $0x8] sm:$0xf] }
 0x8c9   :  { %v1644_v30 = vsub.f32 1.0, %v1643_v36  ;;  %v5120_v51 = vadd.f32 1.0, %v4032_v16  ;;  %v3602_v41 = vld [vmem:[#allocation14 + $0x98] sm:$0xf0] }
 0x8ca   :  { %4033 = vrcp.f32 %v5117_v40  ;;  %vm1602_vm10 = vweird.f32 %v5117_v40  ;;  %v1606_v15 = vand.u32 2147483647, %v5117_v40 }
 0x8cb   :  { %v1645_v5 = vmul.f32 %v4028_v25, %v1644_v30  ;;  %4035 = vrcp.f32 %v5120_v51  ;;  %2165 = vmatpush.bf16.msra.mxu1 %v3613_v50  ;;  %v3809_v30 = vld [vmem:[#allocation14 + $0x84] sm:$0xf]  ;;  %v1638_v7 = vand.u32 2147483648, %v5120_v51  ;;  %vm1632_vm14 = vweird.f32 %v5120_v51 }
 0x8cc   :  { %vm1607_vm12 = vcmp.eq.f32.partialorder %v1606_v15, 8.507059e+37  ;;  %v3818_v15 = vld [vmem:[#allocation14 + $0xcc] sm:$0xf] }
 0x8cd   :  { %v1646_v14 = vadd.f32 %v4028_v25, %v1645_v5  ;;  %v3597_v5 = vor.u32 %v3809_v30, %v3594_v0  ;;  %v1639_v60 = vor.u32 1.1754944e-38, %v1638_v7 }
 0x8cf   :  { %v1650_v43 = vsel %vm1649_vm7, %v4028_v25, %v1646_v14  ;;  %v3816_v25 = vld [vmem:[#allocation14 + $0xb4] sm:$0xf0]  ;;  %2166 = vmatpush.bf16.msra.mxu1 %v3597_v5 }
 0x8d0   :  { %v1655_v27 = vsel %vm1652_vm8, %v1654_v61, %v1650_v43  ;;  %v5122_v55 = vpop.eup %4033  ;;  %v3617_v36 = vor.u32 %v3816_v25, %v3616_v3  ;;  %v3578_v61 = vld [vmem:[#allocation14 + $0x70] sm:$0xf0]  ;;  %v3584_v43 = vld [vmem:[#allocation14 + $0x68] sm:$0xf]  ;;  %v1636_v3 = vand.u32 2147483647, %v5120_v51 }
 0x8d1   :  { %v1658_v54 = vmul.f32 %v1655_v27, %v5081_v10  ;;  %v1598_v19 = vmul.f32 %v5122_v55, %v5117_v40  ;;  %v5127_v8 = vpop.eup %4035  ;;  %v3581_v27 = vor.u32 %v3805_v6, %v3578_v61  ;;  %vm1603_vm9 = vweird.f32 %v5122_v55 }
 0x8d2   :  { %2214 = vmatpush.bf16.msrb.mxu2 %v3617_v36  ;;  %v1628_v14 = vmul.f32 %v5127_v8, %v5120_v51  ;;  %vm5139_vm11 = vmor %vm1602_vm10, %vm1603_vm9  ;;  %vm1633_vm13 = vweird.f32 %v5127_v8  ;;  %v3796_v36 = vld [vmem:[#allocation14 + $0x14] sm:$0xf0]  ;;  %vm1637_vm1 = vcmp.eq.f32.partialorder %v1636_v3, 8.507059e+37  ;;  %v3798_v3 = vld [vmem:[#allocation14 + $0x2c] sm:$0xf] }
 0x8d3   :  { %v1659_v39 = vpack.c.bf16 %v1658_v54, %v1657_v18  ;;  %v1599_v38 = vsub.f32 1.0, %v1598_v19  ;;  %v3808_v18 = vld [vmem:[#allocation14 + $0x74] sm:$0xf0]  ;;  %2167 = vmatpush.bf16.msra.mxu1 %v3581_v27  ;;  %v3530_v19 = vld [vmem:[#allocation14 + $0x10] sm:$0xf0]  ;;  %vm1634_vm15 = vmor %vm1632_vm14, %vm1633_vm13  ;;  %v3537_v0 = vor.u32 %v3796_v36, %v3536_v62 }
 0x8d4   :  { %v3585_v54 = vor.u32 %v3808_v18, %v3584_v43  ;;  %v1629_v37 = vsub.f32 1.0, %v1628_v14  ;;  %v3533_v25 = vor.u32 %v3793_v58, %v3530_v19  ;;  %v3802_v19 = vld [vmem:[#allocation14 + $0x4c] sm:$0xf]  ;;  %v3570_v62 = vld [vmem:[#allocation14 + $0x58] sm:$0xf0] }
 0x8d5   :  { %1668 = vmatmul.bf16.vlgmr.msrb.gmra.mxu0 %v1659_v39  ;;  %v1600_v63 = vmul.f32 %v5122_v55, %v1599_v38  ;;  %v1608_v39 = vand.u32 2147483648, %v5117_v40  ;;  %v3797_v40 = vld [vmem:[#allocation14 + $0x24] sm:$0xf] }
 0x8d6   :  { %2215 = vmatpush.bf16.msrb.mxu2 %v3601_v11  ;;  %v1630_v48 = vmul.f32 %v5127_v8, %v1629_v37  ;;  %v3549_v4 = vor.u32 %v3797_v40, %v3546_v46  ;;  %v3810_v46 = vld [vmem:[#allocation14 + $0x8c] sm:$0xf] }
 0x8d7   :  { %v1601_v26 = vadd.f32 %v5122_v55, %v1600_v63  ;;  %v1609_v23 = vor.u32 1.1754944e-38, %v1608_v39  ;;  %2168 = vmatpush.bf16.msra.mxu1 %v3565_v13  ;;  %v3605_v33 = vor.u32 %v3810_v46, %v3602_v41 }
 0x8d8   :  { %v1631_v9 = vadd.f32 %v5127_v8, %v1630_v48 }
 0x8d9   :  { %v1605_v49 = vsel %vm5139_vm11, %v5122_v55, %v1601_v26  ;;  %v428_v55 = vadd.f32 %v4913_v32, %v4779_v57  ;;  %v3650_v26 = vld [vmem:[#allocation14 + $0xf8] sm:$0xf0] }
 0x8da   :  { %2216 = vmatpush.bf16.msrb.mxu2 %v3585_v54  ;;  %v1610_v35 = vsel %vm1607_vm12, %v1609_v23, %v1605_v49  ;;  %v1635_v32 = vsel %vm1634_vm15, %v5127_v8, %v1631_v9  ;;  %v6298_v49 = vld [vmem:[#allocation27_spill] sm:$0xff]  ;;  %v3806_v9 = vld [vmem:[#allocation14 + $0x6c] sm:$0xf] }
 0x8db   :  { %2169 = vmatpush.bf16.msra.mxu1 %v3549_v4  ;;  %v1680_v2 = vsub.f32 1.0, %v1610_v35  ;;  %v1678_v47 = vmul.f32 %v1610_v35, %v5078_v53  ;;  %v1640_v51 = vsel %vm1637_vm1, %v1639_v60, %v1635_v32  ;;  %v384_v23 = vadd.f32 %v6298_v49, %v4695_v24  ;;  %v5197_v49 = vld [vmem:[%s6271_s6] sm:$0xf] }
 0x8dc   :  { %v1681_v63 = vsub.f32 1.0, %v1640_v51  ;;  %v1679_v6 = vmul.f32 %v1640_v51, %v5081_v10  ;;  %v3822_v10 = vld [vmem:[#allocation14 + $0xec] sm:$0xf] }
 0x8de   :  { %2217 = vmatpush.bf16.msrb.mxu2 %v3569_v45  ;;  %v3618_v45 = vld [vmem:[#allocation14 + $0xb8] sm:$0xf0] }
 0x8df   :  { %2170 = vmatpush.bf16.msra.mxu1 %v3533_v25 }
 0x8e2   :  { %2218 = vmatpush.bf16.msrb.mxu2 %v3553_v17 }
 0x8e5   :  { %2122 = vmatmul.bf16.vlgmr.msra.gmra.mxu0 %v5095_v20 }
 0x8e6   :  { %2219 = vmatpush.bf16.msrb.mxu2 %v3537_v0 }
 0x8f5   :  { %2127 = vmatmul.bf16.gmra.mxu0 %v5098_v21 }
 0x905   :  { %2132 = vmatmul.bf16.gmra.mxu0 %v5101_v28 }
 0x915   :  { %2137 = vmatmul.bf16.gmra.mxu0 %v5104_v29 }
 0x925   :  { %2142 = vmatmul.bf16.gmra.mxu0 %v5107_v56 }
 0x935   :  { %2147 = vmatmul.bf16.gmra.mxu0 %v5114_v22 }
 0x952   :  { %v1669_v1 = vpop.f32.mrf.mxu0 }
 0x953   :  { %v1674_v16 = vadd.f32 %v1669_v1, %v426_v52  ;;  %v3653_v52 = vor.u32 %v3822_v10, %v3650_v26  ;;  %v3634_v1 = vld [vmem:[#allocation14 + $0xd8] sm:$0xf0] }
 0x954   :  { %v3637_v31 = vor.u32 %v3818_v15, %v3634_v1 }
 0x955   :  { %4037 = vtanh.f32 %v1674_v16  ;;  %2261 = vmatpush.bf16.msra.mxu3 %v3653_v52  ;;  %v3814_v16 = vld [vmem:[#allocation14 + $0xac] sm:$0xf] }
 0x956   :  { %v3621_v48 = vor.u32 %v3814_v16, %v3618_v45  ;;  %v3840_v45 = vld [vmem:[#allocation16 + $0x78] sm:$0xff] }
 0x959   :  { %2262 = vmatpush.bf16.msra.mxu3 %v3637_v31  ;;  %v3832_v31 = vld [vmem:[#allocation16 + $0x38] sm:$0xff] }
 0x95a   :  { %v1671_v50 = vpop.f32.mrf.mxu0  ;;  %3162 = vmatpush.bf16.msrb.mxu0 %v3832_v31 }
 0x95b   :  { %v4038_v38 = vpop.eup %4037  ;;  %v1675_v30 = vadd.f32 %v1671_v50, %v428_v55  ;;  %v3586_v55 = vld [vmem:[#allocation14 + $0x78] sm:$0xf0] }
 0x95c   :  { %v1682_v5 = vmul.f32 %v4038_v38, %v1680_v2  ;;  %v3589_v58 = vor.u32 %v3806_v9, %v3586_v55  ;;  %v3573_v2 = vor.u32 %v3802_v19, %v3570_v62  ;;  %v3554_v50 = vld [vmem:[#allocation14 + $0x38] sm:$0xf0]  ;;  %v6300_v62 = vld [vmem:[#allocation33_spill] sm:$0xff] }
 0x95d   :  { %4039 = vtanh.f32 %v1675_v30  ;;  %2263 = vmatpush.bf16.msra.mxu3 %v3621_v48  ;;  %v3557_v30 = vor.u32 %v3798_v3, %v3554_v50  ;;  %v3831_v48 = vld [vmem:[#allocation16 + $0x30] sm:$0xff] }
 0x95e   :  { %v5156_v11 = vadd.f32 %v1682_v5, %v1678_v47  ;;  %v3794_v47 = vld [vmem:[#allocation14 + $0xc] sm:$0xf]  ;;  %v3538_v5 = vld [vmem:[#allocation14 + $0x18] sm:$0xf0]  ;;  %3163 = vmatpush.bf16.msrb.mxu0 %v3831_v48 }
 0x95f   :  { %v3541_v32 = vor.u32 %v3794_v47, %v3538_v5 }
 0x960   :  { %v1686_v53 = vpack.c.bf16 %v5156_v11, %v5156_v11 }
 0x961   :  { %2264 = vmatpush.bf16.msra.mxu3 %v3605_v33 }
 0x962   :  { %v1700_v18 = vunpack.c.l.b16 %v1686_v53 }
 0x963   :  { %v4040_v14 = vpop.eup %4039 }
 0x964   :  { %v1683_v61 = vmul.f32 %v4040_v14, %v1681_v63 }
 0x965   :  { %2265 = vmatpush.bf16.msra.mxu3 %v3589_v58 }
 0x966   :  { %v5159_v43 = vadd.f32 %v1683_v61, %v1679_v6 }
 0x968   :  { %v3874_v8 = vpack.c.bf16 %v5159_v43, %v5156_v11  ;;  %v1687_v27 = vpack.c.bf16 %v5159_v43, %v5159_v43 }
 0x969   :  { %2266 = vmatpush.bf16.msra.mxu3 %v3573_v2  ;;  %v335_v2 = vadd.f32 %v6300_v62, %v4759_v59 }
 0x96a   :  { %3875 = vst [vmem:[#allocation4 + $0x28] sm:$0xff] %v3874_v8   ;;  %v1701_v54 = vunpack.c.l.b16 %v1687_v27 }
 0x96c   :  { %v1702_v39 = vpack.c.b16 %v1701_v54, %v1700_v18 }
 0x96d   :  { %2267 = vmatpush.bf16.msra.mxu3 %v3557_v30 }
 0x96e   :  { %1712 = vmatmul.bf16.vlgmr.msrb.gmra.mxu1 %v1702_v39  ;;  %1726 = vmatmul.bf16.vlgmr.msra.gmra.mxu2 %v1702_v39 }
 0x96f   :  { %3211 = vmatpush.bf16.msrb.mxu1 %v3840_v45 }
 0x971   :  { %v5167_v37 = vld [vmem:[#allocation4 + $0x28] sm:$0xff]  ;;  %2268 = vmatpush.bf16.msra.mxu3 %v3541_v32 }
 0x972   :  { %2152 = vmatmul.bf16.gmra.mxu0 %v5167_v37 }
 0x97e   :  { %2171 = vmatmul.bf16.vlgmr.msra.gmra.mxu1 %v5095_v20  ;;  %2220 = vmatmul.bf16.vlgmr.msrb.gmra.mxu2 %v5095_v20 }
 0x98e   :  { %2176 = vmatmul.bf16.gmra.mxu1 %v5098_v21  ;;  %2225 = vmatmul.bf16.gmra.mxu2 %v5098_v21 }
 0x99e   :  { %2181 = vmatmul.bf16.gmra.mxu1 %v5101_v28  ;;  %2230 = vmatmul.bf16.gmra.mxu2 %v5101_v28 }
 0x9ae   :  { %2186 = vmatmul.bf16.gmra.mxu1 %v5104_v29  ;;  %2235 = vmatmul.bf16.gmra.mxu2 %v5104_v29 }
 0x9be   :  { %2191 = vmatmul.bf16.gmra.mxu1 %v5107_v56  ;;  %2240 = vmatmul.bf16.gmra.mxu2 %v5107_v56 }
 0x9ce   :  { %2196 = vmatmul.bf16.gmra.mxu1 %v5114_v22  ;;  %2245 = vmatmul.bf16.gmra.mxu2 %v5114_v22 }
 0x9de   :  { %2201 = vmatmul.bf16.gmra.mxu1 %v5167_v37  ;;  %2250 = vmatmul.bf16.gmra.mxu2 %v5167_v37 }
 0x9f1   :  { %v1727_v12 = vpop.f32.mrf.mxu2 }
 0x9f2   :  { %v1733_v13 = vadd.f32 %v1727_v12, %v382_v44 }
 0x9f4   :  { %v3491_v34 = vmul.f32 -1.442695, %v1733_v13  ;;  %v2123_v13 = vpop.f32.mrf.mxu0 }
 0x9f6   :  { %4041 = vpow2.f32 %v3491_v34  ;;  %v1713_v34 = vpop.f32.mrf.mxu1 }
 0x9f9   :  { %v1729_v40 = vpop.f32.mrf.mxu2 }
 0x9fa   :  { %v1735_v4 = vadd.f32 %v1729_v40, %v384_v23  ;;  %v3839_v40 = vld [vmem:[#allocation16 + $0x70] sm:$0xff] }
 0x9fb   :  { %3212 = vmatpush.bf16.msrb.mxu1 %v3839_v40  ;;  %v6301_v40 = vld [vmem:[#allocation34_spill] sm:$0xff] }
 0x9fc   :  { %v4042_v35 = vpop.eup %4041  ;;  %v3493_v17 = vmul.f32 -1.442695, %v1735_v4  ;;  %v2125_v16 = vpop.f32.mrf.mxu0  ;;  %v3838_v4 = vld [vmem:[#allocation16 + $0x68] sm:$0xff] }
 0x9fd   :  { %v1749_v7 = vadd.f32 1.0, %v4042_v35 }
 0x9ff   :  { %4043 = vrcp.f32 %v1749_v7  ;;  %v1778_v6 = vand.u32 2147483648, %v1749_v7  ;;  %vm1772_vm2 = vweird.f32 %v1749_v7  ;;  %v1776_v61 = vand.u32 2147483647, %v1749_v7  ;;  %3213 = vmatpush.bf16.msrb.mxu1 %v3838_v4 }
 0xa00   :  { %4045 = vpow2.f32 %v3493_v17  ;;  %v6299_v17 = vld [vmem:[#allocation32_spill] sm:$0xff] }
 0xa01   :  { %v1779_v39 = vor.u32 1.1754944e-38, %v1778_v6  ;;  %vm1777_vm5 = vcmp.eq.f32.partialorder %v1776_v61, 8.507059e+37 }
 0xa05   :  { %v4044_v24 = vpop.eup %4043 }
 0xa06   :  { %v4046_v25 = vpop.eup %4045  ;;  %v1768_v36 = vmul.f32 %v4044_v24, %v1749_v7  ;;  %vm1773_vm0 = vweird.f32 %v4044_v24  ;;  %v333_v7 = vadd.f32 %v6299_v17, %v4759_v59 }
 0xa07   :  { %v1751_v38 = vadd.f32 1.0, %v4046_v25  ;;  %vm1774_vm3 = vmor %vm1772_vm2, %vm1773_vm0 }
 0xa08   :  { %v1769_v0 = vsub.f32 1.0, %v1768_v36  ;;  %v1732_v55 = vadd.f32 %v1713_v34, %v333_v7 }
 0xa09   :  { %4047 = vrcp.f32 %v1751_v38  ;;  %v1808_v8 = vand.u32 2147483648, %v1751_v38  ;;  %v1806_v18 = vand.u32 2147483647, %v1751_v38  ;;  %vm1802_vm6 = vweird.f32 %v1751_v38 }
 0xa0a   :  { %v1770_v60 = vmul.f32 %v4044_v24, %v1769_v0  ;;  %v3490_v19 = vmul.f32 -1.442695, %v1732_v55 }
 0xa0b   :  { %v1809_v26 = vor.u32 1.1754944e-38, %v1808_v8  ;;  %vm1807_vm8 = vcmp.eq.f32.partialorder %v1806_v18, 8.507059e+37 }
 0xa0c   :  { %v1771_v63 = vadd.f32 %v4044_v24, %v1770_v60 }
 0xa0e   :  { %v1775_v54 = vsel %vm1774_vm3, %v4044_v24, %v1771_v63 }
 0xa0f   :  { %v4048_v51 = vpop.eup %4047  ;;  %v1780_v52 = vsel %vm1777_vm5, %v1779_v39, %v1775_v54 }
 0xa10   :  { %v1798_v14 = vmul.f32 %v4048_v51, %v1751_v38  ;;  %vm1803_vm4 = vweird.f32 %v4048_v51  ;;  %v1812_v12 = vmul.f32 %v1780_v52, %v5156_v11 }
 0xa11   :  { %vm1804_vm7 = vmor %vm1802_vm6, %vm1803_vm4 }
 0xa12   :  { %v1799_v53 = vsub.f32 1.0, %v1798_v14 }
 0xa14   :  { %v1800_v27 = vmul.f32 %v4048_v51, %v1799_v53 }
 0xa16   :  { %v1801_v10 = vadd.f32 %v4048_v51, %v1800_v27 }
 0xa18   :  { %v1805_v42 = vsel %vm1804_vm7, %v4048_v51, %v1801_v10 }
 0xa19   :  { %v1810_v44 = vsel %vm1807_vm8, %v1809_v26, %v1805_v42 }
 0xa1a   :  { %v1813_v15 = vmul.f32 %v1810_v44, %v5159_v43 }
 0xa1c   :  { %v1814_v1 = vpack.c.bf16 %v1813_v15, %v1812_v12 }
 0xa1e   :  { %1823 = vmatmul.bf16.vlgmr.msrb.gmra.mxu3 %v1814_v1 }
 0xa2e   :  { %2269 = vmatmul.bf16.vlgmr.msra.gmra.mxu3 %v5095_v20  ;;  %v5200_v20 = vperm.slane %v5197_v49, 0 }
 0xa30   :  { %v2124_v23 = vadd.f32 %v2123_v13, %v5200_v20  ;;  %v2126_v41 = vadd.f32 %v2125_v16, %v5200_v20 }
 0xa32   :  { %v3654_v46 = vmul.f32 -1.442695, %v2124_v23  ;;  %v3656_v9 = vmul.f32 -1.442695, %v2126_v41 }
 0xa34   :  { %4049 = vpow2.f32 %v3654_v46 }
 0xa35   :  { %4051 = vpow2.f32 %v3656_v9 }
 0xa36   :  { %4053 = vpow2.f32 %v3490_v19 }
 0xa3a   :  { %v4050_v58 = vpop.eup %4049 }
 0xa3b   :  { %v5213_v25 = vadd.f32 1.0, %v4050_v58  ;;  %v4052_v38 = vpop.eup %4051  ;;  %v5280_v58 = vpop.f32.mrf.mxu2 }
 0xa3c   :  { %v5217_v47 = vadd.f32 1.0, %v4052_v38  ;;  %v4054_v59 = vpop.eup %4053  ;;  %v3829_v38 = vld [vmem:[#allocation16 + $0x20] sm:$0xff] }
 0xa3d   :  { %v5225_v14 = vadd.f32 1.0, %v4054_v59  ;;  %v2449_v45 = vand.u32 2147483648, %v5213_v25  ;;  %vm2443_vm10 = vweird.f32 %v5213_v25  ;;  %v2447_v62 = vand.u32 2147483647, %v5213_v25 }
 0xa3e   :  { %2274 = vmatmul.bf16.gmra.mxu3 %v5098_v21  ;;  %v1715_v21 = vpop.f32.mrf.mxu1  ;;  %vm2473_vm14 = vweird.f32 %v5217_v47 }
 0xa3f   :  { %v1734_v30 = vadd.f32 %v1715_v21, %v335_v2  ;;  %v2477_v2 = vand.u32 2147483647, %v5217_v47  ;;  %vm2448_vm13 = vcmp.eq.f32.partialorder %v2447_v62, 8.507059e+37  ;;  %vm1757_vm4 = vweird.f32 %v5225_v14 }
 0xa41   :  { %v3492_v5 = vmul.f32 -1.442695, %v1734_v30  ;;  %v3837_v30 = vld [vmem:[#allocation16 + $0x60] sm:$0xff]  ;;  %vm5305_vm15 = vcmp.eq.f32.partialorder %v2477_v2, 8.507059e+37 }
 0xa42   :  { %3214 = vmatpush.bf16.msrb.mxu1 %v3837_v30 }
 0xa46   :  { %v5205_v33 = vpop.f32.mrf.mxu1 }
 0xa4e   :  { %2279 = vmatmul.bf16.gmra.mxu3 %v5101_v28  ;;  %v2128_v28 = vpop.f32.mrf.mxu0  ;;  %v2174_v50 = vpop.f32.mrf.mxu1 }
 0xa56   :  { %v2130_v35 = vpop.f32.mrf.mxu0  ;;  %v5220_v60 = vpop.f32.mrf.mxu1 }
 0xa57   :  { %v2131_v3 = vadd.f32 %v2130_v35, %v5200_v20  ;;  %v6302_v35 = vld [vmem:[#allocation35_spill] sm:$0xff] }
 0xa58   :  { %v5271_v17 = vadd.f32 %v6302_v35, %v4779_v57 }
 0xa59   :  { %v3660_v0 = vmul.f32 -1.442695, %v2131_v3 }
 0xa5e   :  { %2284 = vmatmul.bf16.gmra.mxu3 %v5104_v29  ;;  %v3830_v29 = vld [vmem:[#allocation16 + $0x28] sm:$0xff]  ;;  %v2133_v36 = vpop.f32.mrf.mxu0  ;;  %v5243_v44 = vpop.f32.mrf.mxu1 }
 0xa5f   :  { %3164 = vmatpush.bf16.msrb.mxu0 %v3830_v29  ;;  %v2134_v63 = vadd.f32 %v2133_v36, %v5200_v20  ;;  %v431_v29 = vadd.f32 %v6301_v40, %v4779_v57  ;;  %v2450_v57 = vor.u32 1.1754944e-38, %v2449_v45  ;;  %v2479_v36 = vand.u32 2147483648, %v5217_v47 }
 0xa61   :  { %v3662_v18 = vmul.f32 -1.442695, %v2134_v63 }
 0xa63   :  { %3165 = vmatpush.bf16.msrb.mxu0 %v3829_v38 }
 0xa6e   :  { %2289 = vmatmul.bf16.gmra.mxu3 %v5107_v56  ;;  %v2129_v56 = vadd.f32 %v2128_v28, %v5200_v20 }
 0xa70   :  { %v3658_v24 = vmul.f32 -1.442695, %v2129_v56 }
 0xa72   :  { %4055 = vpow2.f32 %v3658_v24 }
 0xa73   :  { %4057 = vrcp.f32 %v5213_v25 }
 0xa74   :  { %4059 = vpow2.f32 %v3660_v0 }
 0xa75   :  { %4061 = vrcp.f32 %v5217_v47 }
 0xa76   :  { %4063 = vpow2.f32 %v3492_v5 }
 0xa77   :  { %4065 = vrcp.f32 %v5225_v14 }
 0xa78   :  { %v4056_v32 = vpop.eup %4055 }
 0xa79   :  { %v5222_v51 = vpop.eup %4057  ;;  %v5227_v6 = vadd.f32 1.0, %v4056_v32 }
 0xa7a   :  { %v4060_v61 = vpop.eup %4059  ;;  %v2439_v53 = vmul.f32 %v5222_v51, %v5213_v25  ;;  %vm2444_vm9 = vweird.f32 %v5222_v51 }
 0xa7b   :  { %v5232_v27 = vpop.eup %4061  ;;  %4067 = vrcp.f32 %v5227_v6  ;;  %v5236_v39 = vadd.f32 1.0, %v4060_v61  ;;  %vm5282_vm11 = vmor %vm2443_vm10, %vm2444_vm9  ;;  %vm2503_vm2 = vweird.f32 %v5227_v6  ;;  %v2507_v40 = vand.u32 2147483647, %v5227_v6 }
 0xa7c   :  { %v4064_v54 = vpop.eup %4063  ;;  %v2440_v10 = vsub.f32 1.0, %v2439_v53  ;;  %v2469_v52 = vmul.f32 %v5232_v27, %v5217_v47  ;;  %4069 = vpow2.f32 %v3662_v18  ;;  %vm2474_vm12 = vweird.f32 %v5232_v27 }
 0xa7d   :  { %v5240_v42 = vadd.f32 1.0, %v4064_v54  ;;  %v5245_v12 = vpop.eup %4065  ;;  %4071 = vrcp.f32 %v5236_v39  ;;  %vm5311_vm1 = vmor %vm2473_vm14, %vm2474_vm12  ;;  %v2537_v19 = vand.u32 2147483647, %v5236_v39  ;;  %vm2533_vm7 = vweird.f32 %v5236_v39 }
 0xa7e   :  { %2294 = vmatmul.bf16.gmra.mxu3 %v5114_v22  ;;  %v2135_v22 = vpop.f32.mrf.mxu0  ;;  %v2441_v15 = vmul.f32 %v5222_v51, %v2440_v10  ;;  %v2470_v13 = vsub.f32 1.0, %v2469_v52  ;;  %v1753_v34 = vmul.f32 %v5245_v12, %v5225_v14  ;;  %v2509_v10 = vand.u32 2147483648, %v5227_v6 }
 0xa7f   :  { %v2136_v8 = vadd.f32 %v2135_v22, %v5200_v20  ;;  %vm1758_vm0 = vweird.f32 %v5245_v12  ;;  %vm5380_vm10 = vcmp.eq.f32.partialorder %v2507_v40, 8.507059e+37  ;;  %v3835_v22 = vld [vmem:[#allocation16 + $0x50] sm:$0xff]  ;;  %vm1787_vm12 = vweird.f32 %v5240_v42 }
 0xa80   :  { %v2442_v28 = vadd.f32 %v5222_v51, %v2441_v15  ;;  %v2471_v41 = vmul.f32 %v5232_v27, %v2470_v13  ;;  %v1754_v9 = vsub.f32 1.0, %v1753_v34  ;;  %v1763_v15 = vand.u32 2147483648, %v5225_v14  ;;  %vm5340_vm5 = vmor %vm1757_vm4, %vm1758_vm0 }
 0xa81   :  { %v3664_v26 = vmul.f32 -1.442695, %v2136_v8  ;;  %v5249_v1 = vpop.eup %4067  ;;  %v2480_v8 = vor.u32 1.1754944e-38, %v2479_v36 }
 0xa82   :  { %v4070_v16 = vpop.eup %4069  ;;  %v2499_v48 = vmul.f32 %v5249_v1, %v5227_v6  ;;  %v2472_v25 = vadd.f32 %v5232_v27, %v2471_v41  ;;  %v1755_v32 = vmul.f32 %v5245_v12, %v1754_v9  ;;  %vm2504_vm3 = vweird.f32 %v5249_v1 }
 0xa83   :  { %4073 = vpow2.f32 %v3664_v26  ;;  %v5263_v23 = vpop.eup %4071  ;;  %v5273_v7 = vadd.f32 1.0, %v4070_v16  ;;  %v1764_v2 = vor.u32 1.1754944e-38, %v1763_v15  ;;  %vm5362_vm6 = vmor %vm2503_vm2, %vm2504_vm3  ;;  %v2539_v6 = vand.u32 2147483648, %v5236_v39 }
 0xa84   :  { %4075 = vrcp.f32 %v5240_v42  ;;  %v2500_v24 = vsub.f32 1.0, %v2499_v48  ;;  %v2529_v0 = vmul.f32 %v5263_v23, %v5236_v39  ;;  %v2476_v47 = vsel %vm5311_vm1, %v5232_v27, %v2472_v25  ;;  %v5338_v48 = vpop.f32.mrf.mxu2 }
 0xa85   :  { %4077 = vrcp.f32 %v5273_v7  ;;  %v1756_v52 = vadd.f32 %v5245_v12, %v1755_v32  ;;  %v5331_v27 = vsel %vm5305_vm15, %v2480_v8, %v2476_v47  ;;  %vm2534_vm9 = vweird.f32 %v5263_v23 }
 0xa86   :  { %v2138_v31 = vpop.f32.mrf.mxu0  ;;  %v2501_v18 = vmul.f32 %v5249_v1, %v2500_v24  ;;  %v2530_v54 = vsub.f32 1.0, %v2529_v0  ;;  %vm5423_vm15 = vmor %vm2533_vm7, %vm2534_vm9  ;;  %v2567_v24 = vand.u32 2147483647, %v5273_v7  ;;  %vm2538_vm1 = vcmp.eq.f32.partialorder %v2537_v19, 8.507059e+37 }
 0xa87   :  { %v2139_v21 = vadd.f32 %v2138_v31, %v5200_v20  ;;  %v1761_v31 = vand.u32 2147483647, %v5225_v14  ;;  %v1760_v9 = vsel %vm5340_vm5, %v5245_v12, %v1756_v52  ;;  %vm2563_vm2 = vweird.f32 %v5273_v7 }
 0xa88   :  { %v5335_v16 = vadd.f32 %v5249_v1, %v2501_v18  ;;  %vm5453_vm3 = vcmp.eq.f32.partialorder %v2567_v24, 8.507059e+37 }
 0xa89   :  { %v4074_v4 = vpop.eup %4073  ;;  %v3666_v3 = vmul.f32 -1.442695, %v2139_v21  ;;  %vm1762_vm8 = vcmp.eq.f32.partialorder %v1761_v31, 8.507059e+37 }
 0xa8a   :  { %v5276_v55 = vpop.eup %4075  ;;  %v5299_v59 = vadd.f32 1.0, %v4074_v4  ;;  %v2506_v36 = vsel %vm5362_vm6, %v5249_v1, %v5335_v16  ;;  %v1765_v25 = vsel %vm1762_vm8, %v1764_v2, %v1760_v9  ;;  %v3834_v9 = vld [vmem:[#allocation16 + $0x48] sm:$0xff] }
 0xa8b   :  { %4079 = vpow2.f32 %v3666_v3  ;;  %v5326_v13 = vpop.eup %4077  ;;  %v3828_v3 = vld [vmem:[#allocation16 + $0x18] sm:$0xff]  ;;  %v1833_v21 = vmul.f32 %v1765_v25, %v5156_v11 }
 0xa8c   :  { %3166 = vmatpush.bf16.msrb.mxu0 %v3828_v3  ;;  %vm2564_vm0 = vweird.f32 %v5326_v13  ;;  %vm2593_vm5 = vweird.f32 %v5299_v59 }
 0xa8d   :  { %vm5463_vm4 = vmor %vm2563_vm2, %vm2564_vm0 }
 0xa8e   :  { %2299 = vmatmul.bf16.gmra.mxu3 %v5167_v37  ;;  %v5255_v37 = vperm.slane %v5197_v49, 1  ;;  %v2140_v4 = vpop.f32.mrf.mxu0 }
 0xa8f   :  { %v2141_v0 = vadd.f32 %v2140_v4, %v5200_v20 }
 0xa90   :  { %v2175_v46 = vadd.f32 %v2174_v50, %v5255_v37  ;;  %v2173_v56 = vadd.f32 %v5205_v33, %v5255_v37  ;;  %v2446_v50 = vsel %vm5282_vm11, %v5222_v51, %v2442_v28  ;;  %v5292_v33 = vpop.f32.mrf.mxu1  ;;  %v1783_v51 = vmul.f32 %v5276_v55, %v5240_v42 }
 0xa91   :  { %v5309_v61 = vsel %vm2448_vm13, %v2450_v57, %v2446_v50  ;;  %v4080_v41 = vpop.eup %4079  ;;  %v2920_v57 = vsub.f32 1.0, %v5331_v27  ;;  %v3836_v50 = vld [vmem:[#allocation16 + $0x58] sm:$0xff]  ;;  %vm1788_vm11 = vweird.f32 %v5276_v55  ;;  %v2178_v18 = vadd.f32 %v5220_v60, %v5255_v37 }
 0xa92   :  { %v3657_v5 = vmul.f32 -1.442695, %v2175_v46  ;;  %v3655_v63 = vmul.f32 -1.442695, %v2173_v56  ;;  %v1784_v26 = vsub.f32 1.0, %v1783_v51  ;;  %v2918_v45 = vsub.f32 1.0, %v5309_v61  ;;  %3215 = vmatpush.bf16.msrb.mxu1 %v3836_v50  ;;  %vm5401_vm13 = vmor %vm1787_vm12, %vm1788_vm11 }
 0xa93   :  { %v5345_v46 = vor.u32 1.1754944e-38, %v2509_v10  ;;  %v2531_v56 = vmul.f32 %v5263_v23, %v2530_v54  ;;  %v5375_v30 = vadd.f32 1.0, %v4080_v41  ;;  %v1793_v54 = vand.u32 2147483648, %v5240_v42  ;;  %v5411_v41 = vpop.f32.mrf.mxu2  ;;  %v3825_v50 = vld [vmem:[#allocation16] sm:$0xff] }
 0xa94   :  { %4081 = vpow2.f32 %v3657_v5  ;;  %v1785_v14 = vmul.f32 %v5276_v55, %v1784_v26  ;;  %v2180_v5 = vadd.f32 %v5243_v44, %v5255_v37  ;;  %v1835_v10 = vsub.f32 1.0, %v1765_v25 }
 0xa95   :  { %4083 = vrcp.f32 %v5299_v59  ;;  %v2532_v53 = vadd.f32 %v5263_v23, %v2531_v56  ;;  %v1791_v26 = vand.u32 2147483647, %v5240_v42  ;;  %v3668_v31 = vmul.f32 -1.442695, %v2141_v0 }
 0xa96   :  { %4085 = vpow2.f32 %v3655_v63  ;;  %v1786_v1 = vadd.f32 %v5276_v55, %v1785_v14  ;;  %v3827_v63 = vld [vmem:[#allocation16 + $0x10] sm:$0xff]  ;;  %3216 = vmatpush.bf16.msrb.mxu1 %v3835_v22  ;;  %v3659_v40 = vmul.f32 -1.442695, %v2178_v18  ;;  %v1794_v4 = vor.u32 1.1754944e-38, %v1793_v54  ;;  %v3826_v14 = vld [vmem:[#allocation16 + $0x8] sm:$0xff]  ;;  %v2143_v3 = vpop.f32.mrf.mxu0 }
 0xa97   :  { %3167 = vmatpush.bf16.msrb.mxu0 %v3827_v63  ;;  %vm1792_vm14 = vcmp.eq.f32.partialorder %v1791_v26, 8.507059e+37  ;;  %v2536_v2 = vsel %vm5423_vm15, %v5263_v23, %v2532_v53  ;;  %v5434_v0 = vsel %vm5380_vm10, %v5345_v46, %v2506_v36  ;;  %v2569_v25 = vand.u32 2147483648, %v5273_v7 }
 0xa98   :  { %v5348_v35 = vpop.f32.mrf.mxu1  ;;  %v1790_v42 = vsel %vm5401_vm13, %v5276_v55, %v1786_v1  ;;  %v2144_v32 = vadd.f32 %v2143_v3, %v5200_v20  ;;  %v2922_v39 = vsub.f32 1.0, %v5434_v0  ;;  %vm2623_vm9 = vweird.f32 %v5375_v30 }
 0xa9a   :  { %v4082_v62 = vpop.eup %4081  ;;  %3217 = vmatpush.bf16.msrb.mxu1 %v3834_v9  ;;  %v5490_v9 = vperm.slane %v5197_v49, 2 }
 0xa9b   :  { %v5367_v12 = vpop.eup %4083  ;;  %v5384_v51 = vadd.f32 1.0, %v4082_v62  ;;  %3168 = vmatpush.bf16.msrb.mxu0 %v3826_v14 }
 0xa9c   :  { %v4086_v38 = vpop.eup %4085  ;;  %v2589_v44 = vmul.f32 %v5367_v12, %v5299_v59  ;;  %vm2594_vm6 = vweird.f32 %v5367_v12 }
 0xa9d   :  { %v5394_v47 = vadd.f32 1.0, %v4086_v38  ;;  %v3833_v38 = vld [vmem:[#allocation16 + $0x40] sm:$0xff]  ;;  %vm5510_vm8 = vmor %vm2593_vm5, %vm2594_vm6 }
 0xa9e   :  { %v2590_v56 = vsub.f32 1.0, %v2589_v44  ;;  %3218 = vmatpush.bf16.msrb.mxu1 %v3833_v38 }
 0xa9f   :  { %3169 = vmatpush.bf16.msrb.mxu0 %v3825_v50 }
 0xaa0   :  { %v5415_v11 = vpop.f32.mrf.mxu1  ;;  %v2591_v36 = vmul.f32 %v5367_v12, %v2590_v56 }
 0xaa1   :  { %v1824_v34 = vpop.f32.mrf.mxu3 }
 0xaa2   :  { %v1829_v28 = vadd.f32 %v1824_v34, %v431_v29  ;;  %v2559_v29 = vmul.f32 %v5326_v13, %v5273_v7  ;;  %v3661_v34 = vmul.f32 -1.442695, %v2180_v5  ;;  %v2540_v5 = vor.u32 1.1754944e-38, %v2539_v6 }
 0xaa4   :  { %4087 = vtanh.f32 %v1829_v28  ;;  %v2560_v8 = vsub.f32 1.0, %v2559_v29  ;;  %v1795_v29 = vsel %vm1792_vm14, %v1794_v4, %v1790_v42  ;;  %v5447_v46 = vsel %vm2538_vm1, %v2540_v5, %v2536_v2  ;;  %v5481_v4 = vpop.f32.mrf.mxu2 }
 0xaa5   :  { %4089 = vrcp.f32 %v5375_v30  ;;  %v1836_v22 = vsub.f32 1.0, %v1795_v29  ;;  %v1834_v18 = vmul.f32 %v1795_v29, %v5159_v43  ;;  %v3670_v42 = vmul.f32 -1.442695, %v2144_v32 }
 0xaa6   :  { %4091 = vrcp.f32 %v5384_v51  ;;  %v2629_v29 = vand.u32 2147483648, %v5375_v30  ;;  %vm2488_vm14 = vweird.f32 %v5384_v51  ;;  %vm2458_vm1 = vweird.f32 %v5394_v47 }
 0xaa7   :  { %v2229_v27 = vadd.f32 %v5481_v4, %v5490_v9 }
 0xaa8   :  { %v5494_v56 = vpop.f32.mrf.mxu1  ;;  %v5525_v32 = vor.u32 1.1754944e-38, %v2629_v29 }
 0xaa9   :  { %v1826_v52 = vpop.f32.mrf.mxu3 }
 0xaaa   :  { %v4088_v15 = vpop.eup %4087  ;;  %v1830_v60 = vadd.f32 %v1826_v52, %v5271_v17  ;;  %v2561_v17 = vmul.f32 %v5326_v13, %v2560_v8  ;;  %v2597_v8 = vand.u32 2147483647, %v5299_v59 }
 0xaab   :  { %v1837_v28 = vmul.f32 %v4088_v15, %v1835_v10  ;;  %v5437_v1 = vpop.eup %4089  ;;  %v2570_v10 = vor.u32 1.1754944e-38, %v2569_v25  ;;  %v2924_v15 = vsub.f32 1.0, %v5447_v46 }
 0xaac   :  { %4093 = vtanh.f32 %v1830_v60  ;;  %v2562_v23 = vadd.f32 %v5326_v13, %v2561_v17  ;;  %v5443_v63 = vpop.eup %4091  ;;  %v2619_v16 = vmul.f32 %v5437_v1, %v5375_v30  ;;  %vm5485_vm7 = vcmp.eq.f32.partialorder %v2597_v8, 8.507059e+37 }
 0xaad   :  { %4095 = vrcp.f32 %v5394_v47  ;;  %v5417_v62 = vadd.f32 %v1837_v28, %v1833_v21  ;;  %v2484_v52 = vmul.f32 %v5443_v63, %v5384_v51  ;;  %v2592_v21 = vadd.f32 %v5367_v12, %v2591_v36 }
 0xaae   :  { %4097 = vpow2.f32 %v3661_v34  ;;  %v2566_v43 = vsel %vm5463_vm4, %v5326_v13, %v2562_v23  ;;  %v2185_v13 = vadd.f32 %v5348_v35, %v5255_v37  ;;  %v2183_v35 = vadd.f32 %v5292_v33, %v5255_v37 }
 0xaaf   :  { %4099 = vpow2.f32 %v3668_v31  ;;  %v2599_v31 = vand.u32 2147483648, %v5299_v59  ;;  %v2485_v24 = vsub.f32 1.0, %v2484_v52  ;;  %v5504_v3 = vsel %vm5453_vm3, %v2570_v10, %v2566_v43 }
 0xab0   :  { %4101 = vpow2.f32 %v3659_v40  ;;  %v2596_v33 = vsel %vm5510_vm8, %v5367_v12, %v2592_v21  ;;  %v2627_v36 = vand.u32 2147483647, %v5375_v30  ;;  %v2222_v59 = vadd.f32 %v5280_v58, %v5490_v9  ;;  %v2145_v12 = vpop.f32.mrf.mxu0 }
 0xab1   :  { %v5445_v53 = vpop.f32.mrf.mxu3  ;;  %v2600_v25 = vor.u32 1.1754944e-38, %v2599_v31  ;;  %4103 = vpow2.f32 %v3670_v42  ;;  %v3663_v19 = vmul.f32 -1.442695, %v2183_v35  ;;  %v2486_v8 = vmul.f32 %v5443_v63, %v2485_v24  ;;  %v5557_v42 = vpop.f32.mrf.mxu1 }
 0xab2   :  { %v4094_v6 = vpop.eup %4093  ;;  %v2224_v58 = vadd.f32 %v5338_v48, %v5490_v9  ;;  %vm2624_vm10 = vweird.f32 %v5437_v1  ;;  %v2146_v52 = vadd.f32 %v2145_v12, %v5200_v20  ;;  %vm2489_vm11 = vweird.f32 %v5443_v63 }
 0xab3   :  { %v5458_v44 = vpop.eup %4095  ;;  %v1838_v54 = vmul.f32 %v4094_v6, %v1836_v22  ;;  %v3665_v22 = vmul.f32 -1.442695, %v2185_v13  ;;  %v2926_v6 = vsub.f32 1.0, %v5504_v3  ;;  %vm5551_vm12 = vcmp.eq.f32.partialorder %v2627_v36, 8.507059e+37  ;;  %vm5576_vm15 = vmor %vm2488_vm14, %vm2489_vm11 }
 0xab4   :  { %v4098_v26 = vpop.eup %4097  ;;  %v2454_v40 = vmul.f32 %v5458_v44, %v5394_v47  ;;  %v2494_v13 = vand.u32 2147483648, %v5384_v51  ;;  %vm2459_vm13 = vweird.f32 %v5458_v44  ;;  %v2492_v35 = vand.u32 2147483647, %v5384_v51  ;;  %vm5593_vm0 = vmor %vm2623_vm9, %vm2624_vm10 }
 0xab5   :  { %v4100_v34 = vpop.eup %4099  ;;  %v1840_v60 = vadd.f32 %v1838_v54, %v1834_v18  ;;  %v5492_v17 = vadd.f32 1.0, %v4098_v26  ;;  %v5531_v18 = vsel %vm5485_vm7, %v2600_v25, %v2596_v33  ;;  %v5537_v54 = vperm.slane %v5197_v49, 3  ;;  %v5546_v49 = vpop.f32.mrf.mxu2  ;;  %vm5601_vm2 = vmor %vm2458_vm1, %vm2459_vm13 }
 0xab6   :  { %v4102_v28 = vpop.eup %4101  ;;  %v5498_v2 = vadd.f32 1.0, %v4100_v34  ;;  %v2455_v23 = vsub.f32 1.0, %v2454_v40  ;;  %v2487_v34 = vadd.f32 %v5443_v63, %v2486_v8  ;;  %vm2493_vm3 = vcmp.eq.f32.partialorder %v2492_v35, 8.507059e+37 }
 0xab7   :  { %v3879_v55 = vpack.c.bf16 %v1840_v60, %v5417_v62  ;;  %v2620_v62 = vsub.f32 1.0, %v2619_v16  ;;  %v5514_v38 = vadd.f32 1.0, %v4102_v28  ;;  %4105 = vrcp.f32 %v5492_v17  ;;  %v4104_v31 = vpop.eup %4103 }
 0xab8   :  { %4107 = vrcp.f32 %v5498_v2  ;;  %v2456_v10 = vmul.f32 %v5458_v44, %v2455_v23  ;;  %v2657_v26 = vand.u32 2147483647, %v5498_v2  ;;  %v2659_v48 = vand.u32 2147483648, %v5498_v2 }
 0xab9   :  { %3880 = vst [vmem:[#allocation4 + $0x38] sm:$0xff] %v3879_v55   ;;  %v2272_v5 = vpop.f32.mrf.mxu3  ;;  %4109 = vrcp.f32 %v5514_v38  ;;  %v2621_v7 = vmul.f32 %v5437_v1, %v2620_v62  ;;  %v2928_v60 = vsub.f32 1.0, %v5531_v18  ;;  %v2271_v40 = vadd.f32 %v5445_v53, %v5537_v54 }
 0xaba   :  { %4111 = vpow2.f32 %v3665_v22  ;;  %v2273_v43 = vadd.f32 %v2272_v5, %v5537_v54  ;;  %v2457_v24 = vadd.f32 %v5458_v44, %v2456_v10  ;;  %v3672_v53 = vmul.f32 -1.442695, %v2146_v52 }
 0xabb   :  { %4113 = vtanh.f32 %v2222_v59  ;;  %v2622_v55 = vadd.f32 %v5437_v1, %v2621_v7  ;;  %v2464_v62 = vand.u32 2147483648, %v5394_v47  ;;  %v5580_v33 = vor.u32 1.1754944e-38, %v2659_v48 }
 0xabc   :  { %4115 = vpow2.f32 %v3663_v19  ;;  %v2462_v23 = vand.u32 2147483647, %v5394_v47  ;;  %v2491_v22 = vsel %vm5576_vm15, %v5443_v63, %v2487_v34  ;;  %v5597_v12 = vadd.f32 1.0, %v4104_v31 }
 0xabd   :  { %v5555_v28 = vpop.eup %4105  ;;  %4117 = vtanh.f32 %v2224_v58  ;;  %v2495_v47 = vor.u32 1.1754944e-38, %v2494_v13  ;;  %v2626_v63 = vsel %vm5593_vm0, %v5437_v1, %v2622_v55  ;;  %v2190_v58 = vadd.f32 %v5494_v56, %v5255_v37 }
 0xabe   :  { %v5565_v29 = vpop.eup %4107  ;;  %4119 = vtanh.f32 %v2273_v43  ;;  %v2544_v51 = vmul.f32 %v5555_v28, %v5492_v17  ;;  %v2461_v7 = vsel %vm5601_vm2, %v5458_v44, %v2457_v24  ;;  %v2465_v48 = vor.u32 1.1754944e-38, %v2464_v62  ;;  %v5629_v24 = vpop.f32.mrf.mxu2 }
 0xabf   :  { %v5571_v50 = vpop.eup %4109  ;;  %4121 = vtanh.f32 %v2271_v40  ;;  %v2649_v52 = vmul.f32 %v5565_v29, %v5498_v2  ;;  %v2496_v1 = vsel %vm2493_vm3, %v2495_v47, %v2491_v22  ;;  %v2188_v34 = vadd.f32 %v5415_v11, %v5255_v37 }
 0xac0   :  { %v3792_v16 = vld [vmem:[#allocation4 + $0x38] sm:$0xff]  ;;  %v4112_v25 = vpop.eup %4111  ;;  %v2514_v8 = vmul.f32 %v5571_v50, %v5514_v38  ;;  %4123 = vpow2.f32 %v3672_v53  ;;  %v2545_v31 = vsub.f32 1.0, %v2544_v51  ;;  %vm2463_vm4 = vcmp.eq.f32.partialorder %v2462_v23, 8.507059e+37 }
 0xac1   :  { %v5562_v14 = vpop.f32.mrf.mxu3  ;;  %2157 = vmatmul.bf16.gmra.mxu0 %v3792_v16  ;;  %2206 = vmatmul.bf16.gmra.mxu1 %v3792_v16  ;;  %v4114_v59 = vpop.eup %4113  ;;  %v5617_v43 = vadd.f32 1.0, %v4112_v25  ;;  %4125 = vrcp.f32 %v5597_v12  ;;  %v2466_v44 = vsel %vm2463_vm4, %v2465_v48, %v2461_v7  ;;  %v5627_v13 = vsel %vm5551_vm12, %v5525_v32, %v2626_v63 }
 0xac2   :  { %2255 = vmatmul.bf16.gmra.mxu2 %v3792_v16  ;;  %2304 = vmatmul.bf16.gmra.mxu3 %v3792_v16  ;;  %v4116_v30 = vpop.eup %4115  ;;  %v2515_v55 = vsub.f32 1.0, %v2514_v8  ;;  %v3669_v35 = vmul.f32 -1.442695, %v2190_v58  ;;  %v2921_v53 = vsub.f32 1.0, %v2496_v1  ;;  %v2687_v11 = vand.u32 2147483647, %v5597_v12  ;;  %v2148_v25 = vpop.f32.mrf.mxu0 }
 0xac3   :  { %v4118_v10 = vpop.eup %4117  ;;  %v5622_v16 = vadd.f32 1.0, %v4116_v30  ;;  %v2650_v5 = vsub.f32 1.0, %v2649_v52  ;;  %v2227_v23 = vadd.f32 %v5411_v41, %v5490_v9  ;;  %4127 = vrcp.f32 %v5617_v43  ;;  %v2194_v32 = vpop.f32.mrf.mxu1 }
 0xac4   :  { %v4120_v56 = vpop.eup %4119  ;;  %v2984_v51 = vmul.f32 %v4118_v10, %v2920_v57  ;;  %vm2654_vm5 = vweird.f32 %v5565_v29  ;;  %v3667_v21 = vmul.f32 -1.442695, %v2188_v34  ;;  %v2919_v22 = vsub.f32 1.0, %v2466_v44 }
 0xac5   :  { %v4122_v62 = vpop.eup %4121  ;;  %v2985_v36 = vmul.f32 %v4120_v56, %v2921_v53  ;;  %v2546_v19 = vmul.f32 %v5555_v28, %v2545_v31  ;;  %v2982_v47 = vmul.f32 %v4114_v59, %v2918_v45  ;;  %4129 = vrcp.f32 %v5622_v16 }
 0xac6   :  { %vm2653_vm6 = vweird.f32 %v5498_v2  ;;  %v2930_v57 = vsub.f32 1.0, %v5627_v13  ;;  %v4124_v41 = vpop.eup %4123  ;;  %v2149_v63 = vadd.f32 %v2148_v25, %v5200_v20  ;;  %4131 = vpow2.f32 %v3669_v35 }
 0xac7   :  { %v2983_v30 = vmul.f32 %v4122_v62, %v2919_v22  ;;  %v2516_v8 = vmul.f32 %v5571_v50, %v2515_v55  ;;  %v5648_v58 = vpop.eup %4125  ;;  %v3014_v61 = vpack.c.bf16 %v2984_v51, %v2982_v47  ;;  %4133 = vtanh.f32 %v2227_v23  ;;  %vm5713_vm15 = vmor %vm2653_vm6, %vm2654_vm5 }
 0xac8   :  { %v2651_v4 = vmul.f32 %v5565_v29, %v2650_v5  ;;  %4135 = vpow2.f32 %v3667_v21  ;;  %v2547_v7 = vadd.f32 %v5555_v28, %v2546_v19  ;;  %vm2549_vm7 = vweird.f32 %v5555_v28  ;;  %v5684_v5 = vpop.f32.mrf.mxu2 }
 0xac9   :  { %v2277_v40 = vpop.f32.mrf.mxu3  ;;  %v3015_v59 = vpack.c.bf16 %v2985_v36, %v2983_v30  ;;  %v5654_v10 = vpop.eup %4127  ;;  %4137 = vtanh.f32 %v2229_v27  ;;  %v2276_v52 = vadd.f32 %v5562_v14, %v5537_v54  ;;  %v2554_v1 = vand.u32 2147483648, %v5492_v17 }
 0xaca   :  { %v2278_v45 = vadd.f32 %v2277_v40, %v5537_v54  ;;  %vm5663_vm8 = vcmp.eq.f32.partialorder %v2657_v26, 8.507059e+37  ;;  %v2689_v34 = vand.u32 2147483648, %v5597_v12  ;;  %v2517_v56 = vadd.f32 %v5571_v50, %v2516_v8 }
 0xacb   :  { %vm2519_vm9 = vweird.f32 %v5571_v50  ;;  %vm2548_vm10 = vweird.f32 %v5492_v17  ;;  %v2552_v14 = vand.u32 2147483647, %v5492_v17  ;;  %v5672_v44 = vpop.eup %4129  ;;  %v3674_v40 = vmul.f32 -1.442695, %v2149_v63  ;;  %v5695_v22 = vpop.f32.mrf.mxu1 }
 0xacc   :  { %4139 = vtanh.f32 %v2278_v45  ;;  %v2524_v26 = vand.u32 2147483648, %v5514_v38  ;;  %vm5677_vm11 = vmor %vm2548_vm10, %vm2549_vm7  ;;  %v2652_v35 = vadd.f32 %v5565_v29, %v2651_v4  ;;  %v4132_v53 = vpop.eup %4131  ;;  %v2604_v62 = vmul.f32 %v5654_v10, %v5617_v43 }
 0xacd   :  { %vm2518_vm12 = vweird.f32 %v5514_v38  ;;  %v2522_v17 = vand.u32 2147483647, %v5514_v38  ;;  %v2551_v25 = vsel %vm5677_vm11, %v5555_v28, %v2547_v7  ;;  %v4134_v51 = vpop.eup %4133  ;;  %v2679_v23 = vmul.f32 %v5648_v58, %v5597_v12 }
 0xace   :  { %v5693_v21 = vadd.f32 1.0, %v4124_v41  ;;  %4141 = vtanh.f32 %v2276_v52  ;;  %vm5699_vm13 = vmor %vm2518_vm12, %vm2519_vm9  ;;  %v2555_v38 = vor.u32 1.1754944e-38, %v2554_v1  ;;  %v4136_v19 = vpop.eup %4135  ;;  %v2574_v28 = vmul.f32 %v5672_v44, %v5622_v16 }
 0xacf   :  { %v2195_v47 = vadd.f32 %v2194_v32, %v5255_v37  ;;  %v2521_v27 = vsel %vm5699_vm13, %v5571_v50, %v2517_v56  ;;  %vm2553_vm14 = vcmp.eq.f32.partialorder %v2552_v14, 8.507059e+37  ;;  %v4138_v63 = vpop.eup %4137  ;;  %v5717_v30 = vadd.f32 1.0, %v4132_v53 }
 0xad0   :  { %v2525_v8 = vor.u32 1.1754944e-38, %v2524_v26  ;;  %v2656_v32 = vsel %vm5713_vm15, %v5565_v29, %v2652_v35  ;;  %4143 = vpow2.f32 %v3674_v40  ;;  %v2605_v50 = vsub.f32 1.0, %v2604_v62 }
 0xad1   :  { %v5658_v48 = vpop.f32.mrf.mxu3  ;;  %3170 = vmatmul.bf16.vlgmr.msrb.gmra.mxu0 %v3014_v61  ;;  %3219 = vmatmul.bf16.vlgmr.msrb.gmra.mxu1 %v3015_v59  ;;  %v2556_v61 = vsel %vm2553_vm14, %v2555_v38, %v2551_v25  ;;  %v2193_v45 = vadd.f32 %v5557_v42, %v5255_v37  ;;  %vm2523_vm1 = vcmp.eq.f32.partialorder %v2522_v17, 8.507059e+37  ;;  %4145 = vrcp.f32 %v5693_v21 }
 0xad2   :  { %v4140_v2 = vpop.eup %4139  ;;  %v5725_v4 = vadd.f32 1.0, %v4136_v19  ;;  %v2526_v7 = vsel %vm2523_vm1, %v2525_v8, %v2521_v27  ;;  %v5727_v52 = vor.u32 1.1754944e-38, %v2689_v34  ;;  %v2575_v1 = vsub.f32 1.0, %v2574_v28  ;;  %v2150_v34 = vpop.f32.mrf.mxu0 }
 0xad3   :  { %v3673_v56 = vmul.f32 -1.442695, %v2195_v47  ;;  %v2925_v14 = vsub.f32 1.0, %v2556_v61  ;;  %v5732_v29 = vsel %vm5663_vm8, %v5580_v33, %v2656_v32  ;;  %v2680_v42 = vsub.f32 1.0, %v2679_v23 }
 0xad4   :  { %v4142_v40 = vpop.eup %4141  ;;  %v2232_v26 = vadd.f32 %v5546_v49, %v5490_v9  ;;  %4147 = vrcp.f32 %v5717_v30  ;;  %v2988_v55 = vmul.f32 %v4138_v63, %v2924_v15  ;;  %v3671_v35 = vmul.f32 -1.442695, %v2193_v45  ;;  %v5747_v15 = vpop.f32.mrf.mxu2 }
 0xad5   :  { %v2923_v53 = vsub.f32 1.0, %v2526_v7  ;;  %v2989_v62 = vmul.f32 %v4140_v2, %v2925_v14  ;;  %v2606_v17 = vmul.f32 %v5654_v10, %v2605_v50  ;;  %vm2684_vm0 = vweird.f32 %v5648_v58 }
 0xad6   :  { %v2234_v33 = vadd.f32 %v5629_v24, %v5490_v9  ;;  %4149 = vrcp.f32 %v5725_v4  ;;  %v2986_v49 = vmul.f32 %v4134_v51, %v2922_v39  ;;  %v2717_v31 = vand.u32 2147483647, %v5693_v21  ;;  %v4144_v46 = vpop.eup %4143  ;;  %v2199_v24 = vpop.f32.mrf.mxu1 }
 0xad7   :  { %4151 = vpow2.f32 %v3673_v56  ;;  %v2987_v25 = vmul.f32 %v4142_v40, %v2923_v53  ;;  %v2576_v23 = vmul.f32 %v5672_v44, %v2575_v1  ;;  %v2932_v36 = vsub.f32 1.0, %v5732_v29  ;;  %v5752_v38 = vpop.eup %4145 }
 0xad8   :  { %vm2683_vm2 = vweird.f32 %v5597_v12  ;;  %4153 = vtanh.f32 %v2232_v26  ;;  %v3016_v39 = vpack.c.bf16 %v2988_v55, %v2986_v49  ;;  %v2681_v51 = vmul.f32 %v5648_v58, %v2680_v42 }
 0xad9   :  { %v2282_v59 = vpop.f32.mrf.mxu3  ;;  %4155 = vpow2.f32 %v3671_v35  ;;  %v3017_v19 = vpack.c.bf16 %v2989_v62, %v2987_v25  ;;  %v2607_v28 = vadd.f32 %v5654_v10, %v2606_v17  ;;  %vm2609_vm3 = vweird.f32 %v5654_v10  ;;  %vm5814_vm11 = vmor %vm2683_vm2, %vm2684_vm0 }
 0xada   :  { %v2283_v0 = vadd.f32 %v2282_v59, %v5537_v54  ;;  %v5758_v47 = vpop.eup %4147  ;;  %v2151_v27 = vadd.f32 %v2150_v34, %v5200_v20  ;;  %4157 = vtanh.f32 %v2234_v33  ;;  %v2281_v41 = vadd.f32 %v5658_v48, %v5537_v54 }
 0xadb   :  { %v2614_v8 = vand.u32 2147483648, %v5617_v43  ;;  %v2577_v61 = vadd.f32 %v5672_v44, %v2576_v23  ;;  %vm2579_vm4 = vweird.f32 %v5672_v44  ;;  %vm2608_vm5 = vweird.f32 %v5617_v43 }
 0xadc   :  { %v2612_v32 = vand.u32 2147483647, %v5617_v43  ;;  %vm5772_vm6 = vcmp.eq.f32.partialorder %v2687_v11, 8.507059e+37  ;;  %v5776_v48 = vpop.eup %4149  ;;  %4159 = vtanh.f32 %v2283_v0  ;;  %v2584_v45 = vand.u32 2147483648, %v5622_v16  ;;  %vm5781_vm7 = vmor %vm2608_vm5, %vm2609_vm3  ;;  %v2153_v11 = vpop.f32.mrf.mxu0 }
 0xadd   :  { %v2682_v59 = vadd.f32 %v5648_v58, %v2681_v51  ;;  %v2719_v43 = vand.u32 2147483648, %v5693_v21  ;;  %v4152_v7 = vpop.eup %4151  ;;  %v2664_v1 = vmul.f32 %v5758_v47, %v5717_v30  ;;  %vm2578_vm8 = vweird.f32 %v5622_v16 }
 0xade   :  { %v2582_v56 = vand.u32 2147483647, %v5622_v16  ;;  %v2611_v14 = vsel %vm5781_vm7, %v5654_v10, %v2607_v28  ;;  %v4154_v40 = vpop.eup %4153  ;;  %v5794_v42 = vadd.f32 1.0, %v4144_v46  ;;  %v3676_v26 = vmul.f32 -1.442695, %v2151_v27  ;;  %vm5798_vm9 = vmor %vm2578_vm8, %vm2579_vm4 }
 0xadf   :  { %4161 = vtanh.f32 %v2281_v41  ;;  %v2615_v34 = vor.u32 1.1754944e-38, %v2614_v8  ;;  %v4156_v35 = vpop.eup %4155  ;;  %v2634_v16 = vmul.f32 %v5776_v48, %v5725_v4  ;;  %v2200_v53 = vadd.f32 %v2199_v24, %v5255_v37  ;;  %v5820_v24 = vpop.f32.mrf.mxu2 }
 0xae0   :  { %v2581_v10 = vsel %vm5798_vm9, %v5672_v44, %v2577_v61  ;;  %vm2613_vm10 = vcmp.eq.f32.partialorder %v2612_v32, 8.507059e+37  ;;  %v4158_v62 = vpop.eup %4157  ;;  %v5808_v17 = vadd.f32 1.0, %v4152_v7  ;;  %v2585_v33 = vor.u32 1.1754944e-38, %v2584_v45 }
 0xae1   :  { %v5763_v63 = vpop.f32.mrf.mxu3  ;;  %3175 = vmatmul.bf16.gmra.mxu0 %v3016_v39  ;;  %3224 = vmatmul.bf16.gmra.mxu1 %v3017_v19  ;;  %v2616_v49 = vsel %vm2613_vm10, %v2615_v34, %v2611_v14  ;;  %v5818_v25 = vor.u32 1.1754944e-38, %v2719_v43  ;;  %v2665_v23 = vsub.f32 1.0, %v2664_v1  ;;  %v2198_v44 = vadd.f32 %v5695_v22, %v5255_v37  ;;  %v5833_v19 = vpop.f32.mrf.mxu1 }
 0xae2   :  { %vm2583_vm12 = vcmp.eq.f32.partialorder %v2582_v56, 8.507059e+37  ;;  %v2686_v0 = vsel %vm5814_vm11, %v5648_v58, %v2682_v59  ;;  %v4160_v39 = vpop.eup %4159  ;;  %v5829_v12 = vmul.f32 %v5752_v38, %v5693_v21  ;;  %4163 = vpow2.f32 %v3676_v26 }
 0xae3   :  { %v5831_v51 = vadd.f32 1.0, %v4156_v35  ;;  %v2586_v27 = vsel %vm2583_vm12, %v2585_v33, %v2581_v10  ;;  %4165 = vrcp.f32 %v5794_v42  ;;  %v2635_v22 = vsub.f32 1.0, %v2634_v16 }
 0xae4   :  { %v3677_v41 = vmul.f32 -1.442695, %v2200_v53  ;;  %v2929_v8 = vsub.f32 1.0, %v2616_v49  ;;  %v2237_v58 = vadd.f32 %v5684_v5, %v5490_v9  ;;  %4167 = vrcp.f32 %v5808_v17  ;;  %v2155_v50 = vpop.f32.mrf.mxu0 }
 0xae5   :  { %v4162_v61 = vpop.eup %4161  ;;  %v2992_v32 = vmul.f32 %v4158_v62, %v2928_v60  ;;  %v5844_v45 = vsel %vm5772_vm6, %v5727_v52, %v2686_v0  ;;  %v3675_v2 = vmul.f32 -1.442695, %v2198_v44  ;;  %v2927_v59 = vsub.f32 1.0, %v2586_v27 }
 0xae6   :  { %v2993_v43 = vmul.f32 %v4160_v39, %v2929_v8  ;;  %v2666_v7 = vmul.f32 %v5758_v47, %v2665_v23  ;;  %v2239_v1 = vadd.f32 %v5747_v15, %v5490_v9  ;;  %4169 = vrcp.f32 %v5831_v51 }
 0xae7   :  { %v2990_v5 = vmul.f32 %v4154_v40, %v2926_v6  ;;  %v2747_v18 = vand.u32 2147483647, %v5794_v42  ;;  %v2710_v60 = vsub.f32 1.0, %v5829_v12  ;;  %4171 = vpow2.f32 %v3677_v41  ;;  %v2243_v10 = vpop.f32.mrf.mxu2 }
 0xae8   :  { %v2991_v52 = vmul.f32 %v4162_v61, %v2927_v59  ;;  %v2636_v56 = vmul.f32 %v5776_v48, %v2635_v22  ;;  %v4164_v14 = vpop.eup %4163  ;;  %v2154_v26 = vadd.f32 %v2153_v11, %v5200_v20  ;;  %4173 = vtanh.f32 %v2237_v58 }
 0xae9   :  { %v2287_v28 = vpop.f32.mrf.mxu3  ;;  %v3018_v55 = vpack.c.bf16 %v2992_v32, %v2990_v5  ;;  %v5857_v34 = vpop.eup %4165  ;;  %4175 = vpow2.f32 %v3675_v2  ;;  %v2667_v6 = vadd.f32 %v5758_v47, %v2666_v7  ;;  %vm2669_vm13 = vweird.f32 %v5758_v47 }
 0xaea   :  { %v2288_v15 = vadd.f32 %v2287_v28, %v5537_v54  ;;  %v3019_v3 = vpack.c.bf16 %v2993_v43, %v2991_v52  ;;  %v5861_v40 = vpop.eup %4167  ;;  %v2156_v35 = vadd.f32 %v2155_v50, %v5200_v20  ;;  %4177 = vtanh.f32 %v2239_v1  ;;  %v2204_v23 = vpop.f32.mrf.mxu1 }
 0xaeb   :  { %v2286_v11 = vadd.f32 %v5763_v63, %v5537_v54  ;;  %v2674_v53 = vand.u32 2147483648, %v5717_v30  ;;  %v2637_v62 = vadd.f32 %v5776_v48, %v2636_v56  ;;  %vm2639_vm14 = vweird.f32 %v5776_v48 }
 0xaec   :  { %vm2668_vm15 = vweird.f32 %v5717_v30  ;;  %v2672_v33 = vand.u32 2147483647, %v5717_v30  ;;  %v5873_v49 = vpop.eup %4169  ;;  %v3678_v46 = vmul.f32 -1.442695, %v2154_v26  ;;  %4179 = vtanh.f32 %v2288_v15 }
 0xaed   :  { %v2644_v63 = vand.u32 2147483648, %v5725_v4  ;;  %vm5878_vm1 = vmor %vm2668_vm15, %vm2669_vm13  ;;  %vm2714_vm0 = vweird.f32 %v5752_v38  ;;  %v2934_v0 = vsub.f32 1.0, %v5844_v45  ;;  %v4172_v39 = vpop.eup %4171  ;;  %v2724_v30 = vmul.f32 %v5861_v40, %v5808_v17 }
 0xaee   :  { %vm2638_vm2 = vweird.f32 %v5725_v4  ;;  %v2642_v12 = vand.u32 2147483647, %v5725_v4  ;;  %v2671_v28 = vsel %vm5878_vm1, %v5758_v47, %v2667_v6  ;;  %v4174_v27 = vpop.eup %4173  ;;  %v5891_v22 = vadd.f32 1.0, %v4164_v14 }
 0xaef   :  { %v3680_v41 = vmul.f32 -1.442695, %v2156_v35  ;;  %4181 = vtanh.f32 %v2286_v11  ;;  %vm5895_vm3 = vmor %vm2638_vm2, %vm2639_vm14  ;;  %v2675_v61 = vor.u32 1.1754944e-38, %v2674_v53  ;;  %vm2713_vm4 = vweird.f32 %v5693_v21  ;;  %v4176_v58 = vpop.eup %4175  ;;  %v5921_v11 = vpop.f32.mrf.mxu2 }
 0xaf0   :  { %v2694_v4 = vmul.f32 %v5873_v49, %v5831_v51  ;;  %v2205_v47 = vadd.f32 %v2204_v23, %v5255_v37  ;;  %v2641_v32 = vsel %vm5895_vm3, %v5776_v48, %v2637_v62  ;;  %vm2673_vm5 = vcmp.eq.f32.partialorder %v2672_v33, 8.507059e+37  ;;  %v4178_v2 = vpop.eup %4177  ;;  %vm5944_vm8 = vmor %vm2713_vm4, %vm2714_vm0 }
 0xaf1   :  { %v5866_v16 = vpop.f32.mrf.mxu3  ;;  %3180 = vmatmul.bf16.gmra.mxu0 %v3018_v55  ;;  %3229 = vmatmul.bf16.gmra.mxu1 %v3019_v3  ;;  %v5906_v59 = vadd.f32 1.0, %v4172_v39  ;;  %v2645_v43 = vor.u32 1.1754944e-38, %v2644_v63  ;;  %v2676_v7 = vsel %vm2673_vm5, %v2675_v61, %v2671_v28  ;;  %v2711_v1 = vmul.f32 %v5752_v38, %v2710_v60 }
 0xaf2   :  { %4183 = vpow2.f32 %v3678_v46  ;;  %v2725_v5 = vsub.f32 1.0, %v2724_v30  ;;  %v2203_v50 = vadd.f32 %v5833_v19, %v5255_v37  ;;  %vm2643_vm6 = vcmp.eq.f32.partialorder %v2642_v12, 8.507059e+37  ;;  %v4180_v52 = vpop.eup %4179 }
 0xaf3   :  { %4185 = vrcp.f32 %v5891_v22  ;;  %v5912_v56 = vadd.f32 1.0, %v4176_v58  ;;  %v2646_v14 = vsel %vm2643_vm6, %v2645_v43, %v2641_v32  ;;  %v2749_v26 = vand.u32 2147483648, %v5794_v42 }
 0xaf4   :  { %4187 = vpow2.f32 %v3680_v41  ;;  %v2695_v15 = vsub.f32 1.0, %v2694_v4  ;;  %v3681_v55 = vmul.f32 -1.442695, %v2205_v47  ;;  %v2933_v3 = vsub.f32 1.0, %v2676_v7 }
 0xaf5   :  { %v4182_v60 = vpop.eup %4181  ;;  %v2242_v6 = vadd.f32 %v5820_v24, %v5490_v9  ;;  %4189 = vrcp.f32 %v5906_v59  ;;  %v2996_v19 = vmul.f32 %v4178_v2, %v2932_v36  ;;  %v2712_v35 = vadd.f32 %v5752_v38, %v2711_v1 }
 0xaf6   :  { %v3679_v53 = vmul.f32 -1.442695, %v2203_v50  ;;  %v2931_v62 = vsub.f32 1.0, %v2646_v14  ;;  %v2997_v33 = vmul.f32 %v4180_v52, %v2933_v3  ;;  %vm5925_vm7 = vcmp.eq.f32.partialorder %v2717_v31, 8.507059e+37 }
 0xaf7   :  { %v2726_v24 = vmul.f32 %v5861_v40, %v2725_v5  ;;  %v2244_v23 = vadd.f32 %v2243_v10, %v5490_v9  ;;  %4191 = vrcp.f32 %v5912_v56  ;;  %v2994_v29 = vmul.f32 %v4174_v27, %v2930_v57 }
 0xaf8   :  { %v5934_v36 = vor.u32 1.1754944e-38, %v2749_v26  ;;  %v4184_v63 = vpop.eup %4183  ;;  %v5938_v44 = vmul.f32 %v5857_v34, %v5794_v42  ;;  %4193 = vpow2.f32 %v3681_v55  ;;  %v2995_v31 = vmul.f32 %v4182_v60, %v2931_v62  ;;  %v2248_v55 = vpop.f32.mrf.mxu2 }
 0xaf9   :  { %v2292_v48 = vpop.f32.mrf.mxu3  ;;  %v2696_v13 = vmul.f32 %v5873_v49, %v2695_v15  ;;  %v5949_v57 = vpop.eup %4185  ;;  %4195 = vtanh.f32 %v2242_v6  ;;  %v3020_v30 = vpack.c.bf16 %v2996_v19, %v2994_v29  ;;  %v2716_v12 = vsel %vm5944_vm8, %v5752_v38, %v2712_v35 }
 0xafa   :  { %v2293_v39 = vadd.f32 %v2292_v48, %v5537_v54  ;;  %v4188_v28 = vpop.eup %4187  ;;  %4197 = vpow2.f32 %v3679_v53  ;;  %v3021_v27 = vpack.c.bf16 %v2997_v33, %v2995_v31  ;;  %v2727_v21 = vadd.f32 %v5861_v40, %v2726_v24 }
 0xafb   :  { %vm2729_vm9 = vweird.f32 %v5861_v40  ;;  %v5957_v41 = vpop.eup %4189  ;;  %v5959_v8 = vadd.f32 1.0, %v4184_v63  ;;  %4199 = vtanh.f32 %v2244_v23  ;;  %v2291_v61 = vadd.f32 %v5866_v16, %v5537_v54 }
 0xafc   :  { %v2734_v4 = vand.u32 2147483648, %v5808_v17  ;;  %v2697_v38 = vadd.f32 %v5873_v49, %v2696_v13  ;;  %vm2699_vm10 = vweird.f32 %v5873_v49  ;;  %vm2728_vm11 = vweird.f32 %v5808_v17 }
 0xafd   :  { %v2732_v47 = vand.u32 2147483647, %v5808_v17  ;;  %v5970_v32 = vpop.eup %4191  ;;  %v2769_v2 = vmul.f32 %v5949_v57, %v5891_v22  ;;  %v5974_v16 = vadd.f32 1.0, %v4188_v28  ;;  %4201 = vtanh.f32 %v2293_v39  ;;  %vm5979_vm12 = vmor %vm2728_vm11, %vm2729_vm9 }
 0xafe   :  { %v2704_v43 = vand.u32 2147483648, %v5831_v51  ;;  %v4194_v1 = vpop.eup %4193  ;;  %v2784_v17 = vmul.f32 %v5957_v41, %v5906_v59  ;;  %vm2698_vm13 = vweird.f32 %v5831_v51  ;;  %v2702_v5 = vand.u32 2147483647, %v5831_v51 }
 0xaff   :  { %v2731_v50 = vsel %vm5979_vm12, %v5861_v40, %v2727_v21  ;;  %v4196_v52 = vpop.eup %4195  ;;  %v2740_v48 = vsub.f32 1.0, %v5938_v44  ;;  %4203 = vtanh.f32 %v2291_v61  ;;  %v2721_v14 = vsel %vm5925_vm7, %v5818_v25, %v2716_v12  ;;  %vm5996_vm14 = vmor %vm2698_vm13, %vm2699_vm10 }
 0xb00   :  { %v2735_v15 = vor.u32 1.1754944e-38, %v2734_v4  ;;  %v4198_v51 = vpop.eup %4197  ;;  %4205 = vrcp.f32 %v5959_v8  ;;  %v2754_v40 = vmul.f32 %v5970_v32, %v5912_v56  ;;  %v2701_v3 = vsel %vm5996_vm14, %v5873_v49, %v2697_v38 }
 0xb01   :  { %v5963_v58 = vpop.f32.mrf.mxu3  ;;  %3185 = vmatmul.bf16.gmra.mxu0 %v3020_v30  ;;  %3234 = vmatmul.bf16.gmra.mxu1 %v3021_v27  ;;  %vm2733_vm15 = vcmp.eq.f32.partialorder %v2732_v47, 8.507059e+37  ;;  %v4200_v25 = vpop.eup %4199  ;;  %v2770_v60 = vsub.f32 1.0, %v2769_v2  ;;  %v6006_v6 = vadd.f32 1.0, %v4194_v1  ;;  %v2705_v19 = vor.u32 1.1754944e-38, %v2704_v43 }
 0xb02   :  { %v2736_v35 = vsel %vm2733_vm15, %v2735_v15, %v2731_v50  ;;  %4207 = vrcp.f32 %v5974_v16  ;;  %v2785_v53 = vsub.f32 1.0, %v2784_v17  ;;  %vm2703_vm1 = vcmp.eq.f32.partialorder %v2702_v5, 8.507059e+37  ;;  %v6037_v5 = vpop.f32.mrf.mxu2 }
 0xb03   :  { %vm2743_vm0 = vweird.f32 %v5794_v42  ;;  %vm2744_vm2 = vweird.f32 %v5857_v34  ;;  %v4202_v62 = vpop.eup %4201  ;;  %v6011_v33 = vadd.f32 1.0, %v4198_v51  ;;  %v2706_v49 = vsel %vm2703_vm1, %v2705_v19, %v2701_v3 }
 0xb04   :  { %v2741_v24 = vmul.f32 %v5857_v34, %v2740_v48  ;;  %v2779_v23 = vand.u32 2147483648, %v5891_v22  ;;  %v2755_v29 = vsub.f32 1.0, %v2754_v40  ;;  %v2936_v63 = vsub.f32 1.0, %v2721_v14  ;;  %vm6051_vm6 = vmor %vm2743_vm0, %vm2744_vm2 }
 0xb05   :  { %v2937_v44 = vsub.f32 1.0, %v2736_v35  ;;  %vm2773_vm3 = vweird.f32 %v5891_v22  ;;  %v4204_v31 = vpop.eup %4203  ;;  %v2247_v10 = vadd.f32 %v5921_v11, %v5490_v9  ;;  %4209 = vrcp.f32 %v6006_v6 }
 0xb06   :  { %v2771_v13 = vmul.f32 %v5949_v57, %v2770_v60  ;;  %v2777_v39 = vand.u32 2147483647, %v5891_v22  ;;  %v6021_v30 = vpop.eup %4205  ;;  %v3000_v12 = vmul.f32 %v4200_v25, %v2936_v63  ;;  %v2935_v28 = vsub.f32 1.0, %v2706_v49 }
 0xb07   :  { %v3001_v27 = vmul.f32 %v4202_v62, %v2937_v44  ;;  %v2786_v21 = vmul.f32 %v5957_v41, %v2785_v53  ;;  %v2249_v61 = vadd.f32 %v2248_v55, %v5490_v9  ;;  %4211 = vrcp.f32 %v6011_v33 }
 0xb08   :  { %v2742_v4 = vadd.f32 %v5857_v34, %v2741_v24  ;;  %v2780_v11 = vor.u32 1.1754944e-38, %v2779_v23  ;;  %v6027_v38 = vpop.eup %4207  ;;  %v2998_v47 = vmul.f32 %v4196_v52, %v2934_v0  ;;  %v2999_v2 = vmul.f32 %v4204_v31, %v2935_v28 }
 0xb09   :  { %v2297_v46 = vpop.f32.mrf.mxu3  ;;  %vm2774_vm4 = vweird.f32 %v5949_v57  ;;  %v2756_v43 = vmul.f32 %v5970_v32, %v2755_v29  ;;  %v2799_v7 = vmul.f32 %v6021_v30, %v5959_v8  ;;  %4213 = vtanh.f32 %v2247_v10 }
 0xb0a   :  { %v2298_v1 = vadd.f32 %v2297_v46, %v5537_v54  ;;  %v2772_v17 = vadd.f32 %v5949_v57, %v2771_v13  ;;  %v3022_v50 = vpack.c.bf16 %v3000_v12, %v2998_v47  ;;  %v3023_v48 = vpack.c.bf16 %v3001_v27, %v2999_v2  ;;  %vm6062_vm7 = vmor %vm2773_vm3, %vm2774_vm4 }
 0xb0b   :  { %v2787_v45 = vadd.f32 %v5957_v41, %v2786_v21  ;;  %vm2789_vm5 = vweird.f32 %v5957_v41  ;;  %v6041_v0 = vpop.eup %4209  ;;  %v2829_v52 = vmul.f32 %v6027_v38, %v5974_v16  ;;  %4215 = vtanh.f32 %v2249_v61 }
 0xb0c   :  { %v2296_v14 = vadd.f32 %v5963_v58, %v5537_v54  ;;  %v2794_v15 = vand.u32 2147483648, %v5906_v59  ;;  %v2757_v40 = vadd.f32 %v5970_v32, %v2756_v43  ;;  %vm2759_vm8 = vweird.f32 %v5970_v32 }
 0xb0d   :  { %vm2788_vm9 = vweird.f32 %v5906_v59  ;;  %v2792_v55 = vand.u32 2147483647, %v5906_v59  ;;  %v6070_v3 = vpop.eup %4211  ;;  %4217 = vtanh.f32 %v2298_v1  ;;  %v2746_v25 = vsel %vm6051_vm6, %v5857_v34, %v2742_v4 }
 0xb0e   :  { %v2776_v22 = vsel %vm6062_vm7, %v5949_v57, %v2772_v17  ;;  %v2764_v60 = vand.u32 2147483648, %v5912_v56  ;;  %vm6081_vm10 = vmor %vm2788_vm9, %vm2789_vm5  ;;  %v2844_v59 = vmul.f32 %v6041_v0, %v6006_v6  ;;  %vm2758_vm11 = vweird.f32 %v5912_v56 }
 0xb0f   :  { %v2762_v35 = vand.u32 2147483647, %v5912_v56  ;;  %v2791_v34 = vsel %vm6081_vm10, %v5957_v41, %v2787_v45  ;;  %v4214_v57 = vpop.eup %4213  ;;  %v2800_v53 = vsub.f32 1.0, %v2799_v7  ;;  %v2830_v62 = vsub.f32 1.0, %v2829_v52  ;;  %vm6094_vm12 = vmor %vm2758_vm11, %vm2759_vm8 }
 0xb10   :  { %4219 = vtanh.f32 %v2296_v14  ;;  %v2795_v49 = vor.u32 1.1754944e-38, %v2794_v15  ;;  %v2814_v24 = vmul.f32 %v6070_v3, %v6011_v33  ;;  %vm2778_vm13 = vcmp.eq.f32.partialorder %v2777_v39, 8.507059e+37 }
 0xb11   :  { %v6056_v51 = vpop.f32.mrf.mxu3  ;;  %3190 = vmatmul.bf16.gmra.mxu0 %v3022_v50  ;;  %3239 = vmatmul.bf16.gmra.mxu1 %v3023_v48  ;;  %v2761_v56 = vsel %vm6094_vm12, %v5970_v32, %v2757_v40  ;;  %vm2793_vm14 = vcmp.eq.f32.partialorder %v2792_v55, 8.507059e+37  ;;  %v4216_v41 = vpop.eup %4215  ;;  %vm2748_vm15 = vcmp.eq.f32.partialorder %v2747_v18, 8.507059e+37  ;;  %v2781_v23 = vsel %vm2778_vm13, %v2780_v11, %v2776_v22 }
 0xb12   :  { %v2765_v29 = vor.u32 1.1754944e-38, %v2764_v60  ;;  %v2796_v63 = vsel %vm2793_vm14, %v2795_v49, %v2791_v34  ;;  %v2845_v44 = vsub.f32 1.0, %v2844_v59  ;;  %v2751_v31 = vsel %vm2748_vm15, %v5934_v36, %v2746_v25  ;;  %v2253_v32 = vpop.f32.mrf.mxu2 }
 0xb13   :  { %vm2763_vm1 = vcmp.eq.f32.partialorder %v2762_v35, 8.507059e+37  ;;  %v4218_v10 = vpop.eup %4217  ;;  %v2801_v39 = vmul.f32 %v6021_v30, %v2800_v53  ;;  %v2831_v12 = vmul.f32 %v6027_v38, %v2830_v62  ;;  %v2815_v28 = vsub.f32 1.0, %v2814_v24 }
 0xb14   :  { %v2766_v13 = vsel %vm2763_vm1, %v2765_v29, %v2761_v56  ;;  %v2940_v27 = vsub.f32 1.0, %v2781_v23  ;;  %v2941_v21 = vsub.f32 1.0, %v2796_v63  ;;  %v2938_v42 = vsub.f32 1.0, %v2751_v31 }
 0xb15   :  { %vm2803_vm0 = vweird.f32 %v5959_v8  ;;  %v2807_v18 = vand.u32 2147483647, %v5959_v8  ;;  %v2939_v36 = vsub.f32 1.0, %v2766_v13  ;;  %v2846_v2 = vmul.f32 %v6041_v0, %v2845_v44 }
 0xb16   :  { %v4220_v61 = vpop.eup %4219  ;;  %v3004_v11 = vmul.f32 %v4216_v41, %v2940_v27  ;;  %v3005_v47 = vmul.f32 %v4218_v10, %v2941_v21  ;;  %v2254_v43 = vadd.f32 %v2253_v32, %v5490_v9  ;;  %v2802_v7 = vadd.f32 %v6021_v30, %v2801_v39 }
 0xb17   :  { %vm2804_vm2 = vweird.f32 %v6021_v30  ;;  %v2832_v1 = vadd.f32 %v6027_v38, %v2831_v12  ;;  %v3002_v17 = vmul.f32 %v4214_v57, %v2938_v42  ;;  %v3003_v50 = vmul.f32 %v4220_v61, %v2939_v36 }
 0xb18   :  { %vm2833_vm3 = vweird.f32 %v5974_v16  ;;  %v2816_v48 = vmul.f32 %v6070_v3, %v2815_v28  ;;  %v2252_v45 = vadd.f32 %v6037_v5, %v5490_v9  ;;  %vm2834_vm4 = vweird.f32 %v6027_v38  ;;  %vm6153_vm10 = vmor %vm2803_vm0, %vm2804_vm2 }
 0xb19   :  { %v2302_v4 = vpop.f32.mrf.mxu3  ;;  %v2837_v14 = vand.u32 2147483647, %v5974_v16  ;;  %v3024_v26 = vpack.c.bf16 %v3004_v11, %v3002_v17  ;;  %v3025_v15 = vpack.c.bf16 %v3005_v47, %v3003_v50  ;;  %v2847_v58 = vadd.f32 %v6041_v0, %v2846_v2  ;;  %vm6130_vm6 = vmor %vm2833_vm3, %vm2834_vm4 }
 0xb1a   :  { %v2303_v52 = vadd.f32 %v2302_v4, %v5537_v54  ;;  %vm2849_vm5 = vweird.f32 %v6041_v0  ;;  %4221 = vtanh.f32 %v2254_v43  ;;  %v2301_v40 = vadd.f32 %v6056_v51, %v5537_v54 }
 0xb1b   :  { %v2839_v55 = vand.u32 2147483648, %v5974_v16  ;;  %v2854_v5 = vand.u32 2147483648, %v6006_v6  ;;  %v2817_v22 = vadd.f32 %v6070_v3, %v2816_v48  ;;  %vm2819_vm7 = vweird.f32 %v6070_v3 }
 0xb1c   :  { %vm2848_vm8 = vweird.f32 %v6006_v6  ;;  %v2852_v51 = vand.u32 2147483647, %v6006_v6  ;;  %4223 = vtanh.f32 %v2303_v52  ;;  %v2809_v60 = vand.u32 2147483648, %v5959_v8 }
 0xb1d   :  { %v2836_v19 = vsel %vm6130_vm6, %v6027_v38, %v2832_v1  ;;  %v2824_v16 = vand.u32 2147483648, %v6011_v33  ;;  %vm6145_vm9 = vmor %vm2848_vm8, %vm2849_vm5  ;;  %4225 = vtanh.f32 %v2252_v45  ;;  %vm2818_vm11 = vweird.f32 %v6011_v33  ;;  %v6183_v45 = vld [vmem:[%s6273_s8] ss:$0 sm:$0xff]  ;;  %s4479_s8 = smov [#allocation17]  }
 0xb1e   :  { %v2822_v38 = vand.u32 2147483647, %v6011_v33  ;;  %v2851_v35 = vsel %vm6145_vm9, %v6041_v0, %v2847_v58  ;;  %4227 = vtanh.f32 %v2301_v40  ;;  %v2840_v34 = vor.u32 1.1754944e-38, %v2839_v55  ;;  %vm6164_vm12 = vmor %vm2818_vm11, %vm2819_vm7  ;;  %s3280_s27 = sshll.u32 %s4479_s8, 4  ;;  %s3281_s27 = int_to_ptr.vmem [resolvable:$true] %s3280_s27 }
 0xb1f   :  { %v2855_v8 = vor.u32 1.1754944e-38, %v2854_v5  ;;  %v2806_v53 = vsel %vm6153_vm10, %v6021_v30, %v2802_v7  ;;  %vm2838_vm13 = vcmp.eq.f32.partialorder %v2837_v14, 8.507059e+37  ;;  %v2821_v33 = vsel %vm6164_vm12, %v6070_v3, %v2817_v22 }
 0xb20   :  { %vm2853_vm14 = vcmp.eq.f32.partialorder %v2852_v51, 8.507059e+37  ;;  %v4222_v0 = vpop.eup %4221  ;;  %v2810_v62 = vor.u32 1.1754944e-38, %v2809_v60  ;;  %v2841_v46 = vsel %vm2838_vm13, %v2840_v34, %v2836_v19  ;;  %v2825_v49 = vor.u32 1.1754944e-38, %v2824_v16 }
 0xb21   :  { %3195 = vmatmul.bf16.gmra.mxu0 %v3024_v26  ;;  %3244 = vmatmul.bf16.gmra.mxu1 %v3025_v15  ;;  %v2856_v24 = vsel %vm2853_vm14, %v2855_v8, %v2851_v35  ;;  %vm2808_vm15 = vcmp.eq.f32.partialorder %v2807_v18, 8.507059e+37  ;;  %vm2823_vm1 = vcmp.eq.f32.partialorder %v2822_v38, 8.507059e+37  ;;  %v2944_v63 = vsub.f32 1.0, %v2841_v46 }
 0xb22   :  { %v4224_v56 = vpop.eup %4223  ;;  %v2811_v41 = vsel %vm2808_vm15, %v2810_v62, %v2806_v53  ;;  %v2826_v23 = vsel %vm2823_vm1, %v2825_v49, %v2821_v33  ;;  %v2945_v44 = vsub.f32 1.0, %v2856_v24 }
 0xb23   :  { %v4226_v29 = vpop.eup %4225  ;;  %v2942_v31 = vsub.f32 1.0, %v2811_v41  ;;  %v3008_v10 = vmul.f32 %v4222_v0, %v2944_v63  ;;  %v2943_v13 = vsub.f32 1.0, %v2826_v23 }
 0xb24   :  { %v4228_v30 = vpop.eup %4227  ;;  %v3009_v39 = vmul.f32 %v4224_v56, %v2945_v44 }
 0xb25   :  { %v3006_v3 = vmul.f32 %v4226_v29, %v2942_v31  ;;  %v3007_v12 = vmul.f32 %v4228_v30, %v2943_v13 }
 0xb27   :  { %v3026_v28 = vpack.c.bf16 %v3008_v10, %v3006_v3  ;;  %v3027_v32 = vpack.c.bf16 %v3009_v39, %v3007_v12 }
 0xb31   :  { %3200 = vmatmul.bf16.gmra.mxu0 %v3026_v28  ;;  %3249 = vmatmul.bf16.gmra.mxu1 %v3027_v32 }
 0xb3e   :  { %v2158_v27 = vpop.f32.mrf.mxu0  ;;  %v2207_v21 = vpop.f32.mrf.mxu1 }
 0xb3f   :  { %v2159_v61 = vadd.f32 %v2158_v27, %v5200_v20  ;;  %v2208_v42 = vadd.f32 %v2207_v21, %v5255_v37 }
 0xb41   :  { %v3682_v18 = vmul.f32 -1.442695, %v2159_v61  ;;  %v3683_v4 = vmul.f32 -1.442695, %v2208_v42 }
 0xb43   :  { %4229 = vpow2.f32 %v3682_v18 }
 0xb44   :  { %4231 = vpow2.f32 %v3683_v4 }
 0xb45   :  { %v2256_v52 = vpop.f32.mrf.mxu2  ;;  %v2305_v14 = vpop.f32.mrf.mxu3 }
 0xb46   :  { %v2160_v11 = vpop.f32.mrf.mxu0  ;;  %v2209_v36 = vpop.f32.mrf.mxu1  ;;  %v2257_v59 = vadd.f32 %v2256_v52, %v5490_v9  ;;  %v2306_v35 = vadd.f32 %v2305_v14, %v5537_v54 }
 0xb47   :  { %v2161_v47 = vadd.f32 %v2160_v11, %v5200_v20  ;;  %v2210_v2 = vadd.f32 %v2209_v36, %v5255_v37 }
 0xb49   :  { %v4230_v43 = vpop.eup %4229  ;;  %v3684_v7 = vmul.f32 -1.442695, %v2161_v47  ;;  %v3685_v50 = vmul.f32 -1.442695, %v2210_v2 }
 0xb4a   :  { %v4232_v1 = vpop.eup %4231  ;;  %v2434_v17 = vadd.f32 1.0, %v4230_v43 }
 0xb4b   :  { %v6178_v48 = vadd.f32 1.0, %v4232_v1  ;;  %4233 = vpow2.f32 %v3684_v7 }
 0xb4c   :  { %4235 = vrcp.f32 %v2434_v17  ;;  %v2867_v53 = vand.u32 2147483647, %v2434_v17  ;;  %v2869_v33 = vand.u32 2147483648, %v2434_v17  ;;  %vm2863_vm2 = vweird.f32 %v2434_v17 }
 0xb4d   :  { %4237 = vrcp.f32 %v6178_v48  ;;  %v2258_v34 = vpop.f32.mrf.mxu2  ;;  %v2307_v62 = vpop.f32.mrf.mxu3  ;;  %v2882_v24 = vand.u32 2147483647, %v6178_v48  ;;  %v2884_v23 = vand.u32 2147483648, %v6178_v48  ;;  %vm2878_vm3 = vweird.f32 %v6178_v48 }
 0xb4e   :  { %4239 = vpow2.f32 %v3685_v50  ;;  %v3171_v20 = vpop.f32.mrf.mxu0  ;;  %v3220_v37 = vpop.f32.mrf.mxu1  ;;  %v2259_v41 = vadd.f32 %v2258_v34, %v5490_v9  ;;  %v2308_v63 = vadd.f32 %v2307_v62, %v5537_v54  ;;  %vm6211_vm5 = vcmp.eq.f32.partialorder %v2867_v53, 8.507059e+37 }
 0xb4f   :  { %v3172_v26 = vadd.f32 %v6183_v45, %v3171_v20  ;;  %v2870_v39 = vor.u32 1.1754944e-38, %v2869_v33  ;;  %vm6219_vm7 = vcmp.eq.f32.partialorder %v2882_v24, 8.507059e+37  ;;  %v2885_v27 = vor.u32 1.1754944e-38, %v2884_v23 }
 0xb51   :  { %v4234_v15 = vpop.eup %4233  ;;  %v3221_v58 = vadd.f32 %v3220_v37, %v3172_v26 }
 0xb52   :  { %v4236_v40 = vpop.eup %4235  ;;  %v6187_v55 = vadd.f32 1.0, %v4234_v15 }
 0xb53   :  { %v6189_v5 = vpop.eup %4237  ;;  %v2859_v25 = vmul.f32 %v4236_v40, %v2434_v17  ;;  %3260 = vst [vmem:[#allocation17] sm:$0xff] %v3221_v58  ;;  %vm2864_vm0 = vweird.f32 %v4236_v40 }
 0xb54   :  { %v4240_v22 = vpop.eup %4239  ;;  %v2874_v51 = vmul.f32 %v6189_v5, %v6178_v48  ;;  %4241 = vrcp.f32 %v6187_v55  ;;  %vm6207_vm4 = vmor %vm2863_vm2, %vm2864_vm0  ;;  %vm2879_vm6 = vweird.f32 %v6189_v5  ;;  %v2899_v32 = vand.u32 2147483648, %v6187_v55 }
 0xb55   :  { %v2860_v60 = vsub.f32 1.0, %v2859_v25  ;;  %v6194_v19 = vadd.f32 1.0, %v4240_v22  ;;  %v2897_v42 = vand.u32 2147483647, %v6187_v55  ;;  %vm6231_vm9 = vmor %vm2878_vm3, %vm2879_vm6  ;;  %vm2893_vm10 = vweird.f32 %v6187_v55 }
 0xb56   :  { %v2875_v16 = vsub.f32 1.0, %v2874_v51  ;;  %v3173_v6 = vpop.f32.mrf.mxu0  ;;  %v3222_v38 = vpop.f32.mrf.mxu1  ;;  %v2900_v17 = vor.u32 1.1754944e-38, %v2899_v32 }
 0xb57   :  { %4243 = vrcp.f32 %v6194_v19  ;;  %v3174_v57 = vadd.f32 %v6183_v45, %v3173_v6  ;;  %v2861_v8 = vmul.f32 %v4236_v40, %v2860_v60  ;;  %v2914_v1 = vand.u32 2147483648, %v6194_v19 }
 0xb58   :  { %v2876_v0 = vmul.f32 %v6189_v5, %v2875_v16  ;;  %4245 = vtanh.f32 %v2257_v59  ;;  %v2912_v48 = vand.u32 2147483647, %v6194_v19  ;;  %vm2898_vm13 = vcmp.eq.f32.partialorder %v2897_v42, 8.507059e+37 }
 0xb59   :  { %v3223_v46 = vadd.f32 %v3222_v38, %v3174_v57  ;;  %v2862_v49 = vadd.f32 %v4236_v40, %v2861_v8  ;;  %4247 = vtanh.f32 %v2306_v35  ;;  %vm2908_vm14 = vweird.f32 %v6194_v19 }
 0xb5a   :  { %v4242_v56 = vpop.eup %4241  ;;  %v2877_v9 = vadd.f32 %v6189_v5, %v2876_v0  ;;  %4249 = vtanh.f32 %v2259_v41  ;;  %vm2913_vm1 = vcmp.eq.f32.partialorder %v2912_v48, 8.507059e+37 }
 0xb5b   :  { %v2889_v29 = vmul.f32 %v4242_v56, %v6187_v55  ;;  %3261 = vst [vmem:[#allocation17 + $0x8] sm:$0xff] %v3223_v46  ;;  %v2866_v13 = vsel %vm6207_vm4, %v4236_v40, %v2862_v49  ;;  %vm2894_vm8 = vweird.f32 %v4242_v56  ;;  %4251 = vtanh.f32 %v2308_v63 }
 0xb5c   :  { %v2871_v36 = vsel %vm6211_vm5, %v2870_v39, %v2866_v13  ;;  %v2881_v47 = vsel %vm6231_vm9, %v6189_v5, %v2877_v9  ;;  %vm2895_vm11 = vmor %vm2893_vm10, %vm2894_vm8  ;;  %v2915_v40 = vor.u32 1.1754944e-38, %v2914_v1 }
 0xb5d   :  { %v4244_v31 = vpop.eup %4243  ;;  %v2890_v10 = vsub.f32 1.0, %v2889_v29  ;;  %v2946_v20 = vsub.f32 1.0, %v2871_v36  ;;  %v2886_v37 = vsel %vm6219_vm7, %v2885_v27, %v2881_v47 }
 0xb5e   :  { %v2904_v3 = vmul.f32 %v4244_v31, %v6194_v19  ;;  %v3176_v12 = vpop.f32.mrf.mxu0  ;;  %v3225_v28 = vpop.f32.mrf.mxu1  ;;  %vm2909_vm12 = vweird.f32 %v4244_v31  ;;  %v2947_v51 = vsub.f32 1.0, %v2886_v37 }
 0xb5f   :  { %v3177_v21 = vadd.f32 %v6183_v45, %v3176_v12  ;;  %v2891_v61 = vmul.f32 %v4242_v56, %v2890_v10  ;;  %v4246_v4 = vpop.eup %4245  ;;  %vm2910_vm15 = vmor %vm2908_vm14, %vm2909_vm12 }
 0xb60   :  { %v2905_v11 = vsub.f32 1.0, %v2904_v3  ;;  %v4248_v2 = vpop.eup %4247  ;;  %v3010_v16 = vmul.f32 %v4246_v4, %v2946_v20 }
 0xb61   :  { %v3226_v43 = vadd.f32 %v3225_v28, %v3177_v21  ;;  %v2892_v7 = vadd.f32 %v4242_v56, %v2891_v61  ;;  %v4250_v14 = vpop.eup %4249  ;;  %v3011_v57 = vmul.f32 %v4248_v2, %v2947_v51 }
 0xb62   :  { %v2906_v50 = vmul.f32 %v4244_v31, %v2905_v11  ;;  %v4252_v55 = vpop.eup %4251 }
 0xb63   :  { %3262 = vst [vmem:[#allocation17 + $0x10] sm:$0xff] %v3226_v43  ;;  %v2896_v52 = vsel %vm2895_vm11, %v4242_v56, %v2892_v7 }
 0xb64   :  { %v2901_v26 = vsel %vm2898_vm13, %v2900_v17, %v2896_v52  ;;  %v2907_v15 = vadd.f32 %v4244_v31, %v2906_v50 }
 0xb65   :  { %v2948_v58 = vsub.f32 1.0, %v2901_v26 }
 0xb66   :  { %v3178_v5 = vpop.f32.mrf.mxu0  ;;  %v3227_v25 = vpop.f32.mrf.mxu1  ;;  %v2911_v22 = vsel %vm2910_vm15, %v4244_v31, %v2907_v15 }
 0xb67   :  { %v3179_v60 = vadd.f32 %v6183_v45, %v3178_v5  ;;  %v3012_v59 = vmul.f32 %v4250_v14, %v2948_v58  ;;  %v2916_v6 = vsel %vm2913_vm1, %v2915_v40, %v2911_v22 }
 0xb68   :  { %v2949_v38 = vsub.f32 1.0, %v2916_v6 }
 0xb69   :  { %v3228_v35 = vadd.f32 %v3227_v25, %v3179_v60  ;;  %v3028_v34 = vpack.c.bf16 %v3012_v59, %v3010_v16 }
 0xb6a   :  { %v3013_v8 = vmul.f32 %v4252_v55, %v2949_v38 }
 0xb6b   :  { %3263 = vst [vmem:[#allocation17 + $0x18] sm:$0xff] %v3228_v35  ;;  %3205 = vmatmul.bf16.gmra.mxu0 %v3028_v34 }
 0xb6c   :  { %v3029_v19 = vpack.c.bf16 %v3013_v8, %v3011_v57 }
 0xb6e   :  { %3254 = vmatmul.bf16.gmra.mxu1 %v3029_v19  ;;  %v3181_v53 = vpop.f32.mrf.mxu0  ;;  %v3230_v33 = vpop.f32.mrf.mxu1 }
 0xb6f   :  { %v3182_v0 = vadd.f32 %v6183_v45, %v3181_v53 }
 0xb71   :  { %v3231_v62 = vadd.f32 %v3230_v33, %v3182_v0 }
 0xb73   :  { %3264 = vst [vmem:[#allocation17 + $0x20] sm:$0xff] %v3231_v62 }
 0xb76   :  { %v3183_v46 = vpop.f32.mrf.mxu0  ;;  %v3232_v49 = vpop.f32.mrf.mxu1 }
 0xb77   :  { %v3184_v24 = vadd.f32 %v6183_v45, %v3183_v46 }
 0xb79   :  { %v3233_v56 = vadd.f32 %v3232_v49, %v3184_v24 }
 0xb7b   :  { %3265 = vst [vmem:[#allocation17 + $0x28] sm:$0xff] %v3233_v56 }
 0xb7e   :  { %v3186_v41 = vpop.f32.mrf.mxu0  ;;  %v3235_v23 = vpop.f32.mrf.mxu1 }
 0xb7f   :  { %v3187_v29 = vadd.f32 %v6183_v45, %v3186_v41 }
 0xb81   :  { %v3236_v63 = vadd.f32 %v3235_v23, %v3187_v29 }
 0xb83   :  { %3266 = vst [vmem:[#allocation17 + $0x30] sm:$0xff] %v3236_v63 }
 0xb86   :  { %v3188_v44 = vpop.f32.mrf.mxu0  ;;  %v3237_v30 = vpop.f32.mrf.mxu1 }
 0xb87   :  { %v3189_v9 = vadd.f32 %v6183_v45, %v3188_v44 }
 0xb89   :  { %v3238_v31 = vadd.f32 %v3237_v30, %v3189_v9 }
 0xb8b   :  { %3267 = vst [vmem:[#allocation17 + $0x38] sm:$0xff] %v3238_v31 }
 0xb8e   :  { %v3191_v10 = vpop.f32.mrf.mxu0  ;;  %v3240_v13 = vpop.f32.mrf.mxu1 }
 0xb8f   :  { %v3192_v39 = vadd.f32 %v6183_v45, %v3191_v10 }
 0xb91   :  { %v3241_v54 = vadd.f32 %v3240_v13, %v3192_v39 }
 0xb93   :  { %3268 = vst [vmem:[#allocation17 + $0x40] sm:$0xff] %v3241_v54 }
 0xb96   :  { %v3193_v3 = vpop.f32.mrf.mxu0  ;;  %v3242_v12 = vpop.f32.mrf.mxu1 }
 0xb97   :  { %v3194_v28 = vadd.f32 %v6183_v45, %v3193_v3 }
 0xb99   :  { %v3243_v32 = vadd.f32 %v3242_v12, %v3194_v28 }
 0xb9b   :  { %3269 = vst [vmem:[#allocation17 + $0x48] sm:$0xff] %v3243_v32 }
 0xb9e   :  { %v3196_v27 = vpop.f32.mrf.mxu0  ;;  %v3245_v21 = vpop.f32.mrf.mxu1 }
 0xb9f   :  { %v3197_v61 = vadd.f32 %v6183_v45, %v3196_v27 }
 0xba1   :  { %v3246_v42 = vadd.f32 %v3245_v21, %v3197_v61 }
 0xba3   :  { %3270 = vst [vmem:[#allocation17 + $0x50] sm:$0xff] %v3246_v42 }
 0xba6   :  { %v3198_v18 = vpop.f32.mrf.mxu0  ;;  %v3247_v4 = vpop.f32.mrf.mxu1 }
 0xba7   :  { %v3199_v11 = vadd.f32 %v6183_v45, %v3198_v18 }
 0xba9   :  { %v3248_v36 = vadd.f32 %v3247_v4, %v3199_v11 }
 0xbab   :  { %3271 = vst [vmem:[#allocation17 + $0x58] sm:$0xff] %v3248_v36 }
 0xbae   :  { %v3201_v47 = vpop.f32.mrf.mxu0  ;;  %v3250_v2 = vpop.f32.mrf.mxu1 }
 0xbaf   :  { %v3202_v43 = vadd.f32 %v6183_v45, %v3201_v47 }
 0xbb1   :  { %v3251_v7 = vadd.f32 %v3250_v2, %v3202_v43 }
 0xbb3   :  { %3272 = vst [vmem:[#allocation17 + $0x60] sm:$0xff] %v3251_v7 }
 0xbb6   :  { %v3203_v1 = vpop.f32.mrf.mxu0  ;;  %v3252_v50 = vpop.f32.mrf.mxu1 }
 0xbb7   :  { %v3204_v17 = vadd.f32 %v6183_v45, %v3203_v1 }
 0xbb9   :  { %v3253_v48 = vadd.f32 %v3252_v50, %v3204_v17 }
 0xbbb   :  { %3273 = vst [vmem:[#allocation17 + $0x68] sm:$0xff] %v3253_v48 }
 0xbe8   :  { %v3206_v52 = vpop.f32.mrf.mxu0 }
 0xbe9   :  { %v3207_v20 = vadd.f32 %v6183_v45, %v3206_v52 }
 0xbeb   :  { %v3255_v37 = vpop.f32.mrf.mxu1 }
 0xbec   :  { %v3256_v14 = vadd.f32 %v3255_v37, %v3207_v20 }
 0xbee   :  { %3274 = vst [vmem:[#allocation17 + $0x70] sm:$0xff] %v3256_v14 }
 0xbf0   :  { %v3208_v26 = vpop.f32.mrf.mxu0 }
 0xbf1   :  { %v3209_v15 = vadd.f32 %v6183_v45, %v3208_v26 }
 0xbf3   :  { %v3257_v58 = vpop.f32.mrf.mxu1 }
 0xbf4   :  { %v3258_v40 = vadd.f32 %v3257_v58, %v3209_v15 }
 0xbf6   :  { %3275 = vst [vmem:[#allocation17 + $0x78] sm:$0xff] %v3258_v40 }
 0xbf7   :  { %3288 = dma.vmem_to_hbm [thread:$0]  %s3281_s27, 2048, %s3283_s30, [#allocation7], %s4467_s21, %s4467_s21, %s4468_s22  }
 0xbf8   :  { %4461 = dma.done.wait [#allocation7], 2048  }
 0xbf9   :  { %4462 = vsyncadd [#allocation7], 4294965248 }
 0xbfa   :  { %3293 = vsyncpa [#allocation6], 1 }
 0xbfb   :  { %3294 = vsyncpa [#allocation9], 1 }
 0xbfc   :  { %3295 = vsyncpa [#allocation12], 1 }
 0xbfd   :  { %3296 = vsyncpa [#allocation15], 1 }
 0xbfe   :  { %3297 = vsyncpa [#allocation7], 1 }

</bundles_post_ra>
